<compile_context>
chip_gen: v5e
topology: v5e:2x2
jax: 0.10.0
libtpu: 0.0.40
codegen_flags: <defaults>
</compile_context>

<pallas_src>
import numpy as np
import jax
import jax.numpy as jnp
from jax import lax
from jax.experimental import pallas as pl
from jax.experimental.pallas import tpu as pltpu


_PARAM_NAMES = ("aux1", "tg1", "gc1", "aux2", "tg2", "gc2")


# ----------------------------- kernel helpers -----------------------------

def _conv1d_tm(v, w_ref, b_ref, dilation=1):
    """'same'-padded 1-D cross-correlation on a time-major (T, Cin) tile.

    v:      (T, Cin) f32 activations.
    w_ref:  (K*Cin, Cout) bf16 VMEM ref, row index = k*Cin + cin (tap-major).
    b_ref:  (1, Cout) f32 VMEM ref.
    Returns (T, Cout) f32.

    Pad once along time, build a (T, K*Cin) im2col matrix from K static
    slices, then a single bf16 MXU matmul with f32 accumulation.
    """
    T, cin = v.shape
    K = w_ref.shape[0] // cin
    pad = (K - 1) // 2 * dilation

    v_bf = v.astype(jnp.bfloat16)
    zeros = jnp.zeros((pad, cin), jnp.bfloat16)
    v_pad = jnp.concatenate([zeros, v_bf, zeros], axis=0)       # (T + 2*pad, Cin)
    cols = [v_pad[k * dilation:k * dilation + T, :] for k in range(K)]
    im2col = jnp.concatenate(cols, axis=1)                      # (T, K*Cin)
    out = jnp.dot(im2col, w_ref[...], preferred_element_type=jnp.float32)
    return out + b_ref[...]


def _instance_norm_tm(v, eps=1e-5):
    """InstanceNorm1d (no affine); reduction over the time (sublane) axis."""
    mu = jnp.mean(v, axis=0, keepdims=True)
    var = jnp.mean((v - mu) ** 2, axis=0, keepdims=True)
    return (v - mu) * lax.rsqrt(var + eps)


def _softmax_channels(v):
    """Softmax over the channel (lane) axis; EUP reciprocal for the denom."""
    m = jnp.max(v, axis=1, keepdims=True)
    e = jnp.exp(v - m)
    return e * pl.reciprocal(jnp.sum(e, axis=1, keepdims=True), approx=True)


def _upsample2_tm(v):
    """Nearest-neighbor x2 upsample along time: (T, C) -> (2T, C)."""
    T, C = v.shape
    return jnp.broadcast_to(v[:, None, :], (T, 2, C)).reshape(2 * T, C)


# ------------------------------- the kernel -------------------------------

def _tade_res_block_kernel(x_ref, c_ref,
                           w_aux1, b_aux1, w_tg1, b_tg1, w_gc1, b_gc1,
                           w_aux2, b_aux2, w_tg2, b_tg2, w_gc2, b_gc2,
                           out_ref):
    C = x_ref.shape[2]
    x = x_ref[0]                       # (T, C)
    c = c_ref[0]                       # (T, Caux)

    # ---- TADE layer 1 (upsample factor 1) ----
    x_n = _instance_norm_tm(x)
    c1 = _conv1d_tm(c, w_aux1, b_aux1)                   # (T, C)
    cg = _conv1d_tm(c1, w_tg1, b_tg1)                    # (T, 2C)
    y = cg[:, :C] * x_n + cg[:, C:]                      # (T, C)

    # ---- gated_conv1 + softmax/tanh gate ----
    g = _conv1d_tm(y, w_gc1, b_gc1)                      # (T, 2C)
    xg = _softmax_channels(g[:, :C]) * jnp.tanh(g[:, C:])

    # ---- TADE layer 2 (upsample factor 2, nearest) ----
    xg_n = _instance_norm_tm(xg)
    c_up = _upsample2_tm(c1)                             # (2T, C)
    c2 = _conv1d_tm(c_up, w_aux2, b_aux2)                # (2T, C)
    cg2 = _conv1d_tm(c2, w_tg2, b_tg2)                   # (2T, 2C)
    x_up = _upsample2_tm(xg_n)                           # (2T, C)
    y2 = cg2[:, :C] * x_up + cg2[:, C:]                  # (2T, C)

    # ---- gated_conv2 (dilation=2) + softmax/tanh gate ----
    g2 = _conv1d_tm(y2, w_gc2, b_gc2, dilation=2)        # (2T, 2C)
    xg2 = _softmax_channels(g2[:, :C]) * jnp.tanh(g2[:, C:])

    # ---- residual (upsampled) + lane-dense packed output [y | c2] ----
    res_up = _upsample2_tm(x)
    packed = jnp.concatenate([res_up + xg2, c2], axis=1)  # (2T, 2C) = 128 lanes
    out_ref[0] = packed.astype(out_ref.dtype)


# ------------------------------- wrapper -----------------------------------

def tade_res_block(x_nct, c_nct, params):
    """x_nct: (B, C, T), c_nct: (B, Caux, T). Returns ((B, C, 2T), (B, C, 2T)).

    `params` must be in kernel layout (see pack_params): weights (K*Cin, Cout)
    bf16, biases (1, Cout) f32.
    """
    B, C, T = x_nct.shape
    Caux = c_nct.shape[1]
    T2 = 2 * T
    x_tm = jnp.transpose(x_nct, (0, 2, 1)).astype(jnp.float32)
    c_tm = jnp.transpose(c_nct, (0, 2, 1)).astype(jnp.float32)

    weight_args = []
    in_specs = [
        pl.BlockSpec((1, T, C), lambda b: (b, 0, 0)),
        pl.BlockSpec((1, T, Caux), lambda b: (b, 0, 0)),
    ]
    for name in _PARAM_NAMES:
        w = params["w_" + name]       # (K*Cin, Cout) bf16
        bias = params["b_" + name]    # (1, Cout) f32
        weight_args += [w, bias]
        in_specs += [
            pl.BlockSpec(w.shape, lambda b: (0, 0)),
            pl.BlockSpec(bias.shape, lambda b: (0, 0)),
        ]

    # Single lane-dense (2C = 128) output: [:, :, :C] = y, [:, :, C:] = c2.
    out_shape = jax.ShapeDtypeStruct((B, T2, 2 * C), jnp.float32)
    out_specs = pl.BlockSpec((1, T2, 2 * C), lambda b: (b, 0, 0))

    packed = pl.pallas_call(
        _tade_res_block_kernel,
        out_shape=out_shape,
        grid_spec=pltpu.PrefetchScalarGridSpec(
            num_scalar_prefetch=0,
            grid=(B,),
            in_specs=in_specs,
            out_specs=out_specs,
        ),
        compiler_params=pltpu.CompilerParams(
            dimension_semantics=("parallel",),
            vmem_limit_bytes=48 * 1024 * 1024),
    )(x_tm, c_tm, *weight_args)

    y_tm = packed[:, :, :C]
    c2_tm = packed[:, :, C:]
    return jnp.transpose(y_tm, (0, 2, 1)), jnp.transpose(c2_tm, (0, 2, 1))


# --------------------- parameter init / layout packing ---------------------

def init_params_torch_layout(key, in_channels=64, aux_channels=80,
                             kernel_size=9, std=0.05):
    """Weights in PyTorch Conv1d layout (Cout, Cin, K); biases (Cout,)."""
    ks = jax.random.split(key, 12)

    def w(k, cout, cin):
        return jax.random.normal(k, (cout, cin, kernel_size), jnp.float32) * std

    def b(k, cout):
        return jax.random.normal(k, (cout,), jnp.float32) * std

    C = in_channels
    return {
        "w_aux1": w(ks[0], C, aux_channels),  "b_aux1": b(ks[1], C),
        "w_tg1":  w(ks[2], 2 * C, C),         "b_tg1":  b(ks[3], 2 * C),
        "w_gc1":  w(ks[4], 2 * C, C),         "b_gc1":  b(ks[5], 2 * C),
        "w_aux2": w(ks[6], C, C),             "b_aux2": b(ks[7], C),
        "w_tg2":  w(ks[8], 2 * C, C),         "b_tg2":  b(ks[9], 2 * C),
        "w_gc2":  w(ks[10], 2 * C, C),        "b_gc2":  b(ks[11], 2 * C),
    }


def pack_params(p_torch):
    """PyTorch (Cout, Cin, K) weights -> (K*Cin, Cout) bf16 (tap-major rows,
    matching the kernel's im2col column order); biases -> (1, Cout) f32."""
    packed = {}
    for name in _PARAM_NAMES:
        w = p_torch["w_" + name]
        cout = w.shape[0]
        w_km = jnp.transpose(w, (2, 1, 0)).reshape(-1, cout)   # (K*Cin, Cout)
        packed["w_" + name] = w_km.astype(jnp.bfloat16)
        packed["b_" + name] = p_torch["b_" + name][None, :].astype(jnp.float32)
    return packed


# ------------------------ pure-JAX reference check -------------------------

def _conv1d_ref(x, w, b, dilation=1, bf16_operands=False):
    if bf16_operands:   # model "bf16 MXU operands, f32 accumulation"
        x = x.astype(jnp.bfloat16).astype(jnp.float32)
        w = w.astype(jnp.bfloat16).astype(jnp.float32)
    pad = (w.shape[2] - 1) // 2 * dilation
    y = lax.conv_general_dilated(
        x, w, window_strides=(1,), padding=[(pad, pad)],
        rhs_dilation=(dilation,),
        dimension_numbers=("NCH", "OIH", "NCH"),
        precision=lax.Precision.HIGHEST)
    return y + b[None, :, None]


def _instance_norm_ref(x, eps=1e-5):
    mu = jnp.mean(x, axis=2, keepdims=True)
    var = jnp.mean((x - mu) ** 2, axis=2, keepdims=True)
    return (x - mu) / jnp.sqrt(var + eps)


def ref_forward(x, c, p, bf16_operands=False):
    conv = lambda v, w, b, d=1: _conv1d_ref(v, w, b, d, bf16_operands)
    C = x.shape[1]
    residual = x
    xn = _instance_norm_ref(x)
    c1 = conv(c, p["w_aux1"], p["b_aux1"])
    cg = conv(c1, p["w_tg1"], p["b_tg1"])
    y = cg[:, :C] * xn + cg[:, C:]
    g = conv(y, p["w_gc1"], p["b_gc1"])
    xg = jax.nn.softmax(g[:, :C], axis=1) * jnp.tanh(g[:, C:])
    xn2 = _instance_norm_ref(xg)
    c_up = jnp.repeat(c1, 2, axis=2)
    c2 = conv(c_up, p["w_aux2"], p["b_aux2"])
    cg2 = conv(c2, p["w_tg2"], p["b_tg2"])
    x_up = jnp.repeat(xn2, 2, axis=2)
    y2 = cg2[:, :C] * x_up + cg2[:, C:]
    g2 = conv(y2, p["w_gc2"], p["b_gc2"], 2)
    xg2 = jax.nn.softmax(g2[:, :C], axis=1) * jnp.tanh(g2[:, C:])
    return jnp.repeat(residual, 2, axis=2) + xg2, c2


# --------------------------------- main -------------------------------------

if __name__ == "__main__":
    key = jax.random.PRNGKey(0)
    k_x, k_c, k_p = jax.random.split(key, 3)
    B, C, Caux, T = 2, 64, 80, 16

    x = jax.random.normal(k_x, (B, C, T), jnp.float32)       # (B, in_channels, T)
    c = jax.random.normal(k_c, (B, Caux, T), jnp.float32)    # (B, aux_channels, T)

    p_torch = init_params_torch_layout(k_p, in_channels=C, aux_channels=Caux)
    p_kern = pack_params(p_torch)

    y, c_out = tade_res_block(x, c, p_kern)
    y = jax.block_until_ready(y)
    c_out = jax.block_until_ready(c_out)

    assert y.shape == (B, C, 2 * T) and c_out.shape == (B, C, 2 * T)

    # Strict check against a reference that models the same bf16-operand /
    # f32-accumulate MXU arithmetic (remaining diff: accumulation order +
    # approx reciprocal in the softmax denominator).
    y_ref_bf, c_ref_bf = ref_forward(x, c, p_torch, bf16_operands=True)
    err_y = float(jnp.max(jnp.abs(y - y_ref_bf)))
    err_c = float(jnp.max(jnp.abs(c_out - c_ref_bf)))
    assert np.isfinite(err_y) and np.isfinite(err_c)
    assert err_y < 5e-2 and err_c < 5e-2, (err_y, err_c)

    # Loose sanity check against the full-f32 reference (bf16 rounding gets
    # amplified by the two instance norms + softmax gates, hence the margin).
    y_ref, c_ref = ref_forward(x, c, p_torch, bf16_operands=False)
    assert float(jnp.max(jnp.abs(y - y_ref))) < 2.5e-1
    assert float(jnp.max(jnp.abs(c_out - c_ref))) < 2.5e-1

    print("KERNEL_OK")
</pallas_src>

<mosaic_0001>
module attributes {stable_mosaic.version = 11 : i64} {
  func.func @_tade_res_block_kernel(%arg0: i32, %arg1: memref<1x16x64xf32, #tpu.memory_space<vmem>>, %arg2: memref<1x16x80xf32, #tpu.memory_space<vmem>>, %arg3: memref<720x64xbf16, #tpu.memory_space<vmem>>, %arg4: memref<1x64xf32, #tpu.memory_space<vmem>>, %arg5: memref<576x128xbf16, #tpu.memory_space<vmem>>, %arg6: memref<1x128xf32, #tpu.memory_space<vmem>>, %arg7: memref<576x128xbf16, #tpu.memory_space<vmem>>, %arg8: memref<1x128xf32, #tpu.memory_space<vmem>>, %arg9: memref<576x64xbf16, #tpu.memory_space<vmem>>, %arg10: memref<1x64xf32, #tpu.memory_space<vmem>>, %arg11: memref<576x128xbf16, #tpu.memory_space<vmem>>, %arg12: memref<1x128xf32, #tpu.memory_space<vmem>>, %arg13: memref<576x128xbf16, #tpu.memory_space<vmem>>, %arg14: memref<1x128xf32, #tpu.memory_space<vmem>>, %arg15: memref<1x32x128xf32, #tpu.memory_space<vmem>>) attributes {dimension_semantics = [#tpu.dimension_semantics<parallel>], iteration_bounds = array<i64: 2>, scalar_prefetch = 0 : i64, scratch_operands = 0 : i64, tpu.core_type = #tpu.core_type<tc>, window_params = [{transform_indices = @transform_0, window_bounds = array<i64: 1, 16, 64>}, {transform_indices = @transform_1, window_bounds = array<i64: 1, 16, 80>}, {pipeline_mode = #tpu.pipeline_mode<synchronous>, transform_indices = @transform_2, window_bounds = array<i64: 720, 64>}, {pipeline_mode = #tpu.pipeline_mode<synchronous>, transform_indices = @transform_3, window_bounds = array<i64: 1, 64>}, {pipeline_mode = #tpu.pipeline_mode<synchronous>, transform_indices = @transform_4, window_bounds = array<i64: 576, 128>}, {pipeline_mode = #tpu.pipeline_mode<synchronous>, transform_indices = @transform_5, window_bounds = array<i64: 1, 128>}, {pipeline_mode = #tpu.pipeline_mode<synchronous>, transform_indices = @transform_6, window_bounds = array<i64: 576, 128>}, {pipeline_mode = #tpu.pipeline_mode<synchronous>, transform_indices = @transform_7, window_bounds = array<i64: 1, 128>}, {pipeline_mode = #tpu.pipeline_mode<synchronous>, transform_indices = @transform_8, window_bounds = array<i64: 576, 64>}, {pipeline_mode = #tpu.pipeline_mode<synchronous>, transform_indices = @transform_9, window_bounds = array<i64: 1, 64>}, {pipeline_mode = #tpu.pipeline_mode<synchronous>, transform_indices = @transform_10, window_bounds = array<i64: 576, 128>}, {pipeline_mode = #tpu.pipeline_mode<synchronous>, transform_indices = @transform_11, window_bounds = array<i64: 1, 128>}, {pipeline_mode = #tpu.pipeline_mode<synchronous>, transform_indices = @transform_12, window_bounds = array<i64: 576, 128>}, {pipeline_mode = #tpu.pipeline_mode<synchronous>, transform_indices = @transform_13, window_bounds = array<i64: 1, 128>}, {transform_indices = @transform_14, window_bounds = array<i64: 1, 32, 128>}]} {
    %c0 = arith.constant 0 : index
    %c0_0 = arith.constant 0 : index
    %c0_1 = arith.constant 0 : index
    %0 = vector.load %arg1[%c0, %c0_0, %c0_1] : memref<1x16x64xf32, #tpu.memory_space<vmem>>, vector<1x16x64xf32>
    %1 = vector.shape_cast %0 : vector<1x16x64xf32> to vector<16x64xf32>
    %c0_2 = arith.constant 0 : index
    %c0_3 = arith.constant 0 : index
    %c0_4 = arith.constant 0 : index
    %2 = vector.load %arg2[%c0_2, %c0_3, %c0_4] : memref<1x16x80xf32, #tpu.memory_space<vmem>>, vector<1x16x80xf32>
    %3 = vector.shape_cast %2 : vector<1x16x80xf32> to vector<16x80xf32>
    %cst = arith.constant dense<0.000000e+00> : vector<64xf32>
    %4 = vector.multi_reduction <add>, %1, %cst [0] : vector<16x64xf32> to vector<64xf32>
    %5 = vector.shape_cast %4 : vector<64xf32> to vector<1x64xf32>
    %cst_5 = arith.constant 1.600000e+01 : f32
    %6 = vector.broadcast %cst_5 : f32 to vector<1x64xf32>
    %7 = arith.divf %5, %6 : vector<1x64xf32>
    %8 = vector.broadcast %7 : vector<1x64xf32> to vector<16x64xf32>
    %9 = arith.subf %1, %8 : vector<16x64xf32>
    %10 = arith.mulf %9, %9 : vector<16x64xf32>
    %cst_6 = arith.constant dense<0.000000e+00> : vector<64xf32>
    %11 = vector.multi_reduction <add>, %10, %cst_6 [0] : vector<16x64xf32> to vector<64xf32>
    %12 = vector.shape_cast %11 : vector<64xf32> to vector<1x64xf32>
    %cst_7 = arith.constant 1.600000e+01 : f32
    %13 = vector.broadcast %cst_7 : f32 to vector<1x64xf32>
    %14 = arith.divf %12, %13 : vector<1x64xf32>
    %15 = vector.broadcast %7 : vector<1x64xf32> to vector<16x64xf32>
    %16 = arith.subf %1, %15 : vector<16x64xf32>
    %cst_8 = arith.constant 9.99999974E-6 : f32
    %17 = vector.broadcast %cst_8 : f32 to vector<1x64xf32>
    %18 = arith.addf %14, %17 : vector<1x64xf32>
    %19 = math.rsqrt %18 : vector<1x64xf32>
    %20 = vector.broadcast %19 : vector<1x64xf32> to vector<16x64xf32>
    %21 = arith.mulf %16, %20 : vector<16x64xf32>
    %22 = arith.truncf %3 : vector<16x80xf32> to vector<16x80xbf16>
    %cst_9 = arith.constant 0.000000e+00 : bf16
    %23 = vector.broadcast %cst_9 : bf16 to vector<4x80xbf16>
    %24 = tpu.concatenate %23, %22, %23 in 0 : vector<4x80xbf16>, vector<16x80xbf16>, vector<4x80xbf16> -> vector<24x80xbf16>
    %25 = vector.extract_strided_slice %24 {offsets = [0, 0], sizes = [16, 80], strides = [1, 1]} : vector<24x80xbf16> to vector<16x80xbf16>
    %26 = vector.extract_strided_slice %24 {offsets = [1, 0], sizes = [16, 80], strides = [1, 1]} : vector<24x80xbf16> to vector<16x80xbf16>
    %27 = vector.extract_strided_slice %24 {offsets = [2, 0], sizes = [16, 80], strides = [1, 1]} : vector<24x80xbf16> to vector<16x80xbf16>
    %28 = vector.extract_strided_slice %24 {offsets = [3, 0], sizes = [16, 80], strides = [1, 1]} : vector<24x80xbf16> to vector<16x80xbf16>
    %29 = vector.extract_strided_slice %24 {offsets = [4, 0], sizes = [16, 80], strides = [1, 1]} : vector<24x80xbf16> to vector<16x80xbf16>
    %30 = vector.extract_strided_slice %24 {offsets = [5, 0], sizes = [16, 80], strides = [1, 1]} : vector<24x80xbf16> to vector<16x80xbf16>
    %31 = vector.extract_strided_slice %24 {offsets = [6, 0], sizes = [16, 80], strides = [1, 1]} : vector<24x80xbf16> to vector<16x80xbf16>
    %32 = vector.extract_strided_slice %24 {offsets = [7, 0], sizes = [16, 80], strides = [1, 1]} : vector<24x80xbf16> to vector<16x80xbf16>
    %33 = vector.extract_strided_slice %24 {offsets = [8, 0], sizes = [16, 80], strides = [1, 1]} : vector<24x80xbf16> to vector<16x80xbf16>
    %34 = tpu.concatenate %25, %26, %27, %28, %29, %30, %31, %32, %33 in 1 : vector<16x80xbf16>, vector<16x80xbf16>, vector<16x80xbf16>, vector<16x80xbf16>, vector<16x80xbf16>, vector<16x80xbf16>, vector<16x80xbf16>, vector<16x80xbf16>, vector<16x80xbf16> -> vector<16x720xbf16>
    %c0_10 = arith.constant 0 : index
    %c0_11 = arith.constant 0 : index
    %35 = vector.load %arg3[%c0_10, %c0_11] : memref<720x64xbf16, #tpu.memory_space<vmem>>, vector<720x64xbf16>
    %cst_12 = arith.constant dense<0.000000e+00> : vector<16x64xf32>
    %36 = tpu.matmul %34, %35, %cst_12 {dimension_numbers = #tpu.dot_dimension_numbers<[1], [0], [0], [1], [0, 0, 1, 1], [], []>} : vector<16x720xbf16>, vector<720x64xbf16>, vector<16x64xf32> -> vector<16x64xf32>
    %c0_13 = arith.constant 0 : index
    %c0_14 = arith.constant 0 : index
    %37 = vector.load %arg4[%c0_13, %c0_14] : memref<1x64xf32, #tpu.memory_space<vmem>>, vector<1x64xf32>
    %38 = vector.broadcast %37 : vector<1x64xf32> to vector<16x64xf32>
    %39 = arith.addf %36, %38 : vector<16x64xf32>
    %40 = arith.truncf %39 : vector<16x64xf32> to vector<16x64xbf16>
    %cst_15 = arith.constant 0.000000e+00 : bf16
    %41 = vector.broadcast %cst_15 : bf16 to vector<4x64xbf16>
    %42 = tpu.concatenate %41, %40, %41 in 0 : vector<4x64xbf16>, vector<16x64xbf16>, vector<4x64xbf16> -> vector<24x64xbf16>
    %43 = vector.extract_strided_slice %42 {offsets = [0, 0], sizes = [16, 64], strides = [1, 1]} : vector<24x64xbf16> to vector<16x64xbf16>
    %44 = vector.extract_strided_slice %42 {offsets = [1, 0], sizes = [16, 64], strides = [1, 1]} : vector<24x64xbf16> to vector<16x64xbf16>
    %45 = vector.extract_strided_slice %42 {offsets = [2, 0], sizes = [16, 64], strides = [1, 1]} : vector<24x64xbf16> to vector<16x64xbf16>
    %46 = vector.extract_strided_slice %42 {offsets = [3, 0], sizes = [16, 64], strides = [1, 1]} : vector<24x64xbf16> to vector<16x64xbf16>
    %47 = vector.extract_strided_slice %42 {offsets = [4, 0], sizes = [16, 64], strides = [1, 1]} : vector<24x64xbf16> to vector<16x64xbf16>
    %48 = vector.extract_strided_slice %42 {offsets = [5, 0], sizes = [16, 64], strides = [1, 1]} : vector<24x64xbf16> to vector<16x64xbf16>
    %49 = vector.extract_strided_slice %42 {offsets = [6, 0], sizes = [16, 64], strides = [1, 1]} : vector<24x64xbf16> to vector<16x64xbf16>
    %50 = vector.extract_strided_slice %42 {offsets = [7, 0], sizes = [16, 64], strides = [1, 1]} : vector<24x64xbf16> to vector<16x64xbf16>
    %51 = vector.extract_strided_slice %42 {offsets = [8, 0], sizes = [16, 64], strides = [1, 1]} : vector<24x64xbf16> to vector<16x64xbf16>
    %52 = tpu.concatenate %43, %44, %45, %46, %47, %48, %49, %50, %51 in 1 : vector<16x64xbf16>, vector<16x64xbf16>, vector<16x64xbf16>, vector<16x64xbf16>, vector<16x64xbf16>, vector<16x64xbf16>, vector<16x64xbf16>, vector<16x64xbf16>, vector<16x64xbf16> -> vector<16x576xbf16>
    %c0_16 = arith.constant 0 : index
    %c0_17 = arith.constant 0 : index
    %53 = vector.load %arg5[%c0_16, %c0_17] : memref<576x128xbf16, #tpu.memory_space<vmem>>, vector<576x128xbf16>
    %cst_18 = arith.constant dense<0.000000e+00> : vector<16x128xf32>
    %54 = tpu.matmul %52, %53, %cst_18 {dimension_numbers = #tpu.dot_dimension_numbers<[1], [0], [0], [1], [0, 0, 1, 1], [], []>} : vector<16x576xbf16>, vector<576x128xbf16>, vector<16x128xf32> -> vector<16x128xf32>
    %c0_19 = arith.constant 0 : index
    %c0_20 = arith.constant 0 : index
    %55 = vector.load %arg6[%c0_19, %c0_20] : memref<1x128xf32, #tpu.memory_space<vmem>>, vector<1x128xf32>
    %56 = vector.broadcast %55 : vector<1x128xf32> to vector<16x128xf32>
    %57 = arith.addf %54, %56 : vector<16x128xf32>
    %58 = vector.extract_strided_slice %57 {offsets = [0, 0], sizes = [16, 64], strides = [1, 1]} : vector<16x128xf32> to vector<16x64xf32>
    %59 = arith.mulf %58, %21 : vector<16x64xf32>
    %60 = vector.extract_strided_slice %57 {offsets = [0, 64], sizes = [16, 64], strides = [1, 1]} : vector<16x128xf32> to vector<16x64xf32>
    %61 = arith.addf %59, %60 : vector<16x64xf32>
    %62 = arith.truncf %61 : vector<16x64xf32> to vector<16x64xbf16>
    %cst_21 = arith.constant 0.000000e+00 : bf16
    %63 = vector.broadcast %cst_21 : bf16 to vector<4x64xbf16>
    %64 = tpu.concatenate %63, %62, %63 in 0 : vector<4x64xbf16>, vector<16x64xbf16>, vector<4x64xbf16> -> vector<24x64xbf16>
    %65 = vector.extract_strided_slice %64 {offsets = [0, 0], sizes = [16, 64], strides = [1, 1]} : vector<24x64xbf16> to vector<16x64xbf16>
    %66 = vector.extract_strided_slice %64 {offsets = [1, 0], sizes = [16, 64], strides = [1, 1]} : vector<24x64xbf16> to vector<16x64xbf16>
    %67 = vector.extract_strided_slice %64 {offsets = [2, 0], sizes = [16, 64], strides = [1, 1]} : vector<24x64xbf16> to vector<16x64xbf16>
    %68 = vector.extract_strided_slice %64 {offsets = [3, 0], sizes = [16, 64], strides = [1, 1]} : vector<24x64xbf16> to vector<16x64xbf16>
    %69 = vector.extract_strided_slice %64 {offsets = [4, 0], sizes = [16, 64], strides = [1, 1]} : vector<24x64xbf16> to vector<16x64xbf16>
    %70 = vector.extract_strided_slice %64 {offsets = [5, 0], sizes = [16, 64], strides = [1, 1]} : vector<24x64xbf16> to vector<16x64xbf16>
    %71 = vector.extract_strided_slice %64 {offsets = [6, 0], sizes = [16, 64], strides = [1, 1]} : vector<24x64xbf16> to vector<16x64xbf16>
    %72 = vector.extract_strided_slice %64 {offsets = [7, 0], sizes = [16, 64], strides = [1, 1]} : vector<24x64xbf16> to vector<16x64xbf16>
    %73 = vector.extract_strided_slice %64 {offsets = [8, 0], sizes = [16, 64], strides = [1, 1]} : vector<24x64xbf16> to vector<16x64xbf16>
    %74 = tpu.concatenate %65, %66, %67, %68, %69, %70, %71, %72, %73 in 1 : vector<16x64xbf16>, vector<16x64xbf16>, vector<16x64xbf16>, vector<16x64xbf16>, vector<16x64xbf16>, vector<16x64xbf16>, vector<16x64xbf16>, vector<16x64xbf16>, vector<16x64xbf16> -> vector<16x576xbf16>
    %c0_22 = arith.constant 0 : index
    %c0_23 = arith.constant 0 : index
    %75 = vector.load %arg7[%c0_22, %c0_23] : memref<576x128xbf16, #tpu.memory_space<vmem>>, vector<576x128xbf16>
    %cst_24 = arith.constant dense<0.000000e+00> : vector<16x128xf32>
    %76 = tpu.matmul %74, %75, %cst_24 {dimension_numbers = #tpu.dot_dimension_numbers<[1], [0], [0], [1], [0, 0, 1, 1], [], []>} : vector<16x576xbf16>, vector<576x128xbf16>, vector<16x128xf32> -> vector<16x128xf32>
    %c0_25 = arith.constant 0 : index
    %c0_26 = arith.constant 0 : index
    %77 = vector.load %arg8[%c0_25, %c0_26] : memref<1x128xf32, #tpu.memory_space<vmem>>, vector<1x128xf32>
    %78 = vector.broadcast %77 : vector<1x128xf32> to vector<16x128xf32>
    %79 = arith.addf %76, %78 : vector<16x128xf32>
    %80 = vector.extract_strided_slice %79 {offsets = [0, 0], sizes = [16, 64], strides = [1, 1]} : vector<16x128xf32> to vector<16x64xf32>
    %cst_27 = arith.constant dense<0xFF800000> : vector<16xf32>
    %81 = vector.multi_reduction <maximumf>, %80, %cst_27 [1] : vector<16x64xf32> to vector<16xf32>
    %82 = vector.shape_cast %81 : vector<16xf32> to vector<16x1xf32>
    %83 = vector.broadcast %82 : vector<16x1xf32> to vector<16x64xf32>
    %84 = arith.subf %80, %83 : vector<16x64xf32>
    %85 = math.exp %84 : vector<16x64xf32>
    %cst_28 = arith.constant dense<0.000000e+00> : vector<16xf32>
    %86 = vector.multi_reduction <add>, %85, %cst_28 [1] : vector<16x64xf32> to vector<16xf32>
    %87 = vector.shape_cast %86 : vector<16xf32> to vector<16x1xf32>
    %88 = tpu.reciprocal %87 {approx = true} : vector<16x1xf32> -> vector<16x1xf32>
    %89 = vector.broadcast %88 : vector<16x1xf32> to vector<16x64xf32>
    %90 = arith.mulf %85, %89 : vector<16x64xf32>
    %91 = vector.extract_strided_slice %79 {offsets = [0, 64], sizes = [16, 64], strides = [1, 1]} : vector<16x128xf32> to vector<16x64xf32>
    %92 = math.tanh %91 : vector<16x64xf32>
    %93 = arith.mulf %90, %92 : vector<16x64xf32>
    %cst_29 = arith.constant dense<0.000000e+00> : vector<64xf32>
    %94 = vector.multi_reduction <add>, %93, %cst_29 [0] : vector<16x64xf32> to vector<64xf32>
    %95 = vector.shape_cast %94 : vector<64xf32> to vector<1x64xf32>
    %cst_30 = arith.constant 1.600000e+01 : f32
    %96 = vector.broadcast %cst_30 : f32 to vector<1x64xf32>
    %97 = arith.divf %95, %96 : vector<1x64xf32>
    %98 = vector.broadcast %97 : vector<1x64xf32> to vector<16x64xf32>
    %99 = arith.subf %93, %98 : vector<16x64xf32>
    %100 = arith.mulf %99, %99 : vector<16x64xf32>
    %cst_31 = arith.constant dense<0.000000e+00> : vector<64xf32>
    %101 = vector.multi_reduction <add>, %100, %cst_31 [0] : vector<16x64xf32> to vector<64xf32>
    %102 = vector.shape_cast %101 : vector<64xf32> to vector<1x64xf32>
    %cst_32 = arith.constant 1.600000e+01 : f32
    %103 = vector.broadcast %cst_32 : f32 to vector<1x64xf32>
    %104 = arith.divf %102, %103 : vector<1x64xf32>
    %105 = vector.broadcast %97 : vector<1x64xf32> to vector<16x64xf32>
    %106 = arith.subf %93, %105 : vector<16x64xf32>
    %cst_33 = arith.constant 9.99999974E-6 : f32
    %107 = vector.broadcast %cst_33 : f32 to vector<1x64xf32>
    %108 = arith.addf %104, %107 : vector<1x64xf32>
    %109 = math.rsqrt %108 : vector<1x64xf32>
    %110 = vector.broadcast %109 : vector<1x64xf32> to vector<16x64xf32>
    %111 = arith.mulf %106, %110 : vector<16x64xf32>
    %112 = vector.shape_cast %39 : vector<16x64xf32> to vector<16x1x64xf32>
    %113 = vector.shape_cast %112 : vector<16x1x64xf32> to vector<16x1x64xf32>
    %114 = vector.broadcast %113 : vector<16x1x64xf32> to vector<16x2x64xf32>
    %115 = vector.shape_cast %114 : vector<16x2x64xf32> to vector<32x64xf32>
    %116 = arith.truncf %115 : vector<32x64xf32> to vector<32x64xbf16>
    %cst_34 = arith.constant 0.000000e+00 : bf16
    %117 = vector.broadcast %cst_34 : bf16 to vector<4x64xbf16>
    %118 = tpu.concatenate %117, %116, %117 in 0 : vector<4x64xbf16>, vector<32x64xbf16>, vector<4x64xbf16> -> vector<40x64xbf16>
    %119 = vector.extract_strided_slice %118 {offsets = [0, 0], sizes = [32, 64], strides = [1, 1]} : vector<40x64xbf16> to vector<32x64xbf16>
    %120 = vector.extract_strided_slice %118 {offsets = [1, 0], sizes = [32, 64], strides = [1, 1]} : vector<40x64xbf16> to vector<32x64xbf16>
    %121 = vector.extract_strided_slice %118 {offsets = [2, 0], sizes = [32, 64], strides = [1, 1]} : vector<40x64xbf16> to vector<32x64xbf16>
    %122 = vector.extract_strided_slice %118 {offsets = [3, 0], sizes = [32, 64], strides = [1, 1]} : vector<40x64xbf16> to vector<32x64xbf16>
    %123 = vector.extract_strided_slice %118 {offsets = [4, 0], sizes = [32, 64], strides = [1, 1]} : vector<40x64xbf16> to vector<32x64xbf16>
    %124 = vector.extract_strided_slice %118 {offsets = [5, 0], sizes = [32, 64], strides = [1, 1]} : vector<40x64xbf16> to vector<32x64xbf16>
    %125 = vector.extract_strided_slice %118 {offsets = [6, 0], sizes = [32, 64], strides = [1, 1]} : vector<40x64xbf16> to vector<32x64xbf16>
    %126 = vector.extract_strided_slice %118 {offsets = [7, 0], sizes = [32, 64], strides = [1, 1]} : vector<40x64xbf16> to vector<32x64xbf16>
    %127 = vector.extract_strided_slice %118 {offsets = [8, 0], sizes = [32, 64], strides = [1, 1]} : vector<40x64xbf16> to vector<32x64xbf16>
    %128 = tpu.concatenate %119, %120, %121, %122, %123, %124, %125, %126, %127 in 1 : vector<32x64xbf16>, vector<32x64xbf16>, vector<32x64xbf16>, vector<32x64xbf16>, vector<32x64xbf16>, vector<32x64xbf16>, vector<32x64xbf16>, vector<32x64xbf16>, vector<32x64xbf16> -> vector<32x576xbf16>
    %c0_35 = arith.constant 0 : index
    %c0_36 = arith.constant 0 : index
    %129 = vector.load %arg9[%c0_35, %c0_36] : memref<576x64xbf16, #tpu.memory_space<vmem>>, vector<576x64xbf16>
    %cst_37 = arith.constant dense<0.000000e+00> : vector<32x64xf32>
    %130 = tpu.matmul %128, %129, %cst_37 {dimension_numbers = #tpu.dot_dimension_numbers<[1], [0], [0], [1], [0, 0, 1, 1], [], []>} : vector<32x576xbf16>, vector<576x64xbf16>, vector<32x64xf32> -> vector<32x64xf32>
    %c0_38 = arith.constant 0 : index
    %c0_39 = arith.constant 0 : index
    %131 = vector.load %arg10[%c0_38, %c0_39] : memref<1x64xf32, #tpu.memory_space<vmem>>, vector<1x64xf32>
    %132 = vector.broadcast %131 : vector<1x64xf32> to vector<32x64xf32>
    %133 = arith.addf %130, %132 : vector<32x64xf32>
    %134 = arith.truncf %133 : vector<32x64xf32> to vector<32x64xbf16>
    %cst_40 = arith.constant 0.000000e+00 : bf16
    %135 = vector.broadcast %cst_40 : bf16 to vector<4x64xbf16>
    %136 = tpu.concatenate %135, %134, %135 in 0 : vector<4x64xbf16>, vector<32x64xbf16>, vector<4x64xbf16> -> vector<40x64xbf16>
    %137 = vector.extract_strided_slice %136 {offsets = [0, 0], sizes = [32, 64], strides = [1, 1]} : vector<40x64xbf16> to vector<32x64xbf16>
    %138 = vector.extract_strided_slice %136 {offsets = [1, 0], sizes = [32, 64], strides = [1, 1]} : vector<40x64xbf16> to vector<32x64xbf16>
    %139 = vector.extract_strided_slice %136 {offsets = [2, 0], sizes = [32, 64], strides = [1, 1]} : vector<40x64xbf16> to vector<32x64xbf16>
    %140 = vector.extract_strided_slice %136 {offsets = [3, 0], sizes = [32, 64], strides = [1, 1]} : vector<40x64xbf16> to vector<32x64xbf16>
    %141 = vector.extract_strided_slice %136 {offsets = [4, 0], sizes = [32, 64], strides = [1, 1]} : vector<40x64xbf16> to vector<32x64xbf16>
    %142 = vector.extract_strided_slice %136 {offsets = [5, 0], sizes = [32, 64], strides = [1, 1]} : vector<40x64xbf16> to vector<32x64xbf16>
    %143 = vector.extract_strided_slice %136 {offsets = [6, 0], sizes = [32, 64], strides = [1, 1]} : vector<40x64xbf16> to vector<32x64xbf16>
    %144 = vector.extract_strided_slice %136 {offsets = [7, 0], sizes = [32, 64], strides = [1, 1]} : vector<40x64xbf16> to vector<32x64xbf16>
    %145 = vector.extract_strided_slice %136 {offsets = [8, 0], sizes = [32, 64], strides = [1, 1]} : vector<40x64xbf16> to vector<32x64xbf16>
    %146 = tpu.concatenate %137, %138, %139, %140, %141, %142, %143, %144, %145 in 1 : vector<32x64xbf16>, vector<32x64xbf16>, vector<32x64xbf16>, vector<32x64xbf16>, vector<32x64xbf16>, vector<32x64xbf16>, vector<32x64xbf16>, vector<32x64xbf16>, vector<32x64xbf16> -> vector<32x576xbf16>
    %c0_41 = arith.constant 0 : index
    %c0_42 = arith.constant 0 : index
    %147 = vector.load %arg11[%c0_41, %c0_42] : memref<576x128xbf16, #tpu.memory_space<vmem>>, vector<576x128xbf16>
    %cst_43 = arith.constant dense<0.000000e+00> : vector<32x128xf32>
    %148 = tpu.matmul %146, %147, %cst_43 {dimension_numbers = #tpu.dot_dimension_numbers<[1], [0], [0], [1], [0, 0, 1, 1], [], []>} : vector<32x576xbf16>, vector<576x128xbf16>, vector<32x128xf32> -> vector<32x128xf32>
    %c0_44 = arith.constant 0 : index
    %c0_45 = arith.constant 0 : index
    %149 = vector.load %arg12[%c0_44, %c0_45] : memref<1x128xf32, #tpu.memory_space<vmem>>, vector<1x128xf32>
    %150 = vector.broadcast %149 : vector<1x128xf32> to vector<32x128xf32>
    %151 = arith.addf %148, %150 : vector<32x128xf32>
    %152 = vector.shape_cast %111 : vector<16x64xf32> to vector<16x1x64xf32>
    %153 = vector.shape_cast %152 : vector<16x1x64xf32> to vector<16x1x64xf32>
    %154 = vector.broadcast %153 : vector<16x1x64xf32> to vector<16x2x64xf32>
    %155 = vector.shape_cast %154 : vector<16x2x64xf32> to vector<32x64xf32>
    %156 = vector.extract_strided_slice %151 {offsets = [0, 0], sizes = [32, 64], strides = [1, 1]} : vector<32x128xf32> to vector<32x64xf32>
    %157 = arith.mulf %156, %155 : vector<32x64xf32>
    %158 = vector.extract_strided_slice %151 {offsets = [0, 64], sizes = [32, 64], strides = [1, 1]} : vector<32x128xf32> to vector<32x64xf32>
    %159 = arith.addf %157, %158 : vector<32x64xf32>
    %160 = arith.truncf %159 : vector<32x64xf32> to vector<32x64xbf16>
    %cst_46 = arith.constant 0.000000e+00 : bf16
    %161 = vector.broadcast %cst_46 : bf16 to vector<8x64xbf16>
    %162 = tpu.concatenate %161, %160, %161 in 0 : vector<8x64xbf16>, vector<32x64xbf16>, vector<8x64xbf16> -> vector<48x64xbf16>
    %163 = vector.extract_strided_slice %162 {offsets = [0, 0], sizes = [32, 64], strides = [1, 1]} : vector<48x64xbf16> to vector<32x64xbf16>
    %164 = vector.extract_strided_slice %162 {offsets = [2, 0], sizes = [32, 64], strides = [1, 1]} : vector<48x64xbf16> to vector<32x64xbf16>
    %165 = vector.extract_strided_slice %162 {offsets = [4, 0], sizes = [32, 64], strides = [1, 1]} : vector<48x64xbf16> to vector<32x64xbf16>
    %166 = vector.extract_strided_slice %162 {offsets = [6, 0], sizes = [32, 64], strides = [1, 1]} : vector<48x64xbf16> to vector<32x64xbf16>
    %167 = vector.extract_strided_slice %162 {offsets = [8, 0], sizes = [32, 64], strides = [1, 1]} : vector<48x64xbf16> to vector<32x64xbf16>
    %168 = vector.extract_strided_slice %162 {offsets = [10, 0], sizes = [32, 64], strides = [1, 1]} : vector<48x64xbf16> to vector<32x64xbf16>
    %169 = vector.extract_strided_slice %162 {offsets = [12, 0], sizes = [32, 64], strides = [1, 1]} : vector<48x64xbf16> to vector<32x64xbf16>
    %170 = vector.extract_strided_slice %162 {offsets = [14, 0], sizes = [32, 64], strides = [1, 1]} : vector<48x64xbf16> to vector<32x64xbf16>
    %171 = vector.extract_strided_slice %162 {offsets = [16, 0], sizes = [32, 64], strides = [1, 1]} : vector<48x64xbf16> to vector<32x64xbf16>
    %172 = tpu.concatenate %163, %164, %165, %166, %167, %168, %169, %170, %171 in 1 : vector<32x64xbf16>, vector<32x64xbf16>, vector<32x64xbf16>, vector<32x64xbf16>, vector<32x64xbf16>, vector<32x64xbf16>, vector<32x64xbf16>, vector<32x64xbf16>, vector<32x64xbf16> -> vector<32x576xbf16>
    %c0_47 = arith.constant 0 : index
    %c0_48 = arith.constant 0 : index
    %173 = vector.load %arg13[%c0_47, %c0_48] : memref<576x128xbf16, #tpu.memory_space<vmem>>, vector<576x128xbf16>
    %cst_49 = arith.constant dense<0.000000e+00> : vector<32x128xf32>
    %174 = tpu.matmul %172, %173, %cst_49 {dimension_numbers = #tpu.dot_dimension_numbers<[1], [0], [0], [1], [0, 0, 1, 1], [], []>} : vector<32x576xbf16>, vector<576x128xbf16>, vector<32x128xf32> -> vector<32x128xf32>
    %c0_50 = arith.constant 0 : index
    %c0_51 = arith.constant 0 : index
    %175 = vector.load %arg14[%c0_50, %c0_51] : memref<1x128xf32, #tpu.memory_space<vmem>>, vector<1x128xf32>
    %176 = vector.broadcast %175 : vector<1x128xf32> to vector<32x128xf32>
    %177 = arith.addf %174, %176 : vector<32x128xf32>
    %178 = vector.extract_strided_slice %177 {offsets = [0, 0], sizes = [32, 64], strides = [1, 1]} : vector<32x128xf32> to vector<32x64xf32>
    %cst_52 = arith.constant dense<0xFF800000> : vector<32xf32>
    %179 = vector.multi_reduction <maximumf>, %178, %cst_52 [1] : vector<32x64xf32> to vector<32xf32>
    %180 = vector.shape_cast %179 : vector<32xf32> to vector<32x1xf32>
    %181 = vector.broadcast %180 : vector<32x1xf32> to vector<32x64xf32>
    %182 = arith.subf %178, %181 : vector<32x64xf32>
    %183 = math.exp %182 : vector<32x64xf32>
    %cst_53 = arith.constant dense<0.000000e+00> : vector<32xf32>
    %184 = vector.multi_reduction <add>, %183, %cst_53 [1] : vector<32x64xf32> to vector<32xf32>
    %185 = vector.shape_cast %184 : vector<32xf32> to vector<32x1xf32>
    %186 = tpu.reciprocal %185 {approx = true} : vector<32x1xf32> -> vector<32x1xf32>
    %187 = vector.broadcast %186 : vector<32x1xf32> to vector<32x64xf32>
    %188 = arith.mulf %183, %187 : vector<32x64xf32>
    %189 = vector.extract_strided_slice %177 {offsets = [0, 64], sizes = [32, 64], strides = [1, 1]} : vector<32x128xf32> to vector<32x64xf32>
    %190 = math.tanh %189 : vector<32x64xf32>
    %191 = arith.mulf %188, %190 : vector<32x64xf32>
    %192 = vector.shape_cast %1 : vector<16x64xf32> to vector<16x1x64xf32>
    %193 = vector.shape_cast %192 : vector<16x1x64xf32> to vector<16x1x64xf32>
    %194 = vector.broadcast %193 : vector<16x1x64xf32> to vector<16x2x64xf32>
    %195 = vector.shape_cast %194 : vector<16x2x64xf32> to vector<32x64xf32>
    %196 = arith.addf %195, %191 : vector<32x64xf32>
    %197 = tpu.concatenate %196, %133 in 1 : vector<32x64xf32>, vector<32x64xf32> -> vector<32x128xf32>
    %c0_54 = arith.constant 0 : index
    %c0_55 = arith.constant 0 : index
    %c0_56 = arith.constant 0 : index
    %198 = vector.load %arg15[%c0_54, %c0_55, %c0_56] : memref<1x32x128xf32, #tpu.memory_space<vmem>>, vector<1x32x128xf32>
    %199 = vector.shape_cast %198 : vector<1x32x128xf32> to vector<32x128xf32>
    %200 = vector.shape_cast %197 : vector<32x128xf32> to vector<1x32x128xf32>
    tpu.vector_store %arg15[%c0_54, %c0_55, %c0_56], %200 {strides = array<i32>} : memref<1x32x128xf32, #tpu.memory_space<vmem>>, vector<1x32x128xf32>,
    return
  }
  func.func @transform_0(%arg0: i32) -> (i32, i32, i32) {
    %c0_i32 = arith.constant 0 : i32
    %c0_i32_0 = arith.constant 0 : i32
    %c0_i32_1 = arith.constant 0 : i32
    return %arg0, %c0_i32, %c0_i32_0 : i32, i32, i32
  }
  func.func @transform_1(%arg0: i32) -> (i32, i32, i32) {
    %c0_i32 = arith.constant 0 : i32
    %c0_i32_0 = arith.constant 0 : i32
    %c0_i32_1 = arith.constant 0 : i32
    return %arg0, %c0_i32, %c0_i32_0 : i32, i32, i32
  }
  func.func @transform_2(%arg0: i32) -> (i32, i32) {
    %c0_i32 = arith.constant 0 : i32
    %c0_i32_0 = arith.constant 0 : i32
    %c0_i32_1 = arith.constant 0 : i32
    return %c0_i32, %c0_i32_0 : i32, i32
  }
  func.func @transform_3(%arg0: i32) -> (i32, i32) {
    %c0_i32 = arith.constant 0 : i32
    %c0_i32_0 = arith.constant 0 : i32
    %c0_i32_1 = arith.constant 0 : i32
    return %c0_i32, %c0_i32_0 : i32, i32
  }
  func.func @transform_4(%arg0: i32) -> (i32, i32) {
    %c0_i32 = arith.constant 0 : i32
    %c0_i32_0 = arith.constant 0 : i32
    %c0_i32_1 = arith.constant 0 : i32
    return %c0_i32, %c0_i32_0 : i32, i32
  }
  func.func @transform_5(%arg0: i32) -> (i32, i32) {
    %c0_i32 = arith.constant 0 : i32
    %c0_i32_0 = arith.constant 0 : i32
    %c0_i32_1 = arith.constant 0 : i32
    return %c0_i32, %c0_i32_0 : i32, i32
  }
  func.func @transform_6(%arg0: i32) -> (i32, i32) {
    %c0_i32 = arith.constant 0 : i32
    %c0_i32_0 = arith.constant 0 : i32
    %c0_i32_1 = arith.constant 0 : i32
    return %c0_i32, %c0_i32_0 : i32, i32
  }
  func.func @transform_7(%arg0: i32) -> (i32, i32) {
    %c0_i32 = arith.constant 0 : i32
    %c0_i32_0 = arith.constant 0 : i32
    %c0_i32_1 = arith.constant 0 : i32
    return %c0_i32, %c0_i32_0 : i32, i32
  }
  func.func @transform_8(%arg0: i32) -> (i32, i32) {
    %c0_i32 = arith.constant 0 : i32
    %c0_i32_0 = arith.constant 0 : i32
    %c0_i32_1 = arith.constant 0 : i32
    return %c0_i32, %c0_i32_0 : i32, i32
  }
  func.func @transform_9(%arg0: i32) -> (i32, i32) {
    %c0_i32 = arith.constant 0 : i32
    %c0_i32_0 = arith.constant 0 : i32
    %c0_i32_1 = arith.constant 0 : i32
    return %c0_i32, %c0_i32_0 : i32, i32
  }
  func.func @transform_10(%arg0: i32) -> (i32, i32) {
    %c0_i32 = arith.constant 0 : i32
    %c0_i32_0 = arith.constant 0 : i32
    %c0_i32_1 = arith.constant 0 : i32
    return %c0_i32, %c0_i32_0 : i32, i32
  }
  func.func @transform_11(%arg0: i32) -> (i32, i32) {
    %c0_i32 = arith.constant 0 : i32
    %c0_i32_0 = arith.constant 0 : i32
    %c0_i32_1 = arith.constant 0 : i32
    return %c0_i32, %c0_i32_0 : i32, i32
  }
  func.func @transform_12(%arg0: i32) -> (i32, i32) {
    %c0_i32 = arith.constant 0 : i32
    %c0_i32_0 = arith.constant 0 : i32
    %c0_i32_1 = arith.constant 0 : i32
    return %c0_i32, %c0_i32_0 : i32, i32
  }
  func.func @transform_13(%arg0: i32) -> (i32, i32) {
    %c0_i32 = arith.constant 0 : i32
    %c0_i32_0 = arith.constant 0 : i32
    %c0_i32_1 = arith.constant 0 : i32
    return %c0_i32, %c0_i32_0 : i32, i32
  }
  func.func @transform_14(%arg0: i32) -> (i32, i32, i32) {
    %c0_i32 = arith.constant 0 : i32
    %c0_i32_0 = arith.constant 0 : i32
    %c0_i32_1 = arith.constant 0 : i32
    return %arg0, %c0_i32, %c0_i32_0 : i32, i32, i32
  }
}

</mosaic_0001>

<bundles_post_ra>
// kernel: tpu_custom_call.1
= control target key start
LH: loop header
LB: loop body
LE: loop exit
PB: predicated region body
PF: predicated region fallthrough
CT: control target
= control target key end

     0   :  { %s6749_s0 = inlined_call_operand.vmem [shape: f32[2,16,64], index: 0, kind: input, shape index: {}]   ;;  %s6750_s1 = inlined_call_operand.vmem [shape: f32[2,16,80], index: 1, kind: input, shape index: {}]   ;;  %s6751_s2 = inlined_call_operand.vmem [shape: bf16[720,64], index: 2, kind: input, shape index: {}]   ;;  %s6752_s3 = inlined_call_operand.vmem [shape: f32[1,64], index: 3, kind: input, shape index: {}]   ;;  %s6753_s4 = inlined_call_operand.vmem [shape: bf16[576,128], index: 4, kind: input, shape index: {}]   ;;  %s6754_s5 = inlined_call_operand.vmem [shape: f32[1,128], index: 5, kind: input, shape index: {}]   ;;  %s6755_s6 = inlined_call_operand.vmem [shape: bf16[576,128], index: 6, kind: input, shape index: {}]   ;;  %s6756_s7 = inlined_call_operand.vmem [shape: f32[1,128], index: 7, kind: input, shape index: {}]   ;;  %s6757_s8 = inlined_call_operand.vmem [shape: bf16[576,64], index: 8, kind: input, shape index: {}]   ;;  %s6758_s9 = inlined_call_operand.vmem [shape: f32[1,64], index: 9, kind: input, shape index: {}]   ;;  %s6759_s10 = inlined_call_operand.hbm [shape: bf16[576,128], index: 10, kind: input, shape index: {}]   ;;  %s6760_s11 = inlined_call_operand.vmem [shape: f32[1,128], index: 11, kind: input, shape index: {}]   ;;  %s6761_s12 = inlined_call_operand.hbm [shape: bf16[576,128], index: 12, kind: input, shape index: {}]   ;;  %s6762_s13 = inlined_call_operand.vmem [shape: f32[1,128], index: 13, kind: input, shape index: {}]   ;;  %s6763_s14 = inlined_call_operand.hbm [shape: f32[2,32,128], index: 14, kind: output, shape index: {}]  }
   0x1   :  { %6772 = sst [smem:[#allocation16_spill]] %s6749_s0 }
   0x2   :  { %19 = vsyncpa [#allocation3], 0 }
   0x3   :  { %20 = vsyncpa [#allocation6], 0 }
   0x4   :  { %21 = vsyncpa [#allocation4], 0 }
   0x5   :  { %23 = vsyncpa [#allocation4 + $0x1], 0  ;;  %s5666_s29 = smov 0   ;;  %s5668_s30 = smov 0  }
   0x6   :  { %s5670_s15 = smov 0   ;;  %s5672_s16 = smov 0  }
   0x7 LB: > { %6773 = sst [smem:[#allocation11_spill]] %s5563_s29  ;;  %s5687_s17 = sadd.s32 4294967295, %s5575_s16   ;;  %s5575_s16 = sphi %s5672_s16, %s6786_s16   ;;  %s5571_s15 = sphi %s5670_s15, %s6788_s15   ;;  %s5567_s30 = sphi %s5668_s30, %s6790_s30   ;;  %s5563_s29 = sphi %s5666_s29, %s6789_s29  }
   0x8   : > { %6774 = sst [smem:[#allocation12_spill]] %s5571_s15  ;;  %s4164_s18 = sadd.s32 4294967294, %s5575_s16  }
   0x9   : > { %s5691_s19 = sadd.s32 1, %s5575_s16   ;;  %s340_s20 = sadd.s32 1, %s5571_s15 }
   0xa   : > { %6775 = sst [smem:[#allocation13_spill]] %s5691_s19  ;;  %s337_s21 = ssub.s32 %s5575_s16, %s5691_s19 }
   0xb   : > { %p350_p0 = scmp.ne.s32.totalorder %s5571_s15, %s5567_s30  ;;  %p338_p1 = scmp.eq.s32.totalorder %s337_s21, 0 }
   0xc   : > { %p351_p2 = scmp.eq.s32.totalorder %s5687_s17, 1  ;;  %p356_p3 = scmp.ne.s32.totalorder %s5567_s30, %s5563_s29 }
   0xd   : > { %p357_p4 = scmp.eq.s32.totalorder %s4164_s18, 1  ;;  %p4165_p7 = scmp.ge.s32.totalorder %s5575_s16, 1 }
   0xe   : > { %s5702_s22 = scalar_select %p338_p1, %s5571_s15, %s340_s20  }
   0xf   : > { %p5704_p5 = por %p351_p2, %p350_p0  ;;  %p5708_p6 = por %p357_p4, %p356_p3 }
  0x10   : > { %6776 = sst [smem:[#allocation14_spill]] %s5702_s22  ;;  %p364_p8 = scmp.lt.s32.totalorder %s5575_s16, 3 }
  0x11   : > { %s6778_s24 = scalar_select %p5708_p6, 1, 0 }
  0x12   : > { %p5344_p9 = scmp.eq.s32.totalorder %s5687_s17, 0  ;;  %p5715_p10 = pnand %p4165_p7, %p364_p8 }
  0x13   : > { %6779 = sst [smem:[#allocation15_spill]] %s6778_s24  ;;  %s399_s28 = sshll.u32 %s6759_s10, 4  ;;  %s400_s28 = int_to_ptr.hbm [resolvable:$true] %s399_s28 }
  0x14   : > { %p5333_p11 = pneg %p5715_p10  ;;  %s5577_s18 = smov [#allocation2]  }
  0x15   : > { %s401_s20 = sshll.u32 %s5577_s18, 4  ;;  %s416_s15 = sshll.u32 %s6761_s12, 4  ;;  %s402_s20 = int_to_ptr.vmem [resolvable:$true] %s401_s20  ;;  %s417_s15 = int_to_ptr.hbm [resolvable:$true] %s416_s15 }
  0x16   : > { %p5334_p12 = pnand %p5344_p9, %p5333_p11  ;;  %s5578_s19 = smov 64  }
  0x17   : > { %s5579_s24 = smov 4   ;;  %s5580_s29 = smov [#allocation5]  }
  0x18   : > { %5336 = dma.hbm_to_vmem [thread:$0]  (!%p5334_p12), %s400_s28, 4608, %s402_s20, [#allocation3], %s5578_s19, %s5578_s19, %s5579_s24  }
  0x19   : > { %s418_s26 = sshll.u32 %s5580_s29, 4  ;;  %453 = sbr.rel (%p5715_p10) target bundleno = 2081 (0x821), region = 76  ;;  %s419_s26 = int_to_ptr.vmem [resolvable:$true] %s418_s26 }
  0x1a   : > { %5339 = dma.hbm_to_vmem [thread:$0]  (!%p5334_p12), %s417_s15, 4608, %s419_s26, [#allocation6], %s5578_s19, %s5578_s19, %s5579_s24  }
  0x1e   : > { %5550 = dma.done.wait (%p5344_p9), [#allocation3], 4608  }
  0x1f   : > { %5552 = vsyncadd (%p5344_p9), [#allocation3], 4294962688 }
  0x20   : > { %5554 = dma.done.wait (%p5344_p9), [#allocation6], 4608  }
  0x21   : > { %5556 = vsyncadd (%p5344_p9), [#allocation6], 4294962688  ;;  %p510_p13 = scmp.lt.s32.totalorder %s5687_s17, 1  ;;  %v5100_v4 = vld [vmem:[%s6751_s2 + $0x38] sm:$0xff]  ;;  %v5099_v7 = vld [vmem:[%s6751_s2 + $0x30] sm:$0xff]  ;;  %vm578_vm0 = vcmask 1041408  }
  0x22   : > { %1044 = vmatpush.bf16.msra.mxu0 %v5100_v4  ;;  %v5108_v8 = vld [vmem:[%s6751_s2 + $0x78] sm:$0xff]  ;;  %v5107_v12 = vld [vmem:[%s6751_s2 + $0x70] sm:$0xff]  ;;  %v5098_v16 = vld [vmem:[%s6751_s2 + $0x28] sm:$0xff]  ;;  %vm604_vm1 = vsmask.f32 6400  ;;  %s5581_s20 = smov 112  }
  0x23   : > { %s5741_s29 = scalar_select %p510_p13, %s5687_s17, 1  ;;  %v5116_v9 = vld [vmem:[%s6751_s2 + $0xb8] sm:$0xff]  ;;  %1058 = vmatpush.bf16.msra.mxu1 %v5108_v8  ;;  %v5115_v13 = vld [vmem:[%s6751_s2 + $0xb0] sm:$0xff]  ;;  %v5106_v23 = vld [vmem:[%s6751_s2 + $0x68] sm:$0xff]  ;;  %vm583_vm2 = vsmask.f32 7424 }
  0x24   : > { %v5124_v10 = vld [vmem:[%s6751_s2 + $0xf8] sm:$0xff]  ;;  %1072 = vmatpush.bf16.msra.mxu2 %v5116_v9  ;;  %v5123_v15 = vld [vmem:[%s6751_s2 + $0xf0] sm:$0xff]  ;;  %v5114_v24 = vld [vmem:[%s6751_s2 + $0xa8] sm:$0xff]  ;;  %vm622_vm3 = vsmask.f32 5376  ;;  %s5582_s21 = smov 80  }
  0x25   : > { %s6769_s15 = sshll.u32 %s5741_s29, 4  ;;  %1086 = vmatpush.bf16.msra.mxu3 %v5124_v10  ;;  %v5122_v25 = vld [vmem:[%s6751_s2 + $0xe8] sm:$0xff]  ;;  %v5097_v30 = vld [vmem:[%s6751_s2 + $0x20] sm:$0xff]  ;;  %v5096_v43 = vld [vmem:[%s6751_s2 + $0x18] sm:$0xff]  ;;  %vm616_vm4 = vcmask 1045504   ;;  %vm598_vm5 = vcmask 1046528  }
  0x26   : > { %s519_s24 = scalar_lea.vmem %s6750_s1, %s6769_s15  ;;  %1045 = vmatpush.bf16.msra.mxu0 %v5099_v7  ;;  %v5105_v35 = vld [vmem:[%s6751_s2 + $0x60] sm:$0xff]  ;;  %v5104_v51 = vld [vmem:[%s6751_s2 + $0x58] sm:$0xff]  ;;  %v5095_v55 = vld [vmem:[%s6751_s2 + $0x10] sm:$0xff]  ;;  %vm632_vm6 = vcmask 1044480   ;;  %s6770_s18 = smov 64   ;;  %vm652_vm8 = vcmask 654336  }
  0x27   : > { %v523_v0 = vld [vmem:[%s519_s24] sm:$0xff]  ;;  %v524_v1 = vld [vmem:[%s519_s24 + $0x8] sm:$0xff]  ;;  %1059 = vmatpush.bf16.msra.mxu1 %v5107_v12  ;;  %v5112_v53 = vld [vmem:[%s6751_s2 + $0x98] sm:$0xff]  ;;  %vm638_vm7 = vsmask.f32 4352  ;;  %s5586_s24 = smov 96  }
  0x28   : > { %v570_v2 = vpack.c.bf16 %v523_v0, %v523_v0  ;;  %v571_v3 = vpack.c.bf16 %v524_v1, %v524_v1  ;;  %1073 = vmatpush.bf16.msra.mxu2 %v5115_v13  ;;  %v5113_v38 = vld [vmem:[%s6751_s2 + $0xa0] sm:$0xff]  ;;  %v5120_v54 = vld [vmem:[%s6751_s2 + $0xd8] sm:$0xff]  ;;  %v5103_v61 = vld [vmem:[%s6751_s2 + $0x50] sm:$0xff]  ;;  %s5587_s28 = smov 48   ;;  %vm666_vm9 = vcmask 130048   ;;  %vm525_vm10 = vcmask 523264  }
  0x29   : > { %1087 = vmatpush.bf16.msra.mxu3 %v5123_v15  ;;  %v5121_v39 = vld [vmem:[%s6751_s2 + $0xe0] sm:$0xff]  ;;  %v5094_v4 = vld [vmem:[%s6751_s2 + $0x8] sm:$0xff]  ;;  %v5132_v9 = vld [vmem:[%s6751_s2 + $0x138] sm:$0xff]  ;;  %vm656_vm11 = vcmask 261120   ;;  %vm669_vm12 = vcmask 785408   ;;  %vm659_vm13 = vcmask 916480  }
  0x2a   : > { %v574_v5 = vunpack.c.l.b16 %v570_v2  ;;  %v575_v6 = vunpack.c.l.b16 %v571_v3  ;;  %1046 = vmatpush.bf16.msra.mxu0 %v5098_v16  ;;  %v5111_v2 = vld [vmem:[%s6751_s2 + $0x90] sm:$0xff]  ;;  %v5093_v8 = vld [vmem:[%s6751_s2] sm:$0xff]  ;;  %v5130_v12 = vld [vmem:[%s6751_s2 + $0x128] sm:$0xff]  ;;  %vm673_vm14 = vcmask 392192   ;;  %vm648_vm15 = vcmask 1043456   ;;  %s6782_s0 = sld [smem:[#allocation16_spill]] }
  0x2b   : > { %1060 = vmatpush.bf16.msra.mxu1 %v5106_v23  ;;  %v5119_v3 = vld [vmem:[%s6751_s2 + $0xd0] sm:$0xff]  ;;  %v5129_v13 = vld [vmem:[%s6751_s2 + $0x120] sm:$0xff]  ;;  %v5110_v15 = vld [vmem:[%s6751_s2 + $0x88] sm:$0xff]  ;;  %s5318_s22 = sshll.u32 %s5687_s17, 5 }
  0x2c   : > { %v576_v11 = vpack.c.b16 %v575_v6, %v574_v5  ;;  %1074 = vmatpush.bf16.msra.mxu2 %v5114_v24  ;;  %v5128_v16 = vld [vmem:[%s6751_s2 + $0x118] sm:$0xff]  ;;  %v5117_v23 = vld [vmem:[%s6751_s2 + $0xc0] sm:$0xff]  ;;  %s4064_s25 = scalar_lea.hbm %s6763_s14, %s5318_s22 }
  0x2d   : > { %1088 = vmatpush.bf16.msra.mxu3 %v5122_v25  ;;  %v5137_v24 = vld [vmem:[%s6751_s2 + $0x160] sm:$0xff]  ;;  %v5126_v25 = vld [vmem:[%s6751_s2 + $0x108] sm:$0xff] }
  0x2e   : > { %v577_v14 = vrot.slane %v576_v11, 6  ;;  %1047 = vmatpush.bf16.msra.mxu0 %v5097_v30  ;;  %v5131_v11 = vld [vmem:[%s6751_s2 + $0x130] sm:$0xff]  ;;  %v5133_v30 = vld [vmem:[%s6751_s2 + $0x140] sm:$0xff] }
  0x2f   : > { %1061 = vmatpush.bf16.msra.mxu1 %v5105_v35 }
  0x30   : > { %v5777_v17 = vsel %vm578_vm0, 0, %v577_v14  ;;  %v5780_v18 = vsel %vm578_vm0, %v577_v14, 0  ;;  %1075 = vmatpush.bf16.msra.mxu2 %v5113_v38  ;;  %v5102_v14 = vld [vmem:[%s6751_s2 + $0x48] sm:$0xff] }
  0x31   : > { %v5783_v19 = vshrl.u32 %v5777_v17, 16  ;;  %v5786_v20 = vshll.u32 %v5777_v17, 16  ;;  %v5789_v21 = vshll.u32 %v5780_v18, 16  ;;  %v5792_v22 = vshrl.u32 %v5780_v18, 16  ;;  %1089 = vmatpush.bf16.msra.mxu3 %v5121_v39 }
  0x32   : > { %v617_v45 = vrot.slane %v5777_v17, 2  ;;  %v618_v47 = vrot.slane %v5780_v18, 2  ;;  %v599_v48 = vrot.slane %v5777_v17, 1  ;;  %v600_v49 = vrot.slane %v5780_v18, 1  ;;  %1048 = vmatpush.bf16.msra.mxu0 %v5096_v43 }
  0x33   : > { %v605_v26 = vrot.slane %v5783_v19, 1  ;;  %v606_v27 = vrot.slane %v5786_v20, 2  ;;  %v610_v28 = vrot.slane %v5792_v22, 1  ;;  %v611_v29 = vrot.slane %v5789_v21, 2  ;;  %1062 = vmatpush.bf16.msra.mxu1 %v5104_v51 }
  0x34   : > { %v588_v31 = vrot.slane %v5786_v20, 1  ;;  %v592_v32 = vrot.slane %v5789_v21, 1  ;;  %v623_v37 = vrot.slane %v5783_v19, 2  ;;  %v624_v41 = vrot.slane %v5786_v20, 3  ;;  %1076 = vmatpush.bf16.msra.mxu2 %v5112_v53 }
  0x35   : > { %v607_v33 = vor.u32 %v606_v27, %v605_v26  ;;  %v612_v34 = vor.u32 %v611_v29, %v610_v28  ;;  %v626_v42 = vrot.slane %v5792_v22, 2  ;;  %v627_v46 = vrot.slane %v5789_v21, 3  ;;  %1090 = vmatpush.bf16.msra.mxu3 %v5120_v54  ;;  %v5136_v26 = vld [vmem:[%s6751_s2 + $0x158] sm:$0xff]  ;;  %v5125_v27 = vld [vmem:[%s6751_s2 + $0x100] sm:$0xff]  ;;  %v5135_v28 = vld [vmem:[%s6751_s2 + $0x150] sm:$0xff] }
  0x36   : > { %v589_v36 = vor.u32 %v588_v31, %v5783_v19  ;;  %v625_v50 = vor.u32 %v624_v41, %v623_v37  ;;  %v619_v57 = vsel %vm616_vm4, %v617_v45, %v618_v47  ;;  %v601_v58 = vsel %vm598_vm5, %v599_v48, %v600_v49  ;;  %1049 = vmatpush.bf16.msra.mxu0 %v5095_v55  ;;  %v5134_v29 = vld [vmem:[%s6751_s2 + $0x148] sm:$0xff]  ;;  %v5395_v49 = vld [vmem:[%s6752_s3] ss:$0 sm:$0xff] }
  0x37   : > { %v613_v40 = vsel %vm604_vm1, %v607_v33, %v612_v34  ;;  %v628_v52 = vor.u32 %v627_v46, %v626_v42  ;;  %v639_v59 = vrot.slane %v5783_v19, 3  ;;  %v640_v60 = vrot.slane %v5786_v20, 4  ;;  %1063 = vmatpush.bf16.msra.mxu1 %v5103_v61  ;;  %v5118_v19 = vld [vmem:[%s6751_s2 + $0xc8] sm:$0xff]  ;;  %v5101_v20 = vld [vmem:[%s6751_s2 + $0x40] sm:$0xff] }
  0x38   : > { %614 = vrot.lane.b32.xlu1 %v613_v40, %s5581_s20  ;;  %v593_v44 = vsel %vm583_vm2, %v589_v36, %v592_v32  ;;  %s5583_s20 = smov 16   ;;  %v642_v62 = vrot.slane %v5792_v22, 3  ;;  %v643_v63 = vrot.slane %v5789_v21, 4  ;;  %v633_v0 = vrot.slane %v5777_v17, 3  ;;  %1077 = vmatpush.bf16.msra.mxu2 %v5111_v2  ;;  %v5109_v21 = vld [vmem:[%s6751_s2 + $0x80] sm:$0xff]  ;;  %v5127_v22 = vld [vmem:[%s6751_s2 + $0x110] sm:$0xff] }
  0x39   : > { %594 = vrot.lane.b32.xlu0 %v593_v44, %s5582_s21  ;;  %v629_v56 = vsel %vm622_vm3, %v625_v50, %v628_v52  ;;  %v634_v1 = vrot.slane %v5780_v18, 3  ;;  %v641_v5 = vor.u32 %v640_v60, %v639_v59  ;;  %1091 = vmatpush.bf16.msra.mxu3 %v5119_v3  ;;  %v649_v45 = vrot.slane %v5777_v17, 4 }
  0x3a   : > { %630 = vrot.lane.b32.xlu2 %v629_v56, %s5583_s20  ;;  %s5585_s20 = smov 32   ;;  %v644_v6 = vor.u32 %v643_v63, %v642_v62  ;;  %1050 = vmatpush.bf16.msra.mxu0 %v5094_v4  ;;  %v650_v46 = vrot.slane %v5780_v18, 4 }
  0x3b   : > { %v635_v7 = vsel %vm632_vm6, %v633_v0, %v634_v1  ;;  %1064 = vmatpush.bf16.msra.mxu1 %v5102_v14 }
  0x3c   : > { %v645_v10 = vsel %vm638_vm7, %v641_v5, %v644_v6  ;;  %1078 = vmatpush.bf16.msra.mxu2 %v5110_v15  ;;  %v651_v47 = vsel %vm648_vm15, %v649_v45, %v650_v46 }
  0x3d   : > { %1092 = vmatpush.bf16.msra.mxu3 %v5118_v19 }
  0x3e   : > { %1051 = vmatpush.bf16.msra.mxu0 %v5093_v8 }
  0x3f   : > { %1065 = vmatpush.bf16.msra.mxu1 %v5101_v20 }
  0x40   : > { %620 = vrot.lane.b32.xlu1 %v619_v57, %s6770_s18  ;;  %1079 = vmatpush.bf16.msra.mxu2 %v5109_v21 }
  0x41   : > { %602 = vrot.lane.b32.xlu0 %v601_v58, %s5585_s20  ;;  %1093 = vmatpush.bf16.msra.mxu3 %v5117_v23  ;;  %s6781_s20 = sshll.u32 %s5741_s29, 4 }
  0x42   : > { %636 = vrot.lane.b32.xlu2 %v635_v7, %s5586_s24  ;;  %1100 = vmatpush.bf16.msrb.mxu0 %v5132_v9  ;;  %s6147_s19 = scalar_lea.vmem %s6782_s0, %s6781_s20 }
  0x43   : > { %1117 = vmatpush.bf16.msrb.mxu1 %v5137_v24 }
  0x46   : > { %1101 = vmatpush.bf16.msrb.mxu0 %v5131_v11 }
  0x47   : > { %1118 = vmatpush.bf16.msrb.mxu1 %v5136_v26  ;;  %v5145_v26 = vld [vmem:[%s6753_s4 + $0x38] sm:$0xff] }
  0x48   : > { %1504 = vmatpush.bf16.msrb.mxu2 %v5145_v26 }
  0x49   : > { %646 = vrot.lane.b32.xlu0 %v645_v10, %s5587_s28  ;;  %s6783_s28 = smov 64  }
  0x4a   : > { %1102 = vmatpush.bf16.msrb.mxu0 %v5130_v12 }
  0x4b   : > { %1119 = vmatpush.bf16.msrb.mxu1 %v5135_v28 }
  0x4e   : > { %1103 = vmatpush.bf16.msrb.mxu0 %v5129_v13 }
  0x4f   : > { %1120 = vmatpush.bf16.msrb.mxu1 %v5134_v29 }
  0x52   : > { %1104 = vmatpush.bf16.msrb.mxu0 %v5128_v16 }
  0x53   : > { %1121 = vmatpush.bf16.msrb.mxu1 %v5133_v30 }
  0x56   : > { %1105 = vmatpush.bf16.msrb.mxu0 %v5127_v22  ;;  %v5153_v22 = vld [vmem:[%s6753_s4 + $0x78] sm:$0xff] }
  0x57   : > { %1518 = vmatpush.bf16.msrb.mxu3 %v5153_v22 }
  0x5a   : > { %1106 = vmatpush.bf16.msrb.mxu0 %v5126_v25  ;;  %v5152_v25 = vld [vmem:[%s6753_s4 + $0x70] sm:$0xff] }
  0x5b   : > { %1519 = vmatpush.bf16.msrb.mxu3 %v5152_v25 }
  0x5e   : > { %1107 = vmatpush.bf16.msrb.mxu0 %v5125_v27  ;;  %v5161_v27 = vld [vmem:[%s6753_s4 + $0xb8] sm:$0xff] }
  0x94   : > { %v631_v31 = vpop.permute.xlu2 %630 }
  0x9c   : > { %v637_v35 = vpop.permute.xlu2 %636 }
  0xaa   : > { %v615_v32 = vpop.permute.xlu1 %614 }
  0xab   : > { %v595_v33 = vpop.permute.xlu0 %594 }
  0xac   : > { %v654_v34 = vsel %vm652_vm8, %v5777_v17, %v595_v33 }
  0xad   : > { %1052 = vmatmul.bf16.vlgmr.msra.gmra.mxu0 %v654_v34 }
  0xb2   : > { %v621_v36 = vpop.permute.xlu1 %620 }
  0xb3   : > { %v668_v37 = vsel %vm666_vm9, %v621_v36, %v631_v31  ;;  %v603_v38 = vpop.permute.xlu0 %602  ;;  %v664_v39 = vsel %vm525_vm10, %v615_v32, %v621_v36  ;;  %v5151_v36 = vld [vmem:[%s6753_s4 + $0x68] sm:$0xff] }
  0xb4   : > { %v658_v40 = vsel %vm656_vm11, %v595_v33, %v603_v38  ;;  %1080 = vmatmul.bf16.vlgmr.msra.gmra.mxu2 %v664_v39  ;;  %v671_v41 = vsel %vm669_vm12, %v668_v37, %v637_v35  ;;  %v5144_v37 = vld [vmem:[%s6753_s4 + $0x30] sm:$0xff]  ;;  %1520 = vmatpush.bf16.msrb.mxu3 %v5151_v36 }
  0xb5   : > { %v661_v42 = vsel %vm659_vm13, %v658_v40, %v615_v32  ;;  %1094 = vmatmul.bf16.vlgmr.msra.gmra.mxu3 %v671_v41  ;;  %v5160_v38 = vld [vmem:[%s6753_s4 + $0xb0] sm:$0xff]  ;;  %1505 = vmatpush.bf16.msrb.mxu2 %v5144_v37  ;;  %vm3389_vm13 = vcmask 1040384  }
  0xb6   : > { %1066 = vmatmul.bf16.vlgmr.msra.gmra.mxu1 %v661_v42 }
  0xb7   : > { %1532 = vmatpush.bf16.msra.mxu1 %v5161_v27 }
  0xbb   : > { %v647_v43 = vpop.permute.xlu0 %646  ;;  %1533 = vmatpush.bf16.msra.mxu1 %v5160_v38 }
  0xbc   : > { %v675_v44 = vsel %vm673_vm14, %v637_v35, %v647_v43 }
  0xbd   : > { %1108 = vmatmul.bf16.vlgmr.msrb.gmra.mxu0 %v675_v44 }
  0xc6   : > { %4357 = vmatmul.msk.bf16.vlgmr.msrb.gmra.mxu1 %vm652_vm8, %v651_v47 }
 0x12a   : > { %v1053_v48 = vpop.f32.mrf.mxu0 }
 0x12b   : > { %v1054_v52 = vadd.f32 %v5395_v49, %v1053_v48 }
 0x132   : > { %v1055_v51 = vpop.f32.mrf.mxu0 }
 0x133   : > { %v1067_v50 = vpop.f32.mrf.mxu1  ;;  %v1056_v57 = vadd.f32 %v5395_v49, %v1055_v51 }
 0x134   : > { %v1068_v54 = vadd.f32 %v1067_v50, %v1054_v52  ;;  %v5150_v50 = vld [vmem:[%s6753_s4 + $0x60] sm:$0xff] }
 0x135   : > { %1521 = vmatpush.bf16.msrb.mxu3 %v5150_v50 }
 0x137   : > { %v1081_v53 = vpop.f32.mrf.mxu2 }
 0x138   : > { %v1095_v55 = vpop.f32.mrf.mxu3  ;;  %v1082_v56 = vadd.f32 %v1081_v53, %v1068_v54 }
 0x13a   : > { %v1096_v18 = vadd.f32 %v1095_v55, %v1082_v56  ;;  %v1109_v58 = vpop.f32.mrf.mxu0 }
 0x13b   : > { %v1069_v17 = vpop.f32.mrf.mxu1 }
 0x13c   : > { %v1070_v59 = vadd.f32 %v1069_v17, %v1056_v57  ;;  %v1110_v62 = vadd.f32 %v1109_v58, %v1096_v18  ;;  %v5149_v17 = vld [vmem:[%s6753_s4 + $0x58] sm:$0xff] }
 0x13d   : > { %1522 = vmatpush.bf16.msrb.mxu3 %v5149_v17 }
 0x13f   : > { %v1083_v60 = vpop.f32.mrf.mxu2 }
 0x140   : > { %v1084_v61 = vadd.f32 %v1083_v60, %v1070_v59  ;;  %v1097_v63 = vpop.f32.mrf.mxu3 }
 0x142   : > { %v1098_v2 = vadd.f32 %v1097_v63, %v1084_v61  ;;  %v1111_v14 = vpop.f32.mrf.mxu0 }
 0x143   : > { %v1123_v0 = vpop.f32.mrf.mxu1 }
 0x144   : > { %v1124_v1 = vadd.f32 %v1123_v0, %v1110_v62  ;;  %v1112_v16 = vadd.f32 %v1111_v14, %v1098_v2 }
 0x146   : > { %v2105_v3 = vrot.slane %v1124_v1, 1  ;;  %v2106_v4 = vrot.slane %v1124_v1, 2  ;;  %v2107_v5 = vrot.slane %v1124_v1, 3  ;;  %v2108_v6 = vrot.slane %v1124_v1, 4 }
 0x147   : > { %v2109_v7 = vrot.slane %v1124_v1, 5  ;;  %v2110_v8 = vrot.slane %v1124_v1, 6  ;;  %v2119_v9 = vperm.slane %v1124_v1, 0  ;;  %v2111_v10 = vrot.slane %v1124_v1, 7 }
 0x148   : > { %v2120_v11 = vperm.slane %v2105_v3, 0  ;;  %v2121_v12 = vperm.slane %v2106_v4, 0  ;;  %v2122_v13 = vperm.slane %v2107_v5, 0  ;;  %v2123_v15 = vperm.slane %v2108_v6, 0  ;;  %v5148_v5 = vld [vmem:[%s6753_s4 + $0x50] sm:$0xff] }
 0x149   : > { %2135 = vst [vmem:[#allocation1] ss:$4 sm:$0xff] %v2119_v9  ;;  %v2124_v19 = vperm.slane %v2109_v7, 0  ;;  %v2125_v20 = vperm.slane %v2110_v8, 0  ;;  %v2126_v23 = vperm.slane %v2111_v10, 0  ;;  %v1128_v31 = vpack.c.bf16 %v1124_v1, %v1124_v1  ;;  %1523 = vmatpush.bf16.msrb.mxu3 %v5148_v5 }
 0x14a   : > { %2137 = vst [vmem:[#allocation1 + $0x1] ss:$4 sm:$0xff] %v2120_v11 }
 0x14b   : > { %2139 = vst [vmem:[#allocation1 + $0x2] ss:$4 sm:$0xff] %v2121_v12  ;;  %v1125_v21 = vpop.f32.mrf.mxu1  ;;  %v1132_v45 = vunpack.c.l.b16 %v1128_v31 }
 0x14c   : > { %2141 = vst [vmem:[#allocation1 + $0x3] ss:$4 sm:$0xff] %v2122_v13  ;;  %v1126_v24 = vadd.f32 %v1125_v21, %v1112_v16 }
 0x14d   : > { %2143 = vst [vmem:[#allocation1 + $0x20] ss:$4 sm:$0xff] %v2123_v15 }
 0x14e   : > { %2145 = vst [vmem:[#allocation1 + $0x21] ss:$4 sm:$0xff] %v2124_v19  ;;  %v2112_v28 = vrot.slane %v1126_v24, 1  ;;  %v2113_v29 = vrot.slane %v1126_v24, 2  ;;  %v2114_v30 = vrot.slane %v1126_v24, 3  ;;  %v2115_v32 = vrot.slane %v1126_v24, 4 }
 0x14f   : > { %2147 = vst [vmem:[#allocation1 + $0x22] ss:$4 sm:$0xff] %v2125_v20  ;;  %v2116_v33 = vrot.slane %v1126_v24, 5  ;;  %v1129_v35 = vpack.c.bf16 %v1126_v24, %v1126_v24  ;;  %v2117_v39 = vrot.slane %v1126_v24, 6  ;;  %v2118_v40 = vrot.slane %v1126_v24, 7  ;;  %v5147_v20 = vld [vmem:[%s6753_s4 + $0x48] sm:$0xff] }
 0x150   : > { %2149 = vst [vmem:[#allocation1 + $0x23] ss:$4 sm:$0xff] %v2126_v23  ;;  %v2128_v34 = vperm.slane %v2112_v28, 0  ;;  %v2127_v41 = vperm.slane %v1126_v24, 0  ;;  %v2129_v42 = vperm.slane %v2113_v29, 0  ;;  %v2130_v44 = vperm.slane %v2114_v30, 0  ;;  %1524 = vmatpush.bf16.msrb.mxu3 %v5147_v20 }
 0x151   : > { %v1133_v46 = vunpack.c.l.b16 %v1129_v35  ;;  %v2131_v47 = vperm.slane %v2115_v32, 0  ;;  %v2132_v48 = vperm.slane %v2116_v33, 0  ;;  %v2133_v51 = vperm.slane %v2117_v39, 0  ;;  %v5146_v30 = vld [vmem:[%s6753_s4 + $0x40] sm:$0xff] }
 0x152   : > { %v2134_v52 = vperm.slane %v2118_v40, 0 }
 0x153   : > { %v2150_v43 = vld.sshfl [vmem:[#allocation1] sm:$0xff pattern:$0x73625140]  ;;  %v1134_v49 = vpack.c.b16 %v1133_v46, %v1132_v45 }
 0x154   : > { %2152 = vst [vmem:[#allocation1] ss:$4 sm:$0xff] %v2127_v41  ;;  %v2166_v60 = vpack.c.bf16 %v2150_v43, %v2150_v43  ;;  %1525 = vmatpush.bf16.msrb.mxu3 %v5146_v30  ;;  %v5141_v30 = vld [vmem:[%s6753_s4 + $0x18] sm:$0xff] }
 0x155   : > { %2153 = vst [vmem:[#allocation1 + $0x1] ss:$4 sm:$0xff] %v2128_v34  ;;  %v1135_v54 = vrot.slane %v1134_v49, 6 }
 0x156   : > { %2154 = vst [vmem:[#allocation1 + $0x2] ss:$4 sm:$0xff] %v2129_v42  ;;  %v2174_v21 = vunpack.c.l.b16 %v2166_v60 }
 0x157   : > { %v2151_v53 = vld.sshfl [vmem:[#allocation1 + $0x20] sm:$0xff pattern:$0x73625140]  ;;  %2155 = vst [vmem:[#allocation1 + $0x3] ss:$4 sm:$0xff] %v2130_v44  ;;  %v5966_v55 = vsel %vm578_vm0, 0, %v1135_v54 }
 0x158   : > { %2156 = vst [vmem:[#allocation1 + $0x20] ss:$4 sm:$0xff] %v2131_v47  ;;  %v5969_v56 = vsel %vm578_vm0, %v1135_v54, 0  ;;  %v1139_v57 = vshrl.u32 %v5966_v55, 16  ;;  %v1141_v18 = vshll.u32 %v5966_v55, 16  ;;  %v2167_v15 = vpack.c.bf16 %v2151_v53, %v2151_v53 }
 0x159   : > { %2157 = vst [vmem:[#allocation1 + $0x21] ss:$4 sm:$0xff] %v2132_v48  ;;  %v1145_v58 = vshll.u32 %v5969_v56, 16  ;;  %v1159_v59 = vshrl.u32 %v5969_v56, 16 }
 0x15a   : > { %2158 = vst [vmem:[#allocation1 + $0x22] ss:$4 sm:$0xff] %v2133_v51  ;;  %v1170_v61 = vrot.slane %v1139_v57, 2  ;;  %v1171_v62 = vrot.slane %v1141_v18, 3  ;;  %v1156_v1 = vrot.slane %v1139_v57, 1  ;;  %v1157_v2 = vrot.slane %v1141_v18, 2 }
 0x15b   : > { %2159 = vst [vmem:[#allocation1 + $0x23] ss:$4 sm:$0xff] %v2134_v52  ;;  %v1173_v63 = vrot.slane %v1159_v59, 2  ;;  %v1174_v0 = vrot.slane %v1145_v58, 3  ;;  %v1161_v3 = vrot.slane %v1159_v59, 1  ;;  %v1162_v4 = vrot.slane %v1145_v58, 2 }
 0x15c   : > { %v1172_v6 = vor.u32 %v1171_v62, %v1170_v61  ;;  %v1143_v8 = vrot.slane %v1141_v18, 1  ;;  %v1158_v9 = vor.u32 %v1157_v2, %v1156_v1  ;;  %v1147_v14 = vrot.slane %v1145_v58, 1 }
 0x15d   : > { %v1175_v7 = vor.u32 %v1174_v0, %v1173_v63  ;;  %v1163_v10 = vor.u32 %v1162_v4, %v1161_v3  ;;  %v1182_v19 = vrot.slane %v1139_v57, 3  ;;  %v1183_v24 = vrot.slane %v1141_v18, 4 }
 0x15e   : > { %v2160_v11 = vld.sshfl [vmem:[#allocation1] sm:$0xff pattern:$0x73625140]  ;;  %v1144_v13 = vor.u32 %v1143_v8, %v1139_v57  ;;  %v1185_v25 = vrot.slane %v1159_v59, 3  ;;  %v1186_v26 = vrot.slane %v1145_v58, 4  ;;  %v2175_v29 = vunpack.c.l.b16 %v2167_v15 }
 0x15f   : > { %v1176_v12 = vsel %vm622_vm3, %v1172_v6, %v1175_v7  ;;  %v1164_v16 = vsel %vm604_vm1, %v1158_v9, %v1163_v10  ;;  %v2168_v27 = vpack.c.bf16 %v2160_v11, %v2160_v11  ;;  %v1184_v33 = vor.u32 %v1183_v24, %v1182_v19  ;;  %v5143_v24 = vld [vmem:[%s6753_s4 + $0x28] sm:$0xff] }
 0x160   : > { %1177 = vrot.lane.b32.xlu0 %v1176_v12, %s6770_s18  ;;  %1165 = vrot.lane.b32.xlu2 %v1164_v16, %s6770_s18  ;;  %v1148_v23 = vsel %vm583_vm2, %v1144_v13, %v1147_v14  ;;  %v1187_v34 = vor.u32 %v1186_v26, %v1185_v25  ;;  %v2178_v35 = vpack.c.b16 %v2175_v29, %v2174_v21  ;;  %v5159_v25 = vld [vmem:[%s6753_s4 + $0xa8] sm:$0xff]  ;;  %v5169_v26 = vld [vmem:[%s6753_s4 + $0xf8] sm:$0xff] }
 0x161   : > { %1149 = vrot.lane.b32.xlu1 %v1148_v23, %s6770_s18  ;;  %v2176_v31 = vunpack.c.l.b16 %v2168_v27  ;;  %1506 = vmatpush.bf16.msrb.mxu2 %v5143_v24  ;;  %v5142_v27 = vld [vmem:[%s6753_s4 + $0x20] sm:$0xff]  ;;  %v5168_v29 = vld [vmem:[%s6753_s4 + $0xf0] sm:$0xff] }
 0x162   : > { %v2161_v22 = vld.sshfl [vmem:[#allocation1 + $0x20] sm:$0xff pattern:$0x73625140]  ;;  %v2181_v37 = vrot.slane %v2178_v35, 6  ;;  %v1188_v39 = vsel %vm638_vm7, %v1184_v33, %v1187_v34  ;;  %1534 = vmatpush.bf16.msra.mxu1 %v5159_v25  ;;  %1546 = vmatpush.bf16.msra.mxu0 %v5169_v26  ;;  %v5140_v33 = vld [vmem:[%s6753_s4 + $0x10] sm:$0xff] }
 0x163   : > { %v2169_v28 = vpack.c.bf16 %v2161_v22, %v2161_v22  ;;  %v5156_v34 = vld [vmem:[%s6753_s4 + $0x90] sm:$0xff]  ;;  %v5166_v35 = vld [vmem:[%s6753_s4 + $0xe0] sm:$0xff] }
 0x164   : > { %v5995_v40 = vsel %vm578_vm0, 0, %v2181_v37 }
 0x165   : > { %v2177_v32 = vunpack.c.l.b16 %v2169_v28  ;;  %v6002_v42 = vshrl.u32 %v5995_v40, 16  ;;  %v6005_v43 = vshll.u32 %v5995_v40, 16  ;;  %v5158_v28 = vld [vmem:[%s6753_s4 + $0xa0] sm:$0xff]  ;;  %1507 = vmatpush.bf16.msrb.mxu2 %v5142_v27 }
 0x166   : > { %1535 = vmatpush.bf16.msra.mxu1 %v5158_v28  ;;  %1547 = vmatpush.bf16.msra.mxu0 %v5168_v29  ;;  %v521_v29 = vld [vmem:[%s6147_s19] sm:$0xff] }
 0x167   : > { %v2179_v36 = vpack.c.b16 %v2177_v32, %v2176_v31  ;;  %v2259_v49 = vrot.slane %v6002_v42, 3  ;;  %v2260_v50 = vrot.slane %v6005_v43, 4  ;;  %v2217_v54 = vrot.slane %v6002_v42, 1  ;;  %v5157_v31 = vld [vmem:[%s6753_s4 + $0x98] sm:$0xff]  ;;  %v5167_v32 = vld [vmem:[%s6753_s4 + $0xe8] sm:$0xff] }
 0x168   : > { %v2218_v61 = vrot.slane %v6005_v43, 2  ;;  %v2239_v1 = vrot.slane %v6002_v42, 2  ;;  %v2240_v5 = vrot.slane %v6005_v43, 3 }
 0x169   : > { %v2182_v38 = vrot.slane %v2179_v36, 6  ;;  %1189 = vrot.lane.b32.xlu1 %v1188_v39, %s6770_s18  ;;  %v2261_v17 = vor.u32 %v2260_v50, %v2259_v49  ;;  %1508 = vmatpush.bf16.msrb.mxu2 %v5141_v30  ;;  %v5139_v36 = vld [vmem:[%s6753_s4 + $0x8] sm:$0xff]  ;;  %v5138_v39 = vld [vmem:[%s6753_s4] sm:$0xff]  ;;  %v1153_v50 = vrot.slane %v5966_v55, 1 }
 0x16a   : > { %v2219_v4 = vor.u32 %v2218_v61, %v2217_v54  ;;  %v2241_v10 = vor.u32 %v2240_v5, %v2239_v1  ;;  %1536 = vmatpush.bf16.msra.mxu1 %v5157_v31  ;;  %1548 = vmatpush.bf16.msra.mxu0 %v5167_v32  ;;  %v5163_v49 = vld [vmem:[%s6753_s4 + $0xc8] sm:$0xff]  ;;  %v5162_v54 = vld [vmem:[%s6753_s4 + $0xc0] sm:$0xff]  ;;  %v1168_v61 = vrot.slane %v5969_v56, 2  ;;  %v1179_v5 = vrot.slane %v5966_v55, 3 }
 0x16b   : > { %v5999_v41 = vsel %vm578_vm0, %v2181_v37, %v2182_v38  ;;  %v6008_v44 = vsel %vm578_vm0, %v2182_v38, 0  ;;  %v5155_v37 = vld [vmem:[%s6753_s4 + $0x88] sm:$0xff]  ;;  %v5165_v38 = vld [vmem:[%s6753_s4 + $0xd8] sm:$0xff] }
 0x16c   : > { %v6011_v45 = vshll.u32 %v5999_v41, 16  ;;  %v2199_v46 = vshrl.u32 %v5999_v41, 16  ;;  %v2202_v47 = vshll.u32 %v6008_v44, 16  ;;  %v2224_v48 = vshrl.u32 %v6008_v44, 16  ;;  %v522_v30 = vld [vmem:[%s6147_s19 + $0x8] sm:$0xff] }
 0x16d   : > { %1509 = vmatpush.bf16.msrb.mxu2 %v5140_v33 }
 0x16e   : > { %v2197_v51 = vrot.slane %v6011_v45, 1  ;;  %v2262_v52 = vrot.slane %v2199_v46, 3  ;;  %v2263_v53 = vrot.slane %v6011_v45, 4  ;;  %v2204_v57 = vrot.slane %v2202_v47, 1  ;;  %1537 = vmatpush.bf16.msra.mxu1 %v5156_v34  ;;  %1549 = vmatpush.bf16.msra.mxu0 %v5166_v35 }
 0x16f   : > { %v2266_v18 = vrot.slane %v2224_v48, 3  ;;  %v2267_v58 = vrot.slane %v2202_v47, 4  ;;  %v2220_v62 = vrot.slane %v2199_v46, 1  ;;  %v2221_v0 = vrot.slane %v6011_v45, 2 }
 0x170   : > { %v2264_v59 = vor.u32 %v2263_v53, %v2262_v52  ;;  %v2201_v60 = vor.u32 %v2199_v46, %v2197_v51  ;;  %v2242_v8 = vrot.slane %v2199_v46, 2  ;;  %v2243_v9 = vrot.slane %v6011_v45, 3  ;;  %v5154_v46 = vld [vmem:[%s6753_s4 + $0x80] sm:$0xff]  ;;  %v5172_v53 = vld [vmem:[%s6753_s4 + $0x110] sm:$0xff] }
 0x171   : > { %v2268_v63 = vor.u32 %v2267_v58, %v2266_v18  ;;  %v2222_v7 = vor.u32 %v2221_v0, %v2220_v62  ;;  %v2226_v11 = vrot.slane %v2224_v48, 1  ;;  %v2227_v12 = vrot.slane %v2202_v47, 2  ;;  %1510 = vmatpush.bf16.msrb.mxu2 %v5139_v36  ;;  %v5171_v58 = vld [vmem:[%s6753_s4 + $0x108] sm:$0xff] }
 0x172   : > { %v6027_v2 = vsel %vm638_vm7, %v2261_v17, %v2264_v59  ;;  %v6030_v3 = vsel %vm583_vm2, %v2201_v60, %v2204_v57  ;;  %v2246_v13 = vrot.slane %v2224_v48, 2  ;;  %v2244_v15 = vor.u32 %v2243_v9, %v2242_v8  ;;  %1538 = vmatpush.bf16.msra.mxu1 %v5155_v37  ;;  %1550 = vmatpush.bf16.msra.mxu0 %v5165_v38  ;;  %v5173_v48 = vld [vmem:[%s6753_s4 + $0x118] sm:$0xff] }
 0x173   : > { %v6034_v6 = vsel %vm638_vm7, %v2264_v59, %v2268_v63  ;;  %v6038_v14 = vsel %vm604_vm1, %v2219_v4, %v2222_v7  ;;  %v2247_v16 = vrot.slane %v2202_v47, 3  ;;  %v2228_v19 = vor.u32 %v2227_v12, %v2226_v11  ;;  %v5164_v47 = vld [vmem:[%s6753_s4 + $0xd0] sm:$0xff]  ;;  %v5170_v59 = vld [vmem:[%s6753_s4 + $0x100] sm:$0xff] }
 0x174   : > { %v6041_v20 = vsel %vm622_vm3, %v2241_v10, %v2244_v15  ;;  %v1154_v52 = vrot.slane %v5969_v56, 1  ;;  %v1167_v60 = vrot.slane %v5966_v55, 2  ;;  %v1191_v11 = vrot.slane %v5966_v55, 4 }
 0x175   : > { %v2248_v21 = vor.u32 %v2247_v16, %v2246_v13  ;;  %v6044_v22 = vsel %vm604_vm1, %v2222_v7, %v2228_v19  ;;  %1511 = vmatpush.bf16.msrb.mxu2 %v5138_v39  ;;  %v1180_v7 = vrot.slane %v5969_v56, 3  ;;  %v1192_v12 = vrot.slane %v5969_v56, 4 }
 0x176   : > { %1539 = vmatpush.bf16.msra.mxu1 %v5154_v46  ;;  %1551 = vmatpush.bf16.msra.mxu0 %v5164_v47  ;;  %v1155_v57 = vsel %vm598_vm5, %v1153_v50, %v1154_v52  ;;  %v1169_v62 = vsel %vm616_vm4, %v1167_v60, %v1168_v61  ;;  %v526_v36 = vsel %vm525_vm10, %v521_v29, 0.0  ;;  %v527_v37 = vsel %vm525_vm10, %v522_v30, 0.0 }
 0x177   : > { %v6047_v23 = vsel %vm622_vm3, %v2244_v15, %v2248_v21  ;;  %v1181_v8 = vsel %vm632_vm6, %v1179_v5, %v1180_v7  ;;  %v1193_v13 = vsel %vm648_vm15, %v1191_v11, %v1192_v12  ;;  %v5396_v15 = vld [vmem:[%s6754_s5] ss:$0 sm:$0xff]  ;;  %v5588_v39 = vmov 16.0  }
 0x178   : > { %5401 = vrcp.f32 %v5588_v39  ;;  %v528_v46 = vadd.f32 %v527_v37, %v526_v36 }
 0x179   : > { %1564 = vmatpush.bf16.msra.mxu2 %v5173_v48 }
 0x17a   : > { %1552 = vmatpush.bf16.msra.mxu0 %v5163_v49  ;;  %v529_v52 = vrot.slane %v528_v46, 4 }
 0x17d   : > { %1565 = vmatpush.bf16.msra.mxu2 %v5172_v53 }
 0x17e   : > { %1553 = vmatpush.bf16.msra.mxu0 %v5162_v54  ;;  %v5402_v53 = vpop.eup %5401  ;;  %v2192_v54 = vrot.slane %v6005_v43, 1 }
 0x17f   : > { %vm540_vm8 = vweird.f32 %v5402_v53 }
 0x181   : > { %1566 = vmatpush.bf16.msra.mxu2 %v5171_v58 }
 0x185   : > { %1567 = vmatpush.bf16.msra.mxu2 %v5170_v59 }
 0x1ba   : > { %v1166_v17 = vpop.permute.xlu2 %1165 }
 0x1bb   : > { %v1199_v18 = vsel %vm525_vm10, %v1155_v57, %v1166_v17  ;;  %v530_v17 = vadd.f32 %v529_v52, %v528_v46  ;;  %v536_v57 = vmul.f32 16.0, %v5402_v53 }
 0x1bc   : > { %1526 = vmatmul.bf16.vlgmr.msrb.gmra.mxu3 %v1199_v18  ;;  %v2193_v18 = vor.u32 %v2192_v54, %v6002_v42 }
 0x1bd   : > { %v531_v58 = vrot.slane %v530_v17, 2  ;;  %v537_v60 = vsub.f32 1.0, %v536_v57  ;;  %v5197_v57 = vld [vmem:[%s6755_s6 + $0xb8] sm:$0xff] }
 0x1be   : > { %v2198_v59 = vsel %vm583_vm2, %v2193_v18, %v2197_v51  ;;  %v5181_v18 = vld [vmem:[%s6755_s6 + $0x38] sm:$0xff]  ;;  %1990 = vmatpush.bf16.msrb.mxu1 %v5197_v57  ;;  %v5231_v57 = vld [vmem:[%s6757_s8 + $0xa8] sm:$0xff] }
 0x1bf   : > { %v532_v61 = vadd.f32 %v531_v58, %v530_v17  ;;  %1962 = vmatpush.bf16.msra.mxu3 %v5181_v18  ;;  %v5199_v18 = vld [vmem:[%s6755_s6 + $0xc8] sm:$0xff] }
 0x1d2   : > { %v1178_v63 = vpop.permute.xlu0 %1177 }
 0x1d3   : > { %v1203_v0 = vsel %vm525_vm10, %v1169_v62, %v1178_v63  ;;  %v1150_v1 = vpop.permute.xlu1 %1149  ;;  %v538_v62 = vmul.f32 %v5402_v53, %v537_v60  ;;  %v533_v63 = vrot.slane %v532_v61, 1 }
 0x1d4   : > { %1540 = vmatmul.bf16.vlgmr.msra.gmra.mxu1 %v1203_v0  ;;  %v1195_v4 = vsel %vm525_vm10, %v5966_v55, %v1150_v1 }
 0x1d5   : > { %1512 = vmatmul.bf16.vlgmr.msrb.gmra.mxu2 %v1195_v4  ;;  %v539_v0 = vadd.f32 %v5402_v53, %v538_v62  ;;  %v534_v1 = vadd.f32 %v533_v63, %v532_v61 }
 0x1d7   : > { %v6161_v4 = vsel %vm540_vm8, %v5402_v53, %v539_v0 }
 0x1d8   : > { %v542_v43 = vmul.f32 %v6161_v4, %v534_v1 }
 0x1da   : > { %v543_v5 = vsub.f32 %v521_v29, %v542_v43  ;;  %v544_v42 = vsub.f32 %v522_v30, %v542_v43  ;;  %v5196_v43 = vld [vmem:[%s6755_s6 + $0xb0] sm:$0xff] }
 0x1db   : > { %v1190_v9 = vpop.permute.xlu1 %1189  ;;  %1991 = vmatpush.bf16.msrb.mxu1 %v5196_v43  ;;  %v5216_v43 = vld [vmem:[%s6757_s8 + $0x30] sm:$0xff] }
 0x1dc   : > { %v1207_v10 = vsel %vm525_vm10, %v1181_v8, %v1190_v9  ;;  %v545_v7 = vmul.f32 %v543_v5, %v543_v5  ;;  %v546_v8 = vmul.f32 %v544_v42, %v544_v42 }
 0x1dd   : > { %1554 = vmatmul.bf16.vlgmr.msra.gmra.mxu0 %v1207_v10 }
 0x1de   : > { %v547_v45 = vsel %vm525_vm10, %v545_v7, 0.0  ;;  %v548_v51 = vsel %vm525_vm10, %v546_v8, 0.0  ;;  %v5180_v8 = vld [vmem:[%s6755_s6 + $0x30] sm:$0xff] }
 0x1df   : > { %v549_v9 = vadd.f32 %v548_v51, %v547_v45  ;;  %v5189_v45 = vld [vmem:[%s6755_s6 + $0x78] sm:$0xff]  ;;  %1963 = vmatpush.bf16.msra.mxu3 %v5180_v8  ;;  %v5227_v8 = vld [vmem:[%s6757_s8 + $0x88] sm:$0xff] }
 0x1e0   : > { %1976 = vmatpush.bf16.msrb.mxu2 %v5189_v45  ;;  %v5239_v45 = vld [vmem:[%s6757_s8 + $0xe8] sm:$0xff] }
 0x1e1   : > { %v550_v10 = vrot.slane %v549_v9, 4 }
 0x1e3   : > { %v551_v11 = vadd.f32 %v550_v10, %v549_v9  ;;  %v5205_v10 = vld [vmem:[%s6755_s6 + $0xf8] sm:$0xff] }
 0x1e4   : > { %2004 = vmatpush.bf16.msrb.mxu0 %v5205_v10  ;;  %v5238_v10 = vld [vmem:[%s6757_s8 + $0xe0] sm:$0xff] }
 0x1e5   : > { %4502 = vmatmul.msk.bf16.vlgmr.msra.gmra.mxu2 %vm525_vm10, %v1193_v13  ;;  %v552_v12 = vrot.slane %v551_v11, 2 }
 0x1e7   : > { %v553_v13 = vadd.f32 %v552_v12, %v551_v11 }
 0x23f   : > { %v1527_v21 = vpop.f32.mrf.mxu3 }
 0x247   : > { %v1529_v56 = vpop.f32.mrf.mxu3 }
 0x251   : > { %v1541_v25 = vpop.f32.mrf.mxu1 }
 0x258   : > { %v1513_v16 = vpop.f32.mrf.mxu2 }
 0x259   : > { %v1514_v19 = vadd.f32 %v5396_v15, %v1513_v16  ;;  %v1543_v35 = vpop.f32.mrf.mxu1 }
 0x25a   : > { %v1555_v55 = vpop.f32.mrf.mxu0 }
 0x25b   : > { %v1528_v24 = vadd.f32 %v1527_v21, %v1514_v19 }
 0x25d   : > { %v1542_v27 = vadd.f32 %v1541_v25, %v1528_v24 }
 0x25f   : > { %v1556_v31 = vadd.f32 %v1555_v55, %v1542_v27 }
 0x260   : > { %v1515_v26 = vpop.f32.mrf.mxu2 }
 0x261   : > { %v1516_v28 = vadd.f32 %v5396_v15, %v1515_v26  ;;  %v554_v15 = vrot.slane %v553_v13, 1 }
 0x262   : > { %v1557_v47 = vpop.f32.mrf.mxu0 }
 0x263   : > { %v1530_v32 = vadd.f32 %v1529_v56, %v1516_v28  ;;  %v555_v16 = vadd.f32 %v554_v15, %v553_v13  ;;  %v5188_v15 = vld [vmem:[%s6755_s6 + $0x70] sm:$0xff] }
 0x264   : > { %1977 = vmatpush.bf16.msrb.mxu2 %v5188_v15  ;;  %v5236_v15 = vld [vmem:[%s6757_s8 + $0xd0] sm:$0xff] }
 0x265   : > { %v1544_v38 = vadd.f32 %v1543_v35, %v1530_v32  ;;  %v556_v19 = vmul.f32 %v555_v16, %v6161_v4 }
 0x267   : > { %v1558_v48 = vadd.f32 %v1557_v47, %v1544_v38  ;;  %v557_v21 = vadd.f32 1e-05, %v556_v19 }
 0x268   : > { %v1569_v33 = vpop.f32.mrf.mxu2 }
 0x269   : > { %v1570_v34 = vadd.f32 %v1569_v33, %v1556_v31  ;;  %5403 = vrsqrt.f32 %v557_v21  ;;  %vm564_vm9 = vweird.f32 %v557_v21 }
 0x26b   : > { %1578 = vrot.lane.b32.xlu2 %v1570_v34, %s6770_s18 }
 0x26f   : > { %v5404_v24 = vpop.eup %5403 }
 0x270   : > { %v1571_v49 = vpop.f32.mrf.mxu2  ;;  %v559_v25 = vmul.f32 %v5404_v24, %v557_v21  ;;  %vm565_vm11 = vweird.f32 %v5404_v24  ;;  %v5195_v21 = vld [vmem:[%s6755_s6 + $0xa8] sm:$0xff] }
 0x271   : > { %v1572_v50 = vadd.f32 %v1571_v49, %v1558_v48  ;;  %vm566_vm12 = vmor %vm564_vm9, %vm565_vm11  ;;  %1992 = vmatpush.bf16.msrb.mxu1 %v5195_v21 }
 0x272   : > { %v560_v26 = vmul.f32 %v5404_v24, %v559_v25 }
 0x273   : > { %1580 = vrot.lane.b32.xlu0 %v1572_v50, %s6770_s18 }
 0x274   : > { %v561_v27 = vmul.f32 0.5, %v560_v26 }
 0x276   : > { %v562_v28 = vsub.f32 1.5, %v561_v27 }
 0x278   : > { %v563_v55 = vmul.f32 %v5404_v24, %v562_v28  ;;  %v5179_v28 = vld [vmem:[%s6755_s6 + $0x28] sm:$0xff] }
 0x279   : > { %1964 = vmatpush.bf16.msra.mxu3 %v5179_v28 }
 0x27a   : > { %v567_v56 = vsel %vm566_vm12, %v5404_v24, %v563_v55  ;;  %v5204_v55 = vld [vmem:[%s6755_s6 + $0xf0] sm:$0xff] }
 0x27b   : > { %2206 = vrot.lane.b32.xlu0 %v2198_v59, %s6770_s18  ;;  %v568_v29 = vmul.f32 %v567_v56, %v543_v5  ;;  %v569_v32 = vmul.f32 %v567_v56, %v544_v42  ;;  %v5187_v56 = vld [vmem:[%s6755_s6 + $0x68] sm:$0xff]  ;;  %2005 = vmatpush.bf16.msrb.mxu0 %v5204_v55  ;;  %v5210_v55 = vld [vmem:[%s6757_s8] sm:$0xff] }
 0x27c   : > { %1978 = vmatpush.bf16.msrb.mxu2 %v5187_v56  ;;  %v5234_v56 = vld [vmem:[%s6757_s8 + $0xc0] sm:$0xff] }
 0x27d   : > { %v1574_v31 = vmul.f32 %v1570_v34, %v568_v29  ;;  %v1575_v35 = vmul.f32 %v1572_v50, %v569_v32  ;;  %v5194_v29 = vld [vmem:[%s6755_s6 + $0xa0] sm:$0xff] }
 0x27e   : > { %v5178_v32 = vld [vmem:[%s6755_s6 + $0x20] sm:$0xff]  ;;  %1993 = vmatpush.bf16.msrb.mxu1 %v5194_v29  ;;  %v5223_v29 = vld [vmem:[%s6757_s8 + $0x68] sm:$0xff] }
 0x27f   : > { %1965 = vmatpush.bf16.msra.mxu3 %v5178_v32 }
 0x2c5   : > { %v1579_v30 = vpop.permute.xlu2 %1578 }
 0x2c6   : > { %v1584_v33 = vadd.f32 %v1579_v30, %v1574_v31 }
 0x2c8   : > { %v1586_v37 = vpack.c.bf16 %v1584_v33, %v1584_v33  ;;  %v5203_v33 = vld [vmem:[%s6755_s6 + $0xe8] sm:$0xff] }
 0x2c9   : > { %2006 = vmatpush.bf16.msrb.mxu0 %v5203_v33  ;;  %v5222_v33 = vld [vmem:[%s6757_s8 + $0x60] sm:$0xff] }
 0x2ca   : > { %v1590_v46 = vunpack.c.l.b16 %v1586_v37 }
 0x2e5   : > { %v1581_v36 = vpop.permute.xlu0 %1580 }
 0x2e6   : > { %v1585_v38 = vadd.f32 %v1581_v36, %v1575_v35  ;;  %v5186_v35 = vld [vmem:[%s6755_s6 + $0x60] sm:$0xff]  ;;  %v5193_v36 = vld [vmem:[%s6755_s6 + $0x98] sm:$0xff] }
 0x2e7   : > { %1979 = vmatpush.bf16.msrb.mxu2 %v5186_v35  ;;  %1994 = vmatpush.bf16.msrb.mxu1 %v5193_v36 }
 0x2e8   : > { %v1587_v39 = vpack.c.bf16 %v1585_v38, %v1585_v38  ;;  %v5177_v38 = vld [vmem:[%s6755_s6 + $0x18] sm:$0xff] }
 0x2e9   : > { %1966 = vmatpush.bf16.msra.mxu3 %v5177_v38  ;;  %v5221_v38 = vld [vmem:[%s6757_s8 + $0x58] sm:$0xff] }
 0x2ea   : > { %v1591_v47 = vunpack.c.l.b16 %v1587_v39  ;;  %v5185_v39 = vld [vmem:[%s6755_s6 + $0x58] sm:$0xff] }
 0x2eb   : > { %1980 = vmatpush.bf16.msrb.mxu2 %v5185_v39 }
 0x2ec   : > { %v1592_v48 = vpack.c.b16 %v1591_v47, %v1590_v46  ;;  %v5176_v46 = vld [vmem:[%s6755_s6 + $0x10] sm:$0xff]  ;;  %v5201_v47 = vld [vmem:[%s6755_s6 + $0xd8] sm:$0xff] }
 0x2ed   : > { %1967 = vmatpush.bf16.msra.mxu3 %v5176_v46 }
 0x2ee   : > { %v1593_v49 = vrot.slane %v1592_v48, 6  ;;  %v5191_v48 = vld [vmem:[%s6755_s6 + $0x88] sm:$0xff] }
 0x2f0   : > { %v6168_v52 = vsel %vm578_vm0, 0, %v1593_v49  ;;  %v6171_v53 = vsel %vm578_vm0, %v1593_v49, 0  ;;  %v5175_v49 = vld [vmem:[%s6755_s6 + $0x8] sm:$0xff] }
 0x2f1   : > { %v1603_v54 = vshll.u32 %v6171_v53, 16  ;;  %v1597_v34 = vshrl.u32 %v6168_v52, 16  ;;  %v1599_v50 = vshll.u32 %v6168_v52, 16  ;;  %v1617_v17 = vshrl.u32 %v6171_v53, 16  ;;  %1968 = vmatpush.bf16.msra.mxu3 %v5175_v49 }
 0x2f2   : > { %v1626_v28 = vrot.slane %v6171_v53, 2  ;;  %v1649_v35 = vrot.slane %v6168_v52, 4  ;;  %v1650_v36 = vrot.slane %v6171_v53, 4  ;;  %v1637_v39 = vrot.slane %v6168_v52, 3 }
 0x2f3   : > { %v1640_v58 = vrot.slane %v1597_v34, 3  ;;  %v1641_v59 = vrot.slane %v1599_v50, 4  ;;  %v1643_v60 = vrot.slane %v1617_v17, 3  ;;  %v1644_v61 = vrot.slane %v1603_v54, 4 }
 0x2f4   : > { %v1614_v62 = vrot.slane %v1597_v34, 1  ;;  %v1615_v63 = vrot.slane %v1599_v50, 2  ;;  %v1619_v0 = vrot.slane %v1617_v17, 1  ;;  %v1620_v1 = vrot.slane %v1603_v54, 2 }
 0x2f5   : > { %v1642_v5 = vor.u32 %v1641_v59, %v1640_v58  ;;  %v1645_v42 = vor.u32 %v1644_v61, %v1643_v60  ;;  %v1601_v7 = vrot.slane %v1599_v50, 1  ;;  %v1605_v13 = vrot.slane %v1603_v54, 1  ;;  %v5207_v58 = vld [vmem:[%s6755_s6 + $0x108] sm:$0xff]  ;;  %v5230_v59 = vld [vmem:[%s6757_s8 + $0xa0] sm:$0xff] }
 0x2f6   : > { %v1616_v51 = vor.u32 %v1615_v63, %v1614_v62  ;;  %v1621_v9 = vor.u32 %v1620_v1, %v1619_v0  ;;  %v1628_v19 = vrot.slane %v1597_v34, 2  ;;  %v1629_v25 = vrot.slane %v1599_v50, 3  ;;  %v5184_v50 = vld [vmem:[%s6755_s6 + $0x50] sm:$0xff]  ;;  %v5182_v60 = vld [vmem:[%s6755_s6 + $0x40] sm:$0xff]  ;;  %v5217_v63 = vld [vmem:[%s6757_s8 + $0x38] sm:$0xff] }
 0x2f7   : > { %v1646_v11 = vsel %vm638_vm7, %v1642_v5, %v1645_v42  ;;  %v1602_v12 = vor.u32 %v1601_v7, %v1597_v34  ;;  %v1631_v26 = vrot.slane %v1617_v17, 2  ;;  %v1632_v27 = vrot.slane %v1603_v54, 3  ;;  %v5233_v54 = vld [vmem:[%s6757_s8 + $0xb8] sm:$0xff]  ;;  %v5200_v17 = vld [vmem:[%s6755_s6 + $0xd0] sm:$0xff]  ;;  %1981 = vmatpush.bf16.msrb.mxu2 %v5184_v50  ;;  %v5198_v61 = vld [vmem:[%s6755_s6 + $0xc0] sm:$0xff] }
 0x2f8   : > { %1647 = vrot.lane.b32.xlu0 %v1646_v11, %s6770_s18  ;;  %v1622_v16 = vsel %vm604_vm1, %v1616_v51, %v1621_v9  ;;  %v1630_v30 = vor.u32 %v1629_v25, %v1628_v19  ;;  %v5209_v34 = vld [vmem:[%s6755_s6 + $0x118] sm:$0xff]  ;;  %v5206_v62 = vld [vmem:[%s6755_s6 + $0x100] sm:$0xff]  ;;  %v5228_v5 = vld [vmem:[%s6757_s8 + $0x90] sm:$0xff]  ;;  %v1611_v46 = vrot.slane %v6168_v52, 1  ;;  %v2235_v49 = vrot.slane %v5999_v41, 2 }
 0x2f9   : > { %1623 = vrot.lane.b32.xlu1 %v1622_v16, %s6770_s18  ;;  %v1606_v24 = vsel %vm583_vm2, %v1602_v12, %v1605_v13  ;;  %v1633_v31 = vor.u32 %v1632_v27, %v1631_v26  ;;  %v5229_v0 = vld [vmem:[%s6757_s8 + $0x98] sm:$0xff]  ;;  %v5240_v42 = vld [vmem:[%s6757_s8 + $0xf0] sm:$0xff]  ;;  %v5215_v7 = vld [vmem:[%s6757_s8 + $0x28] sm:$0xff]  ;;  %v1625_v27 = vrot.slane %v6168_v52, 2 }
 0x2fa   : > { %1607 = vrot.lane.b32.xlu2 %v1606_v24, %s6770_s18  ;;  %v5241_v1 = vld [vmem:[%s6757_s8 + $0xf8] sm:$0xff]  ;;  %v5214_v51 = vld [vmem:[%s6757_s8 + $0x20] sm:$0xff]  ;;  %v5212_v13 = vld [vmem:[%s6757_s8 + $0x10] sm:$0xff] }
 0x2fb   : > { %v1634_v37 = vsel %vm622_vm3, %v1630_v30, %v1633_v31  ;;  %v5226_v9 = vld [vmem:[%s6757_s8 + $0x80] sm:$0xff]  ;;  %v5213_v11 = vld [vmem:[%s6757_s8 + $0x18] sm:$0xff]  ;;  %v5211_v24 = vld [vmem:[%s6757_s8 + $0x8] sm:$0xff]  ;;  %v1627_v30 = vsel %vm616_vm4, %v1625_v27, %v1626_v28  ;;  %v2275_v28 = vrot.slane %v5999_v41, 4 }
 0x2fc   : > { %v5237_v12 = vld [vmem:[%s6757_s8 + $0xd8] sm:$0xff]  ;;  %v5235_v25 = vld [vmem:[%s6757_s8 + $0xc8] sm:$0xff]  ;;  %v5224_v26 = vld [vmem:[%s6757_s8 + $0x70] sm:$0xff] }
 0x2fd   : > { %v5225_v16 = vld [vmem:[%s6757_s8 + $0x78] sm:$0xff] }
 0x300   : > { %2270 = vrot.lane.b32.xlu0 %v6027_v2, %s6770_s18  ;;  %v5202_v2 = vld [vmem:[%s6755_s6 + $0xe0] sm:$0xff] }
 0x301   : > { %2208 = vrot.lane.b32.xlu1 %v6030_v3, %s6770_s18  ;;  %v5192_v3 = vld [vmem:[%s6755_s6 + $0x90] sm:$0xff]  ;;  %2007 = vmatpush.bf16.msrb.mxu0 %v5202_v2  ;;  %v1651_v2 = vsel %vm648_vm15, %v1649_v35, %v1650_v36 }
 0x302   : > { %1635 = vrot.lane.b32.xlu2 %v1634_v37, %s6770_s18  ;;  %1995 = vmatpush.bf16.msrb.mxu1 %v5192_v3  ;;  %v2207_v37 = vpop.permute.xlu0 %2206  ;;  %v1638_v3 = vrot.slane %v6171_v53, 3 }
 0x305   : > { %2008 = vmatpush.bf16.msrb.mxu0 %v5201_v47  ;;  %v1612_v47 = vrot.slane %v6171_v53, 1 }
 0x306   : > { %1996 = vmatpush.bf16.msrb.mxu1 %v5191_v48  ;;  %v5220_v48 = vld [vmem:[%s6757_s8 + $0x50] sm:$0xff] }
 0x307   : > { %v1613_v53 = vsel %vm598_vm5, %v1611_v46, %v1612_v47 }
 0x308   : > { %2272 = vrot.lane.b32.xlu0 %v6034_v6, %s6770_s18  ;;  %v5190_v6 = vld [vmem:[%s6755_s6 + $0x80] sm:$0xff] }
 0x309   : > { %2230 = vrot.lane.b32.xlu1 %v6038_v14, %s6770_s18  ;;  %v5174_v14 = vld [vmem:[%s6755_s6] sm:$0xff]  ;;  %2009 = vmatpush.bf16.msrb.mxu0 %v5200_v17  ;;  %v5219_v17 = vld [vmem:[%s6757_s8 + $0x48] sm:$0xff] }
 0x30a   : > { %2250 = vrot.lane.b32.xlu2 %v6041_v20, %s6770_s18  ;;  %1997 = vmatpush.bf16.msrb.mxu1 %v5190_v6  ;;  %v5232_v20 = vld [vmem:[%s6757_s8 + $0xb0] sm:$0xff]  ;;  %v2234_v6 = vrot.slane %v5995_v40, 2 }
 0x30b   : > { %1969 = vmatpush.bf16.msra.mxu3 %v5174_v14  ;;  %v1639_v14 = vsel %vm632_vm6, %v1637_v39, %v1638_v3 }
 0x30d   : > { %2010 = vmatpush.bf16.msrb.mxu0 %v5199_v18  ;;  %v5244_v18 = vld [vmem:[%s6757_s8 + $0x110] sm:$0xff] }
 0x30e   : > { %2645 = vmatpush.bf16.msra.mxu1 %v5233_v54 }
 0x30f   : > { %2022 = vmatpush.bf16.msrb.mxu3 %v5209_v34 }
 0x311   : > { %2232 = vrot.lane.b32.xlu1 %v6044_v22, %s6770_s18  ;;  %v5208_v22 = vld [vmem:[%s6755_s6 + $0x110] sm:$0xff]  ;;  %2011 = vmatpush.bf16.msrb.mxu0 %v5198_v61  ;;  %v2255_v61 = vrot.slane %v5999_v41, 3 }
 0x312   : > { %2252 = vrot.lane.b32.xlu2 %v6047_v23, %s6770_s18  ;;  %2646 = vmatpush.bf16.msra.mxu1 %v5232_v20  ;;  %v5183_v23 = vld [vmem:[%s6755_s6 + $0x48] sm:$0xff]  ;;  %v5245_v20 = vld [vmem:[%s6757_s8 + $0x118] sm:$0xff]  ;;  %s507_s18 = sand.u32 1, %s5567_s30  }
 0x313   : > { %2023 = vmatpush.bf16.msrb.mxu3 %v5208_v22  ;;  %1982 = vmatpush.bf16.msrb.mxu2 %v5183_v23  ;;  %v2236_v22 = vsel %vm616_vm4, %v2234_v6, %v2235_v49  ;;  %s4172_s29 = sshll.u32 %s507_s18, 5  ;;  %s4053_s17 = scalar_lea.sflag [#allocation4], %s507_s18 }
 0x315   : > { %2664 = vmatpush.bf16.msra.mxu0 %v5241_v1 }
 0x316   : > { %2647 = vmatpush.bf16.msra.mxu1 %v5231_v57 }
 0x317   : > { %2024 = vmatpush.bf16.msrb.mxu3 %v5207_v58  ;;  %1983 = vmatpush.bf16.msrb.mxu2 %v5182_v60  ;;  %v5218_v58 = vld [vmem:[%s6757_s8 + $0x40] sm:$0xff] }
 0x319   : > { %2665 = vmatpush.bf16.msra.mxu0 %v5240_v42 }
 0x31a   : > { %2648 = vmatpush.bf16.msra.mxu1 %v5230_v59  ;;  %v5243_v59 = vld [vmem:[%s6757_s8 + $0x108] sm:$0xff] }
 0x31b   : > { %2025 = vmatpush.bf16.msrb.mxu3 %v5206_v62  ;;  %2607 = vmatpush.bf16.msra.mxu2 %v5217_v63  ;;  %v5242_v62 = vld [vmem:[%s6757_s8 + $0x100] sm:$0xff]  ;;  %v2213_v63 = vrot.slane %v5999_v41, 1 }
 0x31d   : > { %2666 = vmatpush.bf16.msra.mxu0 %v5239_v45 }
 0x31e   : > { %2649 = vmatpush.bf16.msra.mxu1 %v5229_v0  ;;  %v2254_v0 = vrot.slane %v5995_v40, 3 }
 0x31f   : > { %2608 = vmatpush.bf16.msra.mxu2 %v5216_v43  ;;  %v2237_v43 = vrot.slane %v6008_v44, 2 }
 0x321   : > { %2667 = vmatpush.bf16.msra.mxu0 %v5238_v10 }
 0x322   : > { %2650 = vmatpush.bf16.msra.mxu1 %v5228_v5  ;;  %v2212_v5 = vrot.slane %v5995_v40, 1 }
 0x323   : > { %2609 = vmatpush.bf16.msra.mxu2 %v5215_v7  ;;  %v2256_v7 = vsel %vm632_vm6, %v2254_v0, %v2255_v61 }
 0x324   : > { %v2214_v45 = vsel %vm598_vm5, %v2212_v5, %v2213_v63 }
 0x325   : > { %2668 = vmatpush.bf16.msra.mxu0 %v5237_v12 }
 0x326   : > { %2651 = vmatpush.bf16.msra.mxu1 %v5227_v8 }
 0x327   : > { %2610 = vmatpush.bf16.msra.mxu2 %v5214_v51 }
 0x329   : > { %2669 = vmatpush.bf16.msra.mxu0 %v5236_v15  ;;  %v2215_v15 = vrot.slane %v6008_v44, 1 }
 0x32a   : > { %2652 = vmatpush.bf16.msra.mxu1 %v5226_v9  ;;  %v2280_v9 = vsel %vm525_vm10, %v5995_v40, %v2207_v37 }
 0x32b   : > { %2611 = vmatpush.bf16.msra.mxu2 %v5213_v11  ;;  %v2238_v11 = vsel %vm616_vm4, %v2235_v49, %v2237_v43 }
 0x32d   : > { %2670 = vmatpush.bf16.msra.mxu0 %v5235_v25 }
 0x32f   : > { %2612 = vmatpush.bf16.msra.mxu2 %v5212_v13  ;;  %v2257_v13 = vrot.slane %v6008_v44, 3 }
 0x331   : > { %2671 = vmatpush.bf16.msra.mxu0 %v5234_v56 }
 0x333   : > { %2613 = vmatpush.bf16.msra.mxu2 %v5211_v24  ;;  %v2216_v24 = vsel %vm598_vm5, %v2213_v63, %v2215_v15 }
 0x337   : > { %2614 = vmatpush.bf16.msra.mxu2 %v5210_v55  ;;  %v2274_v55 = vrot.slane %v5995_v40, 4 }
 0x339   : > { %v2276_v56 = vsel %vm648_vm15, %v2274_v55, %v2275_v28 }
 0x354   : > { %v1608_v19 = vpop.permute.xlu2 %1607 }
 0x355   : > { %v1653_v21 = vsel %vm525_vm10, %v6168_v52, %v1608_v19 }
 0x356   : > { %1970 = vmatmul.bf16.vlgmr.msra.gmra.mxu3 %v1653_v21  ;;  %v2258_v21 = vsel %vm632_vm6, %v2255_v61, %v2257_v13 }
 0x357   : > { %2626 = vmatpush.bf16.msra.mxu3 %v5225_v16 }
 0x35b   : > { %2627 = vmatpush.bf16.msra.mxu3 %v5224_v26 }
 0x35c   : > { %v1636_v31 = vpop.permute.xlu2 %1635 }
 0x35d   : > { %v1661_v32 = vsel %vm525_vm10, %v1627_v30, %v1636_v31 }
 0x35e   : > { %1998 = vmatmul.bf16.vlgmr.msrb.gmra.mxu1 %v1661_v32 }
 0x35f   : > { %2628 = vmatpush.bf16.msra.mxu3 %v5223_v29  ;;  %v2277_v29 = vrot.slane %v6008_v44, 4 }
 0x361   : > { %v2278_v30 = vsel %vm648_vm15, %v2275_v28, %v2277_v29 }
 0x363   : > { %2629 = vmatpush.bf16.msra.mxu3 %v5222_v33  ;;  %v5397_v33 = vld [vmem:[%s6756_s7] ss:$0 sm:$0xff] }
 0x364   : > { %v2251_v54 = vpop.permute.xlu2 %2250 }
 0x365   : > { %v2295_v23 = vsel %vm525_vm10, %v2236_v22, %v2251_v54  ;;  %v5398_v22 = vld [vmem:[%s6758_s9] ss:$0 sm:$0xff] }
 0x366   : > { %4647 = vmatmul.msk.bf16.vlgmr.msrb.gmra.mxu3 %vm525_vm10, %v1651_v2 }
 0x367   : > { %2630 = vmatpush.bf16.msra.mxu3 %v5221_v38 }
 0x36a   : > { %v1648_v34 = vpop.permute.xlu0 %1647 }
 0x36b   : > { %v1665_v52 = vsel %vm525_vm10, %v1639_v14, %v1648_v34  ;;  %v1624_v50 = vpop.permute.xlu1 %1623  ;;  %2631 = vmatpush.bf16.msra.mxu3 %v5220_v48 }
 0x36c   : > { %v1657_v57 = vsel %vm525_vm10, %v1613_v53, %v1624_v50  ;;  %2012 = vmatmul.bf16.vlgmr.msrb.gmra.mxu0 %v1665_v52  ;;  %v2253_v42 = vpop.permute.xlu2 %2252 }
 0x36d   : > { %1984 = vmatmul.bf16.vlgmr.msrb.gmra.mxu2 %v1657_v57  ;;  %v2299_v12 = vsel %vm525_vm10, %v2238_v11, %v2253_v42 }
 0x36e   : > { %2653 = vmatmul.bf16.vlgmr.msra.gmra.mxu1 %v2295_v23  ;;  %2687 = vmatpush.bf16.msrb.mxu2 %v5245_v20 }
 0x36f   : > { %2632 = vmatpush.bf16.msra.mxu3 %v5219_v17 }
 0x372   : > { %2688 = vmatpush.bf16.msrb.mxu2 %v5244_v18  ;;  %v2271_v1 = vpop.permute.xlu0 %2270 }
 0x373   : > { %v2209_v60 = vpop.permute.xlu1 %2208  ;;  %2633 = vmatpush.bf16.msra.mxu3 %v5218_v58  ;;  %v2303_v8 = vsel %vm525_vm10, %v2256_v7, %v2271_v1 }
 0x374   : > { %v2283_v26 = vsel %vm525_vm10, %v5999_v41, %v2209_v60 }
 0x376   : > { %2689 = vmatpush.bf16.msrb.mxu2 %v5243_v59 }
 0x37a   : > { %2690 = vmatpush.bf16.msrb.mxu2 %v5242_v62  ;;  %v2273_v16 = vpop.permute.xlu0 %2272 }
 0x37b   : > { %v2231_v51 = vpop.permute.xlu1 %2230  ;;  %v2307_v25 = vsel %vm525_vm10, %v2258_v21, %v2273_v16 }
 0x37c   : > { %v2287_v10 = vsel %vm525_vm10, %v2214_v45, %v2231_v51  ;;  %2672 = vmatmul.bf16.vlgmr.msra.gmra.mxu0 %v2303_v8 }
 0x37d   : > { %2615 = vmatmul.bf16.vlgmr.msra.gmra.mxu2 %v2280_v9  ;;  %2634 = vmatmul.bf16.vlgmr.msra.gmra.mxu3 %v2287_v10 }
 0x37e   : > { %2658 = vmatmul.bf16.gmra.mxu1 %v2299_v12 }
 0x383   : > { %v2233_v19 = vpop.permute.xlu1 %2232 }
 0x384   : > { %v2291_v27 = vsel %vm525_vm10, %v2216_v24, %v2233_v19 }
 0x38c   : > { %2677 = vmatmul.bf16.gmra.mxu0 %v2307_v25 }
 0x38d   : > { %2620 = vmatmul.bf16.gmra.mxu2 %v2283_v26  ;;  %2639 = vmatmul.bf16.gmra.mxu3 %v2291_v27 }
 0x39d   : > { %4792 = vmatmul.msk.bf16.vlgmr.msrb.gmra.mxu2 %vm525_vm10, %v2276_v56 }
 0x3ad   : > { %4793 = vmatmul.msk.bf16.gmra.mxu2 %vm525_vm10, %v2278_v30 }
 0x3d9   : > { %v1971_v31 = vpop.f32.mrf.mxu3 }
 0x3da   : > { %v1972_v35 = vadd.f32 %v5397_v33, %v1971_v31 }
 0x3db   : > { %v1999_v41 = vpop.f32.mrf.mxu1 }
 0x3e1   : > { %v1973_v32 = vpop.f32.mrf.mxu3 }
 0x3e2   : > { %v1974_v3 = vadd.f32 %v5397_v33, %v1973_v32 }
 0x3e3   : > { %v2001_v48 = vpop.f32.mrf.mxu1 }
 0x3e9   : > { %v2013_v37 = vpop.f32.mrf.mxu0  ;;  %v2027_v2 = vpop.f32.mrf.mxu3 }
 0x3eb   : > { %v2654_v17 = vpop.f32.mrf.mxu1 }
 0x3f0   : > { %v1985_v36 = vpop.f32.mrf.mxu2 }
 0x3f1   : > { %v1986_v40 = vadd.f32 %v1985_v36, %v1972_v35  ;;  %v2015_v6 = vpop.f32.mrf.mxu0  ;;  %v2029_v14 = vpop.f32.mrf.mxu3 }
 0x3f3   : > { %v2000_v38 = vadd.f32 %v1999_v41, %v1986_v40  ;;  %v2656_v60 = vpop.f32.mrf.mxu1 }
 0x3f5   : > { %v2014_v39 = vadd.f32 %v2013_v37, %v2000_v38 }
 0x3f7   : > { %v6468_v44 = vadd.f32 %v2027_v2, %v2014_v39 }
 0x3f8   : > { %v1987_v46 = vpop.f32.mrf.mxu2 }
 0x3f9   : > { %v1988_v47 = vadd.f32 %v1987_v46, %v1974_v3  ;;  %v2673_v57 = vpop.f32.mrf.mxu0  ;;  %5405 = vtanh.f32 %v6468_v44 }
 0x3fb   : > { %v2002_v49 = vadd.f32 %v2001_v48, %v1988_v47  ;;  %v2659_v45 = vpop.f32.mrf.mxu1 }
 0x3fd   : > { %v2016_v54 = vadd.f32 %v2015_v6, %v2002_v49 }
 0x3ff   : > { %v6470_v34 = vadd.f32 %v2029_v14, %v2016_v54 }
 0x400   : > { %v2616_v20 = vpop.f32.mrf.mxu2  ;;  %v2635_v53 = vpop.f32.mrf.mxu3 }
 0x401   : > { %v2617_v58 = vadd.f32 %v5398_v22, %v2616_v20  ;;  %v2675_v0 = vpop.f32.mrf.mxu0  ;;  %5407 = vtanh.f32 %v6470_v34 }
 0x403   : > { %v2636_v61 = vadd.f32 %v2635_v53, %v2617_v58  ;;  %v2661_v28 = vpop.f32.mrf.mxu1 }
 0x405   : > { %v2655_v1 = vadd.f32 %v2654_v17, %v2636_v61 }
 0x407   : > { %v2674_v7 = vadd.f32 %v2673_v57, %v2655_v1 }
 0x408   : > { %v2618_v52 = vpop.f32.mrf.mxu2  ;;  %v2637_v18 = vpop.f32.mrf.mxu3 }
 0x409   : > { %v2619_v59 = vadd.f32 %v5398_v22, %v2618_v52  ;;  %v2678_v15 = vpop.f32.mrf.mxu0 }
 0x40b   : > { %v2638_v62 = vadd.f32 %v2637_v18, %v2619_v59 }
 0x40d   : > { %v2657_v43 = vadd.f32 %v2656_v60, %v2638_v62 }
 0x40f   : > { %v2676_v8 = vadd.f32 %v2675_v0, %v2657_v43 }
 0x410   : > { %v2621_v50 = vpop.f32.mrf.mxu2  ;;  %v2640_v5 = vpop.f32.mrf.mxu3 }
 0x411   : > { %v2622_v42 = vadd.f32 %v5398_v22, %v2621_v50  ;;  %v2680_v31 = vpop.f32.mrf.mxu0 }
 0x413   : > { %v2641_v11 = vadd.f32 %v2640_v5, %v2622_v42 }
 0x415   : > { %v2660_v21 = vadd.f32 %v2659_v45, %v2641_v11 }
 0x417   : > { %v2679_v29 = vadd.f32 %v2678_v15, %v2660_v21 }
 0x418   : > { %v2623_v23 = vpop.f32.mrf.mxu2  ;;  %v2642_v19 = vpop.f32.mrf.mxu3 }
 0x419   : > { %v2624_v12 = vadd.f32 %v5398_v22, %v2623_v23 }
 0x41b   : > { %v2643_v24 = vadd.f32 %v2642_v19, %v2624_v12 }
 0x41d   : > { %v2662_v55 = vadd.f32 %v2661_v28, %v2643_v24 }
 0x41f   : > { %v2681_v33 = vadd.f32 %v2680_v31, %v2662_v55 }
 0x420   : > { %v2692_v63 = vpop.f32.mrf.mxu2 }
 0x421   : > { %v6475_v9 = vadd.f32 %v2692_v63, %v2674_v7 }
 0x423   : > { %v2702_v16 = vpack.c.bf16 %v6475_v9, %v6475_v9 }
 0x425   : > { %v2710_v27 = vunpack.c.l.b16 %v2702_v16 }
 0x428   : > { %v2694_v51 = vpop.f32.mrf.mxu2 }
 0x429   : > { %v6477_v10 = vadd.f32 %v2694_v51, %v2676_v8 }
 0x42b   : > { %v2703_v13 = vpack.c.bf16 %v6477_v10, %v6477_v10 }
 0x42d   : > { %v2711_v25 = vunpack.c.l.b16 %v2703_v13 }
 0x42f   : > { %v2714_v56 = vpack.c.b16 %v2711_v25, %v2710_v27 }
 0x430   : > { %v2697_v26 = vpop.f32.mrf.mxu2 }
 0x431   : > { %v6483_v30 = vadd.f32 %v2697_v26, %v2679_v29  ;;  %v2716_v32 = vrot.slane %v2714_v56, 6 }
 0x433   : > { %v2704_v41 = vpack.c.bf16 %v6483_v30, %v6483_v30  ;;  %v6490_v40 = vsel %vm578_vm0, 0, %v2716_v32 }
 0x434   : > { %v2725_v39 = vshll.u32 %v6490_v40, 16  ;;  %v2723_v46 = vshrl.u32 %v6490_v40, 16 }
 0x435   : > { %v2712_v38 = vunpack.c.l.b16 %v2704_v41  ;;  %v5267_v41 = vld [vmem:[#allocation2 + $0xa8] sm:$0xff] }
 0x436   : > { %v2727_v48 = vrot.slane %v2725_v39, 1  ;;  %v2794_v54 = vrot.slane %v2723_v46, 3  ;;  %v2795_v14 = vrot.slane %v2725_v39, 4  ;;  %v2752_v0 = vrot.slane %v2723_v46, 1 }
 0x437   : > { %v2753_v1 = vrot.slane %v2725_v39, 2  ;;  %v2774_v11 = vrot.slane %v2723_v46, 2  ;;  %v2775_v12 = vrot.slane %v2725_v39, 3  ;;  %v5265_v39 = vld [vmem:[#allocation2 + $0x98] sm:$0xff] }
 0x438   : > { %v2699_v35 = vpop.f32.mrf.mxu2  ;;  %v2728_v17 = vor.u32 %v2727_v48, %v2723_v46  ;;  %v2796_v18 = vor.u32 %v2795_v14, %v2794_v54  ;;  %v5252_v46 = vld [vmem:[#allocation2 + $0x30] sm:$0xff]  ;;  %v2035_v54 = vsel %vm525_vm10, %v6470_v34, -inf  ;;  %v5251_v14 = vld [vmem:[#allocation2 + $0x28] sm:$0xff] }
 0x439   : > { %v6487_v36 = vadd.f32 %v2699_v35, %v2681_v33  ;;  %v2754_v13 = vor.u32 %v2753_v1, %v2752_v0  ;;  %v2776_v21 = vor.u32 %v2775_v12, %v2774_v11  ;;  %v5269_v33 = vld [vmem:[#allocation2 + $0xb8] sm:$0xff]  ;;  %v5268_v35 = vld [vmem:[#allocation2 + $0xb0] sm:$0xff]  ;;  %v5271_v1 = vld [vmem:[#allocation2 + $0xc8] sm:$0xff] }
 0x43a   : > { %3180 = vmatpush.bf16.msrb.mxu0 %v5269_v33  ;;  %v5264_v48 = vld [vmem:[#allocation2 + $0x90] sm:$0xff]  ;;  %v5257_v0 = vld [vmem:[#allocation2 + $0x58] sm:$0xff] }
 0x43b   : > { %v2705_v37 = vpack.c.bf16 %v6487_v36, %v6487_v36  ;;  %v5280_v11 = vld [vmem:[#allocation2 + $0x110] sm:$0xff] }
 0x43d   : > { %v2713_v2 = vunpack.c.l.b16 %v2705_v37  ;;  %v5266_v37 = vld [vmem:[#allocation2 + $0xa0] sm:$0xff] }
 0x43e   : > { %3181 = vmatpush.bf16.msrb.mxu0 %v5268_v35 }
 0x43f   : > { %v2715_v3 = vpack.c.b16 %v2713_v2, %v2712_v38  ;;  %v2032_v38 = vsel %vm525_vm10, %v6468_v44, -inf  ;;  %v5253_v2 = vld [vmem:[#allocation2 + $0x38] sm:$0xff] }
 0x440   : > { %3142 = vmatpush.bf16.msrb.mxu3 %v5253_v2 }
 0x441   : > { %v2717_v47 = vrot.slane %v2715_v3, 6  ;;  %v5277_v3 = vld [vmem:[#allocation2 + $0xf8] sm:$0xff] }
 0x442   : > { %3182 = vmatpush.bf16.msrb.mxu0 %v5267_v41  ;;  %3199 = vmatpush.bf16.msra.mxu2 %v5277_v3 }
 0x443   : > { %v6497_v49 = vsel %vm578_vm0, %v2716_v32, %v2717_v47  ;;  %v6500_v6 = vsel %vm578_vm0, %v2717_v47, 0  ;;  %v5276_v47 = vld [vmem:[#allocation2 + $0xf0] sm:$0xff] }
 0x444   : > { %v2730_v20 = vshll.u32 %v6497_v49, 16  ;;  %v2734_v52 = vshrl.u32 %v6497_v49, 16  ;;  %v2737_v53 = vshll.u32 %v6500_v6, 16  ;;  %v2759_v50 = vshrl.u32 %v6500_v6, 16  ;;  %3143 = vmatpush.bf16.msrb.mxu3 %v5252_v46 }
 0x445   : > { %v2792_v46 = vrot.slane %v6500_v6, 3 }
 0x446   : > { %v2732_v22 = vrot.slane %v2730_v20, 1  ;;  %v2797_v57 = vrot.slane %v2734_v52, 3  ;;  %v2798_v23 = vrot.slane %v2730_v20, 4  ;;  %v2739_v58 = vrot.slane %v2737_v53, 1  ;;  %3183 = vmatpush.bf16.msrb.mxu0 %v5266_v37  ;;  %3200 = vmatpush.bf16.msra.mxu2 %v5276_v47 }
 0x447   : > { %v2755_v59 = vrot.slane %v2734_v52, 1  ;;  %v2756_v63 = vrot.slane %v2730_v20, 2  ;;  %v2801_v43 = vrot.slane %v2759_v50, 3  ;;  %v2802_v5 = vrot.slane %v2737_v53, 4 }
 0x448   : > { %v2733_v60 = vsel %vm583_vm2, %v2728_v17, %v2732_v22  ;;  %v2799_v61 = vor.u32 %v2798_v23, %v2797_v57  ;;  %v2736_v62 = vor.u32 %v2734_v52, %v2732_v22  ;;  %v2777_v8 = vrot.slane %v2734_v52, 2  ;;  %v5263_v52 = vld [vmem:[#allocation2 + $0x88] sm:$0xff]  ;;  %3144 = vmatpush.bf16.msrb.mxu3 %v5251_v14  ;;  %v5260_v17 = vld [vmem:[#allocation2 + $0x70] sm:$0xff]  ;;  %v5262_v22 = vld [vmem:[#allocation2 + $0x80] sm:$0xff] }
 0x449   : > { %2741 = vrot.lane.b32.xlu1 %v2733_v60, %s6783_s28  ;;  %v2778_v45 = vrot.slane %v2730_v20, 3  ;;  %v2757_v51 = vor.u32 %v2756_v63, %v2755_v59  ;;  %v2803_v15 = vor.u32 %v2802_v5, %v2801_v43  ;;  %v2761_v24 = vrot.slane %v2759_v50, 1  ;;  %v5261_v20 = vld [vmem:[#allocation2 + $0x78] sm:$0xff]  ;;  %v5274_v57 = vld [vmem:[#allocation2 + $0xe0] sm:$0xff]  ;;  %v5248_v59 = vld [vmem:[#allocation2 + $0x10] sm:$0xff]  ;;  %v5406_v60 = vpop.eup %5405 }
 0x44a   : > { %v2800_v42 = vsel %vm638_vm7, %v2796_v18, %v2799_v61  ;;  %v2740_v7 = vsel %vm583_vm2, %v2736_v62, %v2739_v58  ;;  %v2762_v25 = vrot.slane %v2737_v53, 2  ;;  %v2781_v28 = vrot.slane %v2759_v50, 2  ;;  %3184 = vmatpush.bf16.msrb.mxu0 %v5265_v39  ;;  %v5250_v50 = vld [vmem:[#allocation2 + $0x20] sm:$0xff]  ;;  %3161 = vmatpush.bf16.msrb.mxu1 %v5261_v20  ;;  %v5249_v23 = vld [vmem:[#allocation2 + $0x18] sm:$0xff]  ;;  %v5259_v18 = vld [vmem:[#allocation2 + $0x68] sm:$0xff] }
 0x44b   : > { %2805 = vrot.lane.b32.xlu0 %v2800_v42, %s6783_s28  ;;  %2743 = vrot.lane.b32.xlu2 %v2740_v7, %s6783_s28  ;;  %v2779_v16 = vor.u32 %v2778_v45, %v2777_v8  ;;  %v2758_v19 = vsel %vm604_vm1, %v2754_v13, %v2757_v51  ;;  %v2804_v26 = vsel %vm638_vm7, %v2799_v61, %v2803_v15  ;;  %v2782_v55 = vrot.slane %v2737_v53, 3  ;;  %v5275_v53 = vld [vmem:[#allocation2 + $0xe8] sm:$0xff]  ;;  %v5273_v58 = vld [vmem:[#allocation2 + $0xd8] sm:$0xff]  ;;  %v5258_v61 = vld [vmem:[#allocation2 + $0x60] sm:$0xff]  ;;  %v5408_v42 = vpop.eup %5407 }
 0x44c   : > { %v2763_v56 = vor.u32 %v2762_v25, %v2761_v24  ;;  %3201 = vmatpush.bf16.msra.mxu2 %v5275_v53  ;;  %3145 = vmatpush.bf16.msrb.mxu3 %v5250_v50  ;;  %v5272_v62 = vld [vmem:[#allocation2 + $0xd0] sm:$0xff]  ;;  %v5247_v63 = vld [vmem:[#allocation2 + $0x8] sm:$0xff]  ;;  %v5246_v43 = vld [vmem:[#allocation2] sm:$0xff]  ;;  %v2770_v13 = vrot.slane %v6497_v49, 2  ;;  %v2769_v15 = vrot.slane %v6490_v40, 2  ;;  %v2748_v37 = vrot.slane %v6497_v49, 1 }
 0x44d   : > { %v2780_v27 = vsel %vm622_vm3, %v2776_v21, %v2779_v16  ;;  %v2783_v29 = vor.u32 %v2782_v55, %v2781_v28  ;;  %v5256_v5 = vld [vmem:[#allocation2 + $0x50] sm:$0xff]  ;;  %v5270_v7 = vld [vmem:[#allocation2 + $0xc0] sm:$0xff]  ;;  %v5281_v8 = vld [vmem:[#allocation2 + $0x118] sm:$0xff]  ;;  %v2750_v20 = vrot.slane %v6500_v6, 1  ;;  %vm3374_vm7 = vcmask 1042432  }
 0x44e   : > { %v2764_v31 = vsel %vm604_vm1, %v2757_v51, %v2763_v56  ;;  %3185 = vmatpush.bf16.msrb.mxu0 %v5264_v48  ;;  %3162 = vmatpush.bf16.msrb.mxu1 %v5260_v17  ;;  %v5255_v45 = vld [vmem:[#allocation2 + $0x48] sm:$0xff]  ;;  %v5254_v51 = vld [vmem:[#allocation2 + $0x40] sm:$0xff]  ;;  %v2789_v56 = vrot.slane %v6490_v40, 3  ;;  %v2810_v17 = vrot.slane %v6497_v49, 4 }
 0x44f   : > { %v2784_v32 = vsel %vm622_vm3, %v2779_v16, %v2783_v29  ;;  %v2771_v16 = vsel %vm616_vm4, %v2769_v15, %v2770_v13  ;;  %v5279_v21 = vld [vmem:[#allocation2 + $0x108] sm:$0xff]  ;;  %v5278_v25 = vld [vmem:[#allocation2 + $0x100] sm:$0xff]  ;;  %v2751_v53 = vsel %vm598_vm5, %v2748_v37, %v2750_v20 }
 0x450   : > { %3202 = vmatpush.bf16.msra.mxu2 %v5274_v57  ;;  %3146 = vmatpush.bf16.msrb.mxu3 %v5249_v23  ;;  %v2812_v23 = vrot.slane %v6500_v6, 4 }
 0x451   : > { %2765 = vrot.lane.b32.xlu1 %v2758_v19, %s6783_s28 }
 0x452   : > { %3186 = vmatpush.bf16.msrb.mxu0 %v5263_v52  ;;  %3163 = vmatpush.bf16.msrb.mxu1 %v5259_v18  ;;  %v2813_v18 = vsel %vm648_vm15, %v2810_v17, %v2812_v23 }
 0x453   : > { %2807 = vrot.lane.b32.xlu0 %v2804_v26, %s6783_s28  ;;  %2785 = vrot.lane.b32.xlu2 %v2780_v27, %s6783_s28  ;;  %v2790_v26 = vrot.slane %v6497_v49, 3  ;;  %v2772_v27 = vrot.slane %v6500_v6, 2 }
 0x454   : > { %3203 = vmatpush.bf16.msra.mxu2 %v5273_v58  ;;  %3147 = vmatpush.bf16.msrb.mxu3 %v5248_v59 }
 0x455   : > { %v2773_v33 = vsel %vm616_vm4, %v2770_v13, %v2772_v27 }
 0x456   : > { %3187 = vmatpush.bf16.msrb.mxu0 %v5262_v22  ;;  %3164 = vmatpush.bf16.msrb.mxu1 %v5258_v61  ;;  %v2809_v22 = vrot.slane %v6490_v40, 4 }
 0x458   : > { %3204 = vmatpush.bf16.msra.mxu2 %v5272_v62  ;;  %3148 = vmatpush.bf16.msrb.mxu3 %v5247_v63  ;;  %v2811_v57 = vsel %vm648_vm15, %v2809_v22, %v2810_v17 }
 0x459   : > { %2767 = vrot.lane.b32.xlu1 %v2764_v31, %s6783_s28  ;;  %v2791_v31 = vsel %vm632_vm6, %v2789_v56, %v2790_v26 }
 0x45a   : > { %3165 = vmatpush.bf16.msrb.mxu1 %v5257_v0 }
 0x45b   : > { %2787 = vrot.lane.b32.xlu2 %v2784_v32, %s6783_s28 }
 0x45c   : > { %3205 = vmatpush.bf16.msra.mxu2 %v5271_v1  ;;  %3149 = vmatpush.bf16.msrb.mxu3 %v5246_v43 }
 0x45e   : > { %3166 = vmatpush.bf16.msrb.mxu1 %v5256_v5 }
 0x460   : > { %3206 = vmatpush.bf16.msra.mxu2 %v5270_v7  ;;  %3222 = vmatpush.bf16.msra.mxu3 %v5281_v8 }
 0x462   : > { %3167 = vmatpush.bf16.msrb.mxu1 %v5255_v45 }
 0x464   : > { %3223 = vmatpush.bf16.msra.mxu3 %v5280_v11 }
 0x466   : > { %3168 = vmatpush.bf16.msrb.mxu1 %v5254_v51 }
 0x468   : > { %3224 = vmatpush.bf16.msra.mxu3 %v5279_v21 }
 0x46c   : > { %3225 = vmatpush.bf16.msra.mxu3 %v5278_v25 }
 0x47d   : > { %2033 = vmax.xlane.f32.xlu0 %v2032_v38  ;;  %v2747_v38 = vrot.slane %v6490_v40, 1 }
 0x47f   : > { %v2749_v2 = vsel %vm598_vm5, %v2747_v38, %v2748_v37 }
 0x483   : > { %2036 = vmax.xlane.f32.xlu1 %v2035_v54  ;;  %v2793_v54 = vsel %vm632_vm6, %v2790_v26, %v2792_v46 }
 0x491   : > { %2058 = vrot.lane.b32.xlu0 %v5406_v60, %s6783_s28 }
 0x49c   : > { %2060 = vrot.lane.b32.xlu1 %v5408_v42, %s6783_s28 }
 0x4a5   : > { %v2744_v12 = vpop.permute.xlu2 %2743 }
 0x4a6   : > { %v2818_v48 = vsel %vm525_vm10, %v6497_v49, %v2744_v12 }
 0x4ad   : > { %v2786_v19 = vpop.permute.xlu2 %2785 }
 0x4ae   : > { %v2830_v24 = vsel %vm525_vm10, %v2771_v16, %v2786_v19 }
 0x4af   : > { %3188 = vmatmul.bf16.vlgmr.msrb.gmra.mxu0 %v2830_v24 }
 0x4b5   : > { %v2788_v28 = vpop.permute.xlu2 %2787 }
 0x4b6   : > { %v2834_v41 = vsel %vm525_vm10, %v2773_v33, %v2788_v28 }
 0x4bb   : > { %v2742_v55 = vpop.permute.xlu1 %2741 }
 0x4bc   : > { %v2815_v29 = vsel %vm525_vm10, %v6490_v40, %v2742_v55 }
 0x4bd   : > { %v2806_v32 = vpop.permute.xlu0 %2805  ;;  %3150 = vmatmul.bf16.vlgmr.msrb.gmra.mxu3 %v2815_v29 }
 0x4be   : > { %v2838_v35 = vsel %vm525_vm10, %v2791_v31, %v2806_v32 }
 0x4bf   : > { %3193 = vmatmul.bf16.gmra.mxu0 %v2834_v41  ;;  %3207 = vmatmul.bf16.vlgmr.msra.gmra.mxu2 %v2838_v35 }
 0x4c3   : > { %v2766_v39 = vpop.permute.xlu1 %2765 }
 0x4c4   : > { %v2822_v3 = vsel %vm525_vm10, %v2749_v2, %v2766_v39 }
 0x4c5   : > { %3169 = vmatmul.bf16.vlgmr.msrb.gmra.mxu1 %v2822_v3  ;;  %v2808_v47 = vpop.permute.xlu0 %2807 }
 0x4c6   : > { %v2842_v14 = vsel %vm525_vm10, %v2793_v54, %v2808_v47 }
 0x4cb   : > { %v2768_v52 = vpop.permute.xlu1 %2767 }
 0x4cc   : > { %v2826_v50 = vsel %vm525_vm10, %v2751_v53, %v2768_v52 }
 0x4cd   : > { %3155 = vmatmul.bf16.gmra.mxu3 %v2818_v48 }
 0x4cf   : > { %3212 = vmatmul.bf16.gmra.mxu2 %v2842_v14 }
 0x4d5   : > { %3174 = vmatmul.bf16.gmra.mxu1 %v2826_v50 }
 0x4dd   : > { %4938 = vmatmul.msk.bf16.vlgmr.msra.gmra.mxu3 %vm525_vm10, %v2811_v57 }
 0x4ed   : > { %4939 = vmatmul.msk.bf16.gmra.mxu3 %vm525_vm10, %v2813_v18 }
 0x4f0   : > { %v2034_v58 = vpop.xlane.xlu0 %2033 }
 0x4f1   : > { %v2038_v59 = vsub.f32 %v6468_v44, %v2034_v58  ;;  %v5399_v44 = vld [vmem:[%s6760_s11] ss:$0 sm:$0xff] }
 0x4f3   : > { %v2040_v60 = vmul.f32 1.442695, %v2038_v59 }
 0x4f5   : > { %5409 = vpow2.f32 %v2040_v60 }
 0x4f6   : > { %v2037_v61 = vpop.xlane.xlu1 %2036 }
 0x4f7   : > { %v2039_v49 = vsub.f32 %v6470_v34, %v2037_v61 }
 0x4f9   : > { %v2042_v62 = vmul.f32 1.442695, %v2039_v49 }
 0x4fb   : > { %v5410_v40 = vpop.eup %5409  ;;  %5411 = vpow2.f32 %v2042_v62 }
 0x4fc   : > { %v2044_v63 = vsel %vm525_vm10, %v5410_v40, 0.0 }
 0x4fd   : > { %2045 = vadd.xlane.f32.xlu2 %v2044_v63 }
 0x501   : > { %v5412_v0 = vpop.eup %5411 }
 0x502   : > { %v2047_v6 = vsel %vm525_vm10, %v5412_v0, 0.0 }
 0x503   : > { %v2059_v57 = vpop.permute.xlu0 %2058 }
 0x505   : > { %2048 = vadd.xlane.f32.xlu2 %v2047_v6 }
 0x50e   : > { %v2061_v58 = vpop.permute.xlu1 %2060 }
 0x52c   : > { %v3189_v34 = vpop.f32.mrf.mxu0 }
 0x534   : > { %v3191_v15 = vpop.f32.mrf.mxu0 }
 0x53c   : > { %v3194_v29 = vpop.f32.mrf.mxu0 }
 0x540   : > { %v3151_v1 = vpop.f32.mrf.mxu3 }
 0x541   : > { %v3152_v7 = vadd.f32 %v5399_v44, %v3151_v1 }
 0x542   : > { %v3170_v5 = vpop.f32.mrf.mxu1  ;;  %v3208_v45 = vpop.f32.mrf.mxu2 }
 0x543   : > { %v3171_v8 = vadd.f32 %v3170_v5, %v3152_v7 }
 0x544   : > { %v3196_v47 = vpop.f32.mrf.mxu0 }
 0x545   : > { %v3190_v12 = vadd.f32 %v3189_v34, %v3171_v8 }
 0x547   : > { %v3209_v16 = vadd.f32 %v3208_v45, %v3190_v12 }
 0x548   : > { %v3153_v43 = vpop.f32.mrf.mxu3 }
 0x549   : > { %v3154_v13 = vadd.f32 %v5399_v44, %v3153_v43 }
 0x54a   : > { %v3172_v51 = vpop.f32.mrf.mxu1  ;;  %v3210_v25 = vpop.f32.mrf.mxu2 }
 0x54b   : > { %v3173_v19 = vadd.f32 %v3172_v51, %v3154_v13 }
 0x54d   : > { %v3192_v27 = vadd.f32 %v3191_v15, %v3173_v19 }
 0x54f   : > { %v3211_v55 = vadd.f32 %v3210_v25, %v3192_v27 }
 0x550   : > { %v3156_v42 = vpop.f32.mrf.mxu3 }
 0x551   : > { %v3157_v28 = vadd.f32 %v5399_v44, %v3156_v42 }
 0x552   : > { %v3175_v26 = vpop.f32.mrf.mxu1  ;;  %v3213_v41 = vpop.f32.mrf.mxu2 }
 0x553   : > { %v3176_v56 = vadd.f32 %v3175_v26, %v3157_v28 }
 0x555   : > { %v3195_v33 = vadd.f32 %v3194_v29, %v3176_v56 }
 0x557   : > { %v3214_v38 = vadd.f32 %v3213_v41, %v3195_v33 }
 0x558   : > { %v3158_v11 = vpop.f32.mrf.mxu3 }
 0x559   : > { %v3159_v35 = vadd.f32 %v5399_v44, %v3158_v11 }
 0x55a   : > { %v3177_v37 = vpop.f32.mrf.mxu1  ;;  %v3215_v54 = vpop.f32.mrf.mxu2 }
 0x55b   : > { %v3178_v2 = vadd.f32 %v3177_v37, %v3159_v35 }
 0x55d   : > { %v3197_v48 = vadd.f32 %v3196_v47, %v3178_v2 }
 0x55f   : > { %v3216_v14 = vadd.f32 %v3215_v54, %v3197_v48 }
 0x560   : > { %v3227_v21 = vpop.f32.mrf.mxu3 }
 0x561   : > { %v6569_v24 = vadd.f32 %v3227_v21, %v3209_v16 }
 0x563   : > { %3308 = vrot.lane.b32.xlu2 %v6569_v24, %s6783_s28 }
 0x568   : > { %v3229_v31 = vpop.f32.mrf.mxu3 }
 0x569   : > { %v6573_v32 = vadd.f32 %v3229_v31, %v3211_v55 }
 0x56b   : > { %3310 = vrot.lane.b32.xlu0 %v6573_v32, %s6783_s28 }
 0x570   : > { %v2046_v39 = vpop.xlane.xlu2 %2045  ;;  %v3232_v3 = vpop.f32.mrf.mxu3 }
 0x571   : > { %v6577_v46 = vadd.f32 %v3232_v3, %v3214_v38  ;;  %5413 = vrcp.f32 %v2046_v39 }
 0x573   : > { %3312 = vrot.lane.b32.xlu1 %v6577_v46, %s6783_s28 }
 0x577   : > { %v5414_v53 = vpop.eup %5413 }
 0x578   : > { %v3234_v20 = vpop.f32.mrf.mxu3  ;;  %v2049_v52 = vpop.xlane.xlu2 %2048  ;;  %v2052_v17 = vmul.f32 %v5414_v53, %v5410_v40 }
 0x579   : > { %v6581_v50 = vadd.f32 %v3234_v20, %v3216_v14  ;;  %5415 = vrcp.f32 %v2049_v52 }
 0x57a   : > { %v2064_v23 = vmul.f32 %v2059_v57, %v2052_v17 }
 0x57b   : > { %3314 = vrot.lane.b32.xlu0 %v6581_v50, %s6783_s28 }
 0x57c   : > { %v2066_v60 = vsel %vm525_vm10, %v2064_v23, 0.0 }
 0x57f   : > { %v5416_v22 = vpop.eup %5415 }
 0x580   : > { %v2053_v18 = vmul.f32 %v5416_v22, %v5412_v0 }
 0x582   : > { %v2065_v59 = vmul.f32 %v2061_v58, %v2053_v18 }
 0x584   : > { %v2067_v61 = vsel %vm525_vm10, %v2065_v59, 0.0 }
 0x585   : > { %v2068_v49 = vadd.f32 %v2067_v61, %v2066_v60 }
 0x587   : > { %v2069_v62 = vrot.slane %v2068_v49, 4 }
 0x589   : > { %v2070_v63 = vadd.f32 %v2069_v62, %v2068_v49 }
 0x58b   : > { %v2071_v6 = vrot.slane %v2070_v63, 2 }
 0x58d   : > { %v2072_v1 = vadd.f32 %v2071_v6, %v2070_v63 }
 0x58f   : > { %v2073_v43 = vrot.slane %v2072_v1, 1 }
 0x591   : > { %v2074_v5 = vadd.f32 %v2073_v43, %v2072_v1 }
 0x593   : > { %v2075_v44 = vmul.f32 %v2074_v5, %v6161_v4 }
 0x595   : > { %v2076_v40 = vsub.f32 %v2064_v23, %v2075_v44  ;;  %v2077_v42 = vsub.f32 %v2065_v59, %v2075_v44 }
 0x597   : > { %v2078_v7 = vmul.f32 %v2076_v40, %v2076_v40  ;;  %v2079_v34 = vmul.f32 %v2077_v42, %v2077_v42 }
 0x599   : > { %v2080_v0 = vsel %vm525_vm10, %v2078_v7, 0.0  ;;  %v2081_v8 = vsel %vm525_vm10, %v2079_v34, 0.0 }
 0x59a   : > { %v2082_v45 = vadd.f32 %v2081_v8, %v2080_v0 }
 0x59c   : > { %v2083_v51 = vrot.slane %v2082_v45, 4 }
 0x59e   : > { %v2084_v11 = vadd.f32 %v2083_v51, %v2082_v45 }
 0x5a0   : > { %v2085_v12 = vrot.slane %v2084_v11, 2 }
 0x5a2   : > { %v2086_v13 = vadd.f32 %v2085_v12, %v2084_v11  ;;  %v5297_v12 = vld [vmem:[#allocation5 + $0x78] sm:$0xff] }
 0x5a3   : > { %3745 = vmatpush.bf16.msra.mxu0 %v5297_v12  ;;  %v5310_v12 = vld [vmem:[#allocation5 + $0xe0] sm:$0xff] }
 0x5a4   : > { %v2087_v15 = vrot.slane %v2086_v13, 1 }
 0x5a6   : > { %v2088_v16 = vadd.f32 %v2087_v15, %v2086_v13  ;;  %v5296_v15 = vld [vmem:[#allocation5 + $0x70] sm:$0xff] }
 0x5a7   : > { %3746 = vmatpush.bf16.msra.mxu0 %v5296_v15  ;;  %v5283_v15 = vld [vmem:[#allocation5 + $0x8] sm:$0xff] }
 0x5a8   : > { %v2089_v19 = vmul.f32 %v2088_v16, %v6161_v4  ;;  %v5289_v16 = vld [vmem:[#allocation5 + $0x38] sm:$0xff] }
 0x5a9   : > { %3726 = vmatpush.bf16.msra.mxu1 %v5289_v16  ;;  %v5309_v16 = vld [vmem:[#allocation5 + $0xd8] sm:$0xff] }
 0x5aa   : > { %v2090_v21 = vadd.f32 1e-05, %v2089_v19  ;;  %v5305_v19 = vld [vmem:[#allocation5 + $0xb8] sm:$0xff] }
 0x5ab   : > { %3764 = vmatpush.bf16.msrb.mxu2 %v5305_v19  ;;  %v5317_v19 = vld [vmem:[#allocation5 + $0x118] sm:$0xff] }
 0x5ac   : > { %5417 = vrsqrt.f32 %v2090_v21  ;;  %vm2097_vm2 = vweird.f32 %v2090_v21 }
 0x5b2   : > { %v5418_v25 = vpop.eup %5417 }
 0x5b3   : > { %v2092_v26 = vmul.f32 %v5418_v25, %v2090_v21  ;;  %vm2098_vm1 = vweird.f32 %v5418_v25 }
 0x5b4   : > { %vm2099_vm3 = vmor %vm2097_vm2, %vm2098_vm1 }
 0x5b5   : > { %v2093_v27 = vmul.f32 %v5418_v25, %v2092_v26 }
 0x5b7   : > { %v2094_v28 = vmul.f32 0.5, %v2093_v27  ;;  %v5288_v27 = vld [vmem:[#allocation5 + $0x30] sm:$0xff] }
 0x5b8   : > { %3727 = vmatpush.bf16.msra.mxu1 %v5288_v27  ;;  %v5298_v27 = vld [vmem:[#allocation5 + $0x80] sm:$0xff] }
 0x5b9   : > { %v2095_v55 = vsub.f32 1.5, %v2094_v28  ;;  %v5304_v28 = vld [vmem:[#allocation5 + $0xb0] sm:$0xff] }
 0x5ba   : > { %3765 = vmatpush.bf16.msrb.mxu2 %v5304_v28  ;;  %v5307_v28 = vld [vmem:[#allocation5 + $0xc8] sm:$0xff] }
 0x5bb   : > { %v2096_v56 = vmul.f32 %v5418_v25, %v2095_v55 }
 0x5bd   : > { %v2100_v29 = vsel %vm2099_vm3, %v5418_v25, %v2096_v56 }
 0x5be   : > { %v2101_v31 = vmul.f32 %v2100_v29, %v2076_v40  ;;  %v2102_v20 = vmul.f32 %v2100_v29, %v2077_v42  ;;  %v3309_v42 = vpop.permute.xlu2 %3308 }
 0x5c0   : > { %v3239_v33 = vrot.slane %v2101_v31, 1  ;;  %v3240_v35 = vrot.slane %v2101_v31, 2  ;;  %v3241_v41 = vrot.slane %v2101_v31, 3  ;;  %v3242_v37 = vrot.slane %v2101_v31, 4 }
 0x5c1   : > { %v3243_v38 = vrot.slane %v2101_v31, 5  ;;  %v3244_v2 = vrot.slane %v2101_v31, 6  ;;  %v3253_v4 = vperm.slane %v2101_v31, 0  ;;  %v3245_v3 = vrot.slane %v2101_v31, 7 }
 0x5c2   : > { %v3254_v39 = vperm.slane %v3239_v33, 0  ;;  %v3255_v47 = vperm.slane %v3240_v35, 0  ;;  %v3256_v48 = vperm.slane %v3241_v41, 0  ;;  %v3257_v54 = vperm.slane %v3242_v37, 0  ;;  %v5294_v41 = vld [vmem:[#allocation5 + $0x60] sm:$0xff] }
 0x5c3   : > { %3269 = vst [vmem:[#allocation1] ss:$4 sm:$0xff] %v3253_v4  ;;  %v3258_v14 = vperm.slane %v3243_v38, 0  ;;  %v3259_v52 = vperm.slane %v3244_v2, 0  ;;  %v3260_v53 = vperm.slane %v3245_v3, 0  ;;  %v3246_v17 = vrot.slane %v2102_v20, 1 }
 0x5c4   : > { %3271 = vst [vmem:[#allocation1 + $0x1] ss:$4 sm:$0xff] %v3254_v39  ;;  %v3247_v22 = vrot.slane %v2102_v20, 2  ;;  %v3248_v57 = vrot.slane %v2102_v20, 3  ;;  %v3249_v23 = vrot.slane %v2102_v20, 4  ;;  %v3261_v18 = vperm.slane %v2102_v20, 0 }
 0x5c5   : > { %3273 = vst [vmem:[#allocation1 + $0x2] ss:$4 sm:$0xff] %v3255_v47  ;;  %v3250_v58 = vrot.slane %v2102_v20, 5  ;;  %v3262_v59 = vperm.slane %v3246_v17, 0  ;;  %v3251_v61 = vrot.slane %v2102_v20, 6  ;;  %v3252_v62 = vrot.slane %v2102_v20, 7 }
 0x5c6   : > { %3275 = vst [vmem:[#allocation1 + $0x3] ss:$4 sm:$0xff] %v3256_v48  ;;  %v3263_v49 = vperm.slane %v3247_v22, 0  ;;  %v3264_v63 = vperm.slane %v3248_v57, 0  ;;  %v3265_v6 = vperm.slane %v3249_v23, 0  ;;  %v5292_v22 = vld [vmem:[#allocation5 + $0x50] sm:$0xff] }
 0x5c7   : > { %3277 = vst [vmem:[#allocation1 + $0x20] ss:$4 sm:$0xff] %v3257_v54  ;;  %v3266_v1 = vperm.slane %v3250_v58, 0  ;;  %v3267_v5 = vperm.slane %v3251_v61, 0  ;;  %v3268_v44 = vperm.slane %v3252_v62, 0 }
 0x5c8   : > { %3279 = vst [vmem:[#allocation1 + $0x21] ss:$4 sm:$0xff] %v3258_v14 }
 0x5c9   : > { %3281 = vst [vmem:[#allocation1 + $0x22] ss:$4 sm:$0xff] %v3259_v52  ;;  %v5293_v52 = vld [vmem:[#allocation5 + $0x58] sm:$0xff] }
 0x5ca   : > { %3283 = vst [vmem:[#allocation1 + $0x23] ss:$4 sm:$0xff] %v3260_v53 }
 0x5cd   : > { %v3284_v60 = vld.sshfl [vmem:[#allocation1] sm:$0xff pattern:$0x73625140] }
 0x5ce   : > { %3286 = vst [vmem:[#allocation1] ss:$4 sm:$0xff] %v3261_v18  ;;  %v3300_v40 = vmul.f32 %v3284_v60, %v6569_v24  ;;  %v5291_v60 = vld [vmem:[#allocation5 + $0x48] sm:$0xff] }
 0x5cf   : > { %3287 = vst [vmem:[#allocation1 + $0x1] ss:$4 sm:$0xff] %v3262_v59 }
 0x5d0   : > { %3288 = vst [vmem:[#allocation1 + $0x2] ss:$4 sm:$0xff] %v3263_v49  ;;  %v3320_v7 = vadd.f32 %v3309_v42, %v3300_v40  ;;  %v5313_v40 = vld [vmem:[#allocation5 + $0xf8] sm:$0xff]  ;;  %v5303_v42 = vld [vmem:[#allocation5 + $0xa8] sm:$0xff] }
 0x5d1   : > { %3289 = vst [vmem:[#allocation1 + $0x3] ss:$4 sm:$0xff] %v3264_v63  ;;  %v3285_v43 = vld.sshfl [vmem:[#allocation1 + $0x20] sm:$0xff pattern:$0x73625140]  ;;  %v5290_v63 = vld [vmem:[#allocation5 + $0x40] sm:$0xff]  ;;  %3783 = vmatpush.bf16.msrb.mxu3 %v5313_v40  ;;  %3766 = vmatpush.bf16.msrb.mxu2 %v5303_v42 }
 0x5d2   : > { %3290 = vst [vmem:[#allocation1 + $0x20] ss:$4 sm:$0xff] %v3265_v6  ;;  %v3324_v34 = vpack.c.bf16 %v3320_v7, %v3320_v7  ;;  %v3301_v8 = vmul.f32 %v3285_v43, %v6573_v32  ;;  %v5295_v32 = vld [vmem:[#allocation5 + $0x68] sm:$0xff]  ;;  %v5286_v7 = vld [vmem:[#allocation5 + $0x20] sm:$0xff] }
 0x5d3   : > { %3291 = vst [vmem:[#allocation1 + $0x21] ss:$4 sm:$0xff] %v3266_v1  ;;  %3747 = vmatpush.bf16.msra.mxu0 %v5295_v32 }
 0x5d4   : > { %3292 = vst [vmem:[#allocation1 + $0x22] ss:$4 sm:$0xff] %v3267_v5  ;;  %v3332_v51 = vunpack.c.l.b16 %v3324_v34  ;;  %v5312_v34 = vld [vmem:[#allocation5 + $0xf0] sm:$0xff] }
 0x5d5   : > { %3293 = vst [vmem:[#allocation1 + $0x23] ss:$4 sm:$0xff] %v3268_v44  ;;  %v5287_v44 = vld [vmem:[#allocation5 + $0x28] sm:$0xff]  ;;  %3784 = vmatpush.bf16.msrb.mxu3 %v5312_v34 }
 0x5d6   : > { %v3336_v24 = vpack.c.b16 %v3332_v51, %v3332_v51  ;;  %3728 = vmatpush.bf16.msra.mxu1 %v5287_v44  ;;  %v5301_v51 = vld [vmem:[#allocation5 + $0x98] sm:$0xff] }
 0x5d7   : > { %3748 = vmatpush.bf16.msra.mxu0 %v5294_v41 }
 0x5d8   : > { %v3294_v45 = vld.sshfl [vmem:[#allocation1] sm:$0xff pattern:$0x73625140]  ;;  %v6595_v29 = vsel %vm648_vm15, 0, %v3336_v24  ;;  %v5282_v24 = vld [vmem:[#allocation5] sm:$0xff] }
 0x5d9   : > { %v3302_v13 = vmul.f32 %v3294_v45, %v6577_v46  ;;  %v3375_v38 = vrot.slane %v6595_v29, 5  ;;  %v3360_v2 = vrot.slane %v6595_v29, 3  ;;  %v3346_v4 = vrot.slane %v6595_v29, 1  ;;  %v5311_v45 = vld [vmem:[#allocation5 + $0xe8] sm:$0xff] }
 0x5da   : > { %v3390_v18 = vrot.slane %v6595_v29, 7  ;;  %3729 = vmatpush.bf16.msra.mxu1 %v5286_v7  ;;  %3785 = vmatpush.bf16.msrb.mxu3 %v5311_v45 }
 0x5db   : > { %3749 = vmatpush.bf16.msra.mxu0 %v5293_v52 }
 0x5dc   : > { %v3295_v56 = vld.sshfl [vmem:[#allocation1 + $0x20] sm:$0xff pattern:$0x73625140] }
 0x5dd   : > { %v3311_v0 = vpop.permute.xlu0 %3310  ;;  %v3303_v35 = vmul.f32 %v3295_v56, %v6581_v50  ;;  %v5306_v56 = vld [vmem:[#allocation5 + $0xc0] sm:$0xff] }
 0x5de   : > { %v3321_v11 = vadd.f32 %v3311_v0, %v3301_v8  ;;  %v5302_v0 = vld [vmem:[#allocation5 + $0xa0] sm:$0xff]  ;;  %v5285_v8 = vld [vmem:[#allocation5 + $0x18] sm:$0xff]  ;;  %3786 = vmatpush.bf16.msrb.mxu3 %v5310_v12 }
 0x5df   : > { %3750 = vmatpush.bf16.msra.mxu0 %v5292_v22  ;;  %3767 = vmatpush.bf16.msrb.mxu2 %v5302_v0 }
 0x5e0   : > { %v3325_v25 = vpack.c.bf16 %v3321_v11, %v3321_v11  ;;  %3730 = vmatpush.bf16.msra.mxu1 %v5285_v8  ;;  %v5284_v11 = vld [vmem:[#allocation5 + $0x10] sm:$0xff] }
 0x5e2   : > { %v3333_v46 = vunpack.c.l.b16 %v3325_v25  ;;  %3787 = vmatpush.bf16.msrb.mxu3 %v5309_v16  ;;  %v5308_v25 = vld [vmem:[#allocation5 + $0xd0] sm:$0xff] }
 0x5e3   : > { %3751 = vmatpush.bf16.msra.mxu0 %v5291_v60  ;;  %3768 = vmatpush.bf16.msrb.mxu2 %v5301_v51 }
 0x5e4   : > { %3731 = vmatpush.bf16.msra.mxu1 %v5284_v11 }
 0x5e5   : > { %v3313_v21 = vpop.permute.xlu1 %3312 }
 0x5e6   : > { %v3322_v26 = vadd.f32 %v3313_v21, %v3302_v13  ;;  %v5300_v13 = vld [vmem:[#allocation5 + $0x90] sm:$0xff]  ;;  %v5299_v21 = vld [vmem:[#allocation5 + $0x88] sm:$0xff]  ;;  %3788 = vmatpush.bf16.msrb.mxu3 %v5308_v25 }
 0x5e7   : > { %3752 = vmatpush.bf16.msra.mxu0 %v5290_v63  ;;  %3769 = vmatpush.bf16.msrb.mxu2 %v5300_v13 }
 0x5e8   : > { %v3326_v55 = vpack.c.bf16 %v3322_v26, %v3322_v26  ;;  %3732 = vmatpush.bf16.msra.mxu1 %v5283_v15  ;;  %v5316_v26 = vld [vmem:[#allocation5 + $0x110] sm:$0xff] }
 0x5ea   : > { %v3334_v31 = vunpack.c.l.b16 %v3326_v55  ;;  %v5315_v55 = vld [vmem:[#allocation5 + $0x108] sm:$0xff]  ;;  %3789 = vmatpush.bf16.msrb.mxu3 %v5307_v28 }
 0x5eb   : > { %3806 = vmatpush.bf16.msrb.mxu0 %v5317_v19  ;;  %3770 = vmatpush.bf16.msrb.mxu2 %v5299_v21 }
 0x5ec   : > { %v6597_v33 = vpack.c.b16 %v3334_v31, %v3333_v46  ;;  %3733 = vmatpush.bf16.msra.mxu1 %v5282_v24  ;;  %v5314_v46 = vld [vmem:[#allocation5 + $0x100] sm:$0xff]  ;;  %v3355_v31 = vrot.slane %v6595_v29, 2 }
 0x5ed   : > { %v3315_v37 = vpop.permute.xlu0 %3314 }
 0x5ee   : > { %v3323_v39 = vadd.f32 %v3315_v37, %v3303_v35  ;;  %v3376_v3 = vrot.slane %v6597_v33, 5  ;;  %v3361_v47 = vrot.slane %v6597_v33, 3  ;;  %v3347_v48 = vrot.slane %v6597_v33, 1  ;;  %3790 = vmatpush.bf16.msrb.mxu3 %v5306_v56 }
 0x5ef   : > { %v3391_v57 = vrot.slane %v6597_v33, 7  ;;  %3807 = vmatpush.bf16.msrb.mxu0 %v5316_v26  ;;  %3771 = vmatpush.bf16.msrb.mxu2 %v5298_v27  ;;  %v3356_v32 = vrot.slane %v6597_v33, 2  ;;  %v3385_v52 = vrot.slane %v6597_v33, 6 }
 0x5f0   : > { %v3327_v54 = vpack.c.bf16 %v3323_v39, %v3323_v39  ;;  %v3377_v50 = vsel %vm3374_vm7, %v3375_v38, %v3376_v3  ;;  %v3362_v14 = vsel %vm632_vm6, %v3360_v2, %v3361_v47  ;;  %v3348_v20 = vsel %vm598_vm5, %v3346_v4, %v3347_v48  ;;  %5319 = vmatpush.bf16.msrb.mxu1 %v5317_v19 }
 0x5f1   : > { %3380 = vrot.lane.b32.xlu0 %v3377_v50, %s6783_s28  ;;  %3365 = vrot.lane.b32.xlu2 %v3362_v14, %s6783_s28  ;;  %v3392_v61 = vsel %vm3389_vm13, %v3390_v18, %v3391_v57  ;;  %v3357_v41 = vsel %vm616_vm4, %v3355_v31, %v3356_v32 }
 0x5f2   : > { %v3335_v53 = vunpack.c.l.b16 %v3327_v54  ;;  %3351 = vrot.lane.b32.xlu1 %v3348_v20, %s6783_s28 }
 0x5f3   : > { %3808 = vmatpush.bf16.msrb.mxu0 %v5315_v55 }
 0x5f4   : > { %v3338_v17 = vpack.c.b16 %v3335_v53, %v3335_v53  ;;  %5320 = vmatpush.bf16.msrb.mxu1 %v5316_v26  ;;  %v3384_v53 = vrot.slane %v6595_v29, 6 }
 0x5f6   : > { %v6614_v23 = vsel %vm648_vm15, %v3338_v17, 0  ;;  %v3386_v17 = vsel %vm578_vm0, %v3384_v53, %v3385_v52 }
 0x5f7   : > { %v3363_v58 = vrot.slane %v6614_v23, 3  ;;  %v3349_v59 = vrot.slane %v6614_v23, 1  ;;  %v3393_v6 = vrot.slane %v6614_v23, 7  ;;  %v3378_v1 = vrot.slane %v6614_v23, 5  ;;  %3809 = vmatpush.bf16.msrb.mxu0 %v5314_v46 }
 0x5f8   : > { %5321 = vmatpush.bf16.msrb.mxu1 %v5315_v55  ;;  %v3358_v38 = vrot.slane %v6614_v23, 2  ;;  %v3372_v18 = vrot.slane %v6614_v23, 4 }
 0x5f9   : > { %v3364_v49 = vsel %vm632_vm6, %v3361_v47, %v3363_v58  ;;  %v3350_v62 = vsel %vm598_vm5, %v3347_v48, %v3349_v59  ;;  %v3394_v43 = vsel %vm3389_vm13, %v3391_v57, %v3393_v6  ;;  %v3379_v5 = vsel %vm3374_vm7, %v3376_v3, %v3378_v1 }
 0x5fa   : > { %3395 = vrot.lane.b32.xlu1 %v3392_v61, %s6783_s28  ;;  %3367 = vrot.lane.b32.xlu2 %v3364_v49, %s6783_s28  ;;  %v3359_v4 = vsel %vm616_vm4, %v3356_v32, %v3358_v38  ;;  %v3370_v3 = vrot.slane %v6597_v33, 4  ;;  %v3369_v47 = vrot.slane %v6595_v29, 4  ;;  %v3387_v49 = vrot.slane %v6614_v23, 6 }
 0x5fb   : > { %3353 = vrot.lane.b32.xlu0 %v3350_v62, %s6783_s28 }
 0x5fc   : > { %5322 = vmatpush.bf16.msrb.mxu1 %v5314_v46  ;;  %v3371_v54 = vsel %vm648_vm15, %v3369_v47, %v3370_v3  ;;  %v3373_v60 = vsel %vm648_vm15, %v3370_v3, %v3372_v18  ;;  %v3388_v63 = vsel %vm578_vm0, %v3385_v52, %v3387_v49 }
 0x602   : > { %3397 = vrot.lane.b32.xlu1 %v3394_v43, %s6783_s28  ;;  %3382 = vrot.lane.b32.xlu2 %v3379_v5, %s6783_s28 }
 0x64b   : > { %v3366_v35 = vpop.permute.xlu2 %3365 }
 0x64c   : > { %v3408_v37 = vsel %vm525_vm10, %v3357_v41, %v3366_v35 }
 0x64d   : > { %3753 = vmatmul.bf16.vlgmr.msra.gmra.mxu0 %v3408_v37 }
 0x654   : > { %v3368_v2 = vpop.permute.xlu2 %3367 }
 0x655   : > { %v3412_v39 = vsel %vm525_vm10, %v3359_v4, %v3368_v2 }
 0x65c   : > { %v3383_v58 = vpop.permute.xlu2 %3382 }
 0x65d   : > { %3758 = vmatmul.bf16.gmra.mxu0 %v3412_v39  ;;  %v3420_v61 = vsel %vm525_vm10, %v3373_v60, %v3383_v58 }
 0x663   : > { %v3381_v48 = vpop.permute.xlu0 %3380 }
 0x664   : > { %v3416_v50 = vsel %vm525_vm10, %v3371_v54, %v3381_v48  ;;  %v3352_v14 = vpop.permute.xlu1 %3351 }
 0x665   : > { %v3400_v20 = vsel %vm525_vm10, %v6595_v29, %v3352_v14  ;;  %3772 = vmatmul.bf16.vlgmr.msrb.gmra.mxu2 %v3416_v50 }
 0x666   : > { %3734 = vmatmul.bf16.vlgmr.msra.gmra.mxu1 %v3400_v20 }
 0x66c   : > { %v3396_v22 = vpop.permute.xlu1 %3395 }
 0x66d   : > { %v3424_v57 = vsel %vm525_vm10, %v3386_v17, %v3396_v22  ;;  %5084 = vmatmul.msk.bf16.vlgmr.msrb.gmra.mxu0 %vm525_vm10, %v6597_v33  ;;  %v3354_v59 = vpop.permute.xlu0 %3353 }
 0x66e   : > { %3791 = vmatmul.bf16.vlgmr.msrb.gmra.mxu3 %v3424_v57  ;;  %v3404_v29 = vsel %vm525_vm10, %v6597_v33, %v3354_v59  ;;  %v5400_v33 = vld [vmem:[%s6762_s13] ss:$0 sm:$0xff] }
 0x674   : > { %v3398_v62 = vpop.permute.xlu1 %3397 }
 0x675   : > { %3777 = vmatmul.bf16.gmra.mxu2 %v3420_v61  ;;  %v3428_v6 = vsel %vm525_vm10, %v3388_v63, %v3398_v62 }
 0x676   : > { %3739 = vmatmul.bf16.gmra.mxu1 %v3404_v29 }
 0x67e   : > { %3796 = vmatmul.bf16.gmra.mxu3 %v3428_v6 }
 0x686   : > { %5085 = vmatmul.msk.bf16.vlgmr.msrb.gmra.mxu1 %vm525_vm10, %v6614_v23 }
 0x6ca   : > { %v3754_v1 = vpop.f32.mrf.mxu0 }
 0x6d2   : > { %v3756_v43 = vpop.f32.mrf.mxu0 }
 0x6da   : > { %v3759_v5 = vpop.f32.mrf.mxu0 }
 0x6e2   : > { %v3761_v40 = vpop.f32.mrf.mxu0 }
 0x6e3   : > { %v3735_v44 = vpop.f32.mrf.mxu1 }
 0x6e4   : > { %v3736_v7 = vadd.f32 %v5400_v33, %v3735_v44 }
 0x6e6   : > { %v3755_v0 = vadd.f32 %v3754_v1, %v3736_v7 }
 0x6e8   : > { %v3773_v42 = vpop.f32.mrf.mxu2 }
 0x6e9   : > { %v3774_v8 = vadd.f32 %v3773_v42, %v3755_v0 }
 0x6ea   : > { %v3811_v45 = vpop.f32.mrf.mxu0 }
 0x6eb   : > { %v3737_v34 = vpop.f32.mrf.mxu1 }
 0x6ec   : > { %v3738_v12 = vadd.f32 %v5400_v33, %v3737_v34 }
 0x6ee   : > { %v3757_v16 = vadd.f32 %v3756_v43, %v3738_v12 }
 0x6f0   : > { %v3775_v51 = vpop.f32.mrf.mxu2 }
 0x6f1   : > { %v3792_v11 = vpop.f32.mrf.mxu3  ;;  %v3776_v21 = vadd.f32 %v3775_v51, %v3757_v16 }
 0x6f2   : > { %v3793_v13 = vadd.f32 %v3792_v11, %v3774_v8  ;;  %v3813_v26 = vpop.f32.mrf.mxu0  ;;  %v5443_v11 = vld [vmem:[%s6147_s19] sm:$0xff] }
 0x6f3   : > { %v3740_v23 = vpop.f32.mrf.mxu1  ;;  %v3891_v12 = vrot.slane %v5443_v11, 1  ;;  %v3905_v16 = vperm.slane %v5443_v11, 0 }
 0x6f4   : > { %v3812_v15 = vadd.f32 %v3811_v45, %v3793_v13  ;;  %v3741_v25 = vadd.f32 %v5400_v33, %v3740_v23  ;;  %v3892_v13 = vrot.slane %v5443_v11, 2  ;;  %v3893_v23 = vrot.slane %v5443_v11, 3 }
 0x6f6   : > { %v3821_v19 = vsel %vm525_vm10, %v3812_v15, -inf  ;;  %v3760_v56 = vadd.f32 %v3759_v5, %v3741_v25 }
 0x6f7   : > { %3822 = vmax.xlane.f32.xlu0 %v3821_v19 }
 0x6f8   : > { %v3778_v28 = vpop.f32.mrf.mxu2 }
 0x6f9   : > { %v3794_v24 = vpop.f32.mrf.mxu3  ;;  %v3779_v31 = vadd.f32 %v3778_v28, %v3760_v56  ;;  %v3895_v56 = vrot.slane %v5443_v11, 5 }
 0x6fa   : > { %v3795_v27 = vadd.f32 %v3794_v24, %v3776_v21  ;;  %v3907_v21 = vperm.slane %v3892_v13, 0  ;;  %v3908_v24 = vperm.slane %v3893_v23, 0 }
 0x6fb   : > { %v3742_v55 = vpop.f32.mrf.mxu1 }
 0x6fc   : > { %v3814_v32 = vadd.f32 %v3813_v26, %v3795_v27  ;;  %v3743_v41 = vadd.f32 %v5400_v33, %v3742_v55  ;;  %v3894_v26 = vrot.slane %v5443_v11, 4 }
 0x6fe   : > { %v3824_v46 = vsel %vm525_vm10, %v3814_v32, -inf  ;;  %v3762_v39 = vadd.f32 %v3761_v40, %v3743_v41 }
 0x6ff   : > { %3825 = vmax.xlane.f32.xlu2 %v3824_v46  ;;  %v3896_v46 = vrot.slane %v5443_v11, 6 }
 0x700   : > { %v3780_v4 = vpop.f32.mrf.mxu2 }
 0x701   : > { %v3797_v35 = vpop.f32.mrf.mxu3  ;;  %v3781_v47 = vadd.f32 %v3780_v4, %v3762_v39 }
 0x702   : > { %v3798_v37 = vadd.f32 %v3797_v35, %v3779_v31 }
 0x703   : > { %v3816_v38 = vpop.f32.mrf.mxu1 }
 0x704   : > { %v3817_v2 = vadd.f32 %v3816_v38, %v3798_v37  ;;  %v3897_v37 = vrot.slane %v5443_v11, 7 }
 0x706   : > { %v3827_v3 = vsel %vm525_vm10, %v3817_v2, -inf  ;;  %5419 = vtanh.f32 %v3817_v2 }
 0x707   : > { %3828 = vmax.xlane.f32.xlu1 %v3827_v3  ;;  %5421 = vtanh.f32 %v3812_v15  ;;  %v3910_v3 = vperm.slane %v3895_v56, 0 }
 0x708   : > { %5423 = vtanh.f32 %v3814_v32 }
 0x709   : > { %v3799_v48 = vpop.f32.mrf.mxu3 }
 0x70a   : > { %v3800_v54 = vadd.f32 %v3799_v48, %v3781_v47  ;;  %v3911_v47 = vperm.slane %v3896_v46, 0  ;;  %v3912_v48 = vperm.slane %v3897_v37, 0 }
 0x70b   : > { %v3818_v50 = vpop.f32.mrf.mxu1 }
 0x70c   : > { %v3819_v14 = vadd.f32 %v3818_v50, %v3800_v54  ;;  %v5420_v52 = vpop.eup %5419 }
 0x70d   : > { %v5422_v53 = vpop.eup %5421 }
 0x70e   : > { %v3830_v20 = vsel %vm525_vm10, %v3819_v14, -inf  ;;  %v5424_v17 = vpop.eup %5423  ;;  %5425 = vtanh.f32 %v3819_v14 }
 0x70f   : > { %3831 = vmax.xlane.f32.xlu0 %v3830_v20 }
 0x714   : > { %v5426_v22 = vpop.eup %5425 }
 0x717   : > { %3877 = vrot.lane.b32.xlu2 %v5420_v52, %s6783_s28 }
 0x720   : > { %3873 = vrot.lane.b32.xlu1 %v5422_v53, %s6783_s28  ;;  %v5444_v53 = vld [vmem:[%s6147_s19 + $0x8] sm:$0xff]  ;;  %s6704_s19 = scalar_lea.vmem [#allocation7], %s4172_s29  ;;  %s5525_s29 = scalar_lea.hbm %s6763_s14, 64 }
 0x721   : > { %v3904_v13 = vrot.slane %v5444_v53, 7  ;;  %s4065_s27 = sshll.u32 %s6704_s19, 4  ;;  %s4066_s27 = int_to_ptr.vmem [resolvable:$true] %s4065_s27 }
 0x723   : > { %3875 = vrot.lane.b32.xlu0 %v5424_v17, %s6783_s28  ;;  %v3898_v17 = vrot.slane %v5444_v53, 1 }
 0x728   : > { %4032 = vrot.lane.b32.xlu1 %v6475_v9, %s6783_s28 }
 0x72b   : > { %3879 = vrot.lane.b32.xlu0 %v5426_v22, %s6783_s28  ;;  %v3899_v22 = vrot.slane %v5444_v53, 2 }
 0x76a   : > { %v3823_v57 = vpop.xlane.xlu0 %3822 }
 0x76b   : > { %v3833_v18 = vsub.f32 %v3812_v15, %v3823_v57 }
 0x76d   : > { %v3837_v58 = vmul.f32 1.442695, %v3833_v18 }
 0x76f   : > { %5427 = vpow2.f32 %v3837_v58 }
 0x772   : > { %v3826_v59 = vpop.xlane.xlu2 %3825 }
 0x773   : > { %v3834_v60 = vsub.f32 %v3814_v32, %v3826_v59  ;;  %v3900_v59 = vrot.slane %v5444_v53, 3 }
 0x775   : > { %v5428_v61 = vpop.eup %5427  ;;  %v3839_v29 = vmul.f32 1.442695, %v3834_v60 }
 0x776   : > { %v3845_v49 = vsel %vm525_vm10, %v5428_v61, 0.0 }
 0x777   : > { %5429 = vpow2.f32 %v3839_v29  ;;  %3846 = vadd.xlane.f32.xlu2 %v3845_v49 }
 0x77a   : > { %v3829_v62 = vpop.xlane.xlu1 %3828  ;;  %v6689_v0 = vpop.permute.xlu2 %3877 }
 0x77b   : > { %v3835_v63 = vsub.f32 %v3817_v2, %v3829_v62  ;;  %v3909_v2 = vperm.slane %v3894_v26, 0  ;;  %v3914_v62 = vperm.slane %v3898_v17, 0 }
 0x77d   : > { %v5430_v6 = vpop.eup %5429  ;;  %v3841_v1 = vmul.f32 1.442695, %v3835_v63 }
 0x77e   : > { %v3848_v9 = vsel %vm525_vm10, %v5430_v6, 0.0 }
 0x77f   : > { %5431 = vpow2.f32 %v3841_v1  ;;  %3849 = vadd.xlane.f32.xlu1 %v3848_v9  ;;  %v3916_v1 = vperm.slane %v3900_v59, 0 }
 0x782   : > { %v3832_v43 = vpop.xlane.xlu0 %3831 }
 0x783   : > { %v3836_v5 = vsub.f32 %v3819_v14, %v3832_v43 }
 0x785   : > { %v6675_v44 = vpop.eup %5431  ;;  %v3843_v33 = vmul.f32 1.442695, %v3836_v5  ;;  %v3901_v5 = vrot.slane %v5444_v53, 4 }
 0x786   : > { %v3851_v40 = vsel %vm525_vm10, %v6675_v44, 0.0 }
 0x787   : > { %5433 = vpow2.f32 %v3843_v33  ;;  %3852 = vadd.xlane.f32.xlu0 %v3851_v40  ;;  %v3917_v23 = vperm.slane %v3901_v5, 0 }
 0x78d   : > { %v6679_v42 = vpop.eup %5433 }
 0x78e   : > { %v3854_v7 = vsel %vm525_vm10, %v6679_v42, 0.0 }
 0x78f   : > { %3855 = vadd.xlane.f32.xlu2 %v3854_v7 }
 0x792   : > { %v3874_v34 = vpop.permute.xlu1 %3873 }
 0x795   : > { %v3876_v8 = vpop.permute.xlu0 %3875 }
 0x798   : > { %4038 = vrot.lane.b32.xlu1 %v6487_v36, %s6783_s28 }
 0x79a   : > { %v6691_v45 = vpop.permute.xlu1 %4032 }
 0x79b   : > { %4036 = vrot.lane.b32.xlu0 %v6483_v30, %s6783_s28 }
 0x79d   : > { %v6694_v36 = vpop.permute.xlu0 %3879 }
 0x7a7   : > { %4034 = vrot.lane.b32.xlu2 %v6477_v10, %s6783_s28  ;;  %v3906_v10 = vperm.slane %v3891_v12, 0  ;;  %s4067_s28 = sshll.u32 %s4064_s25, 4  ;;  %s4068_s28 = int_to_ptr.hbm [resolvable:$true] %s4067_s28 }
 0x7a8   : > { %s5519_s20 = sshra.s32 %s4068_s28, 4  ;;  %s5520_s20 = int_to_ptr.hbm [resolvable:$true] %s5519_s20 }
 0x7a9   : > { %s5521_s21 = scalar_lea.hbm %s5520_s20, 32  ;;  %p5526_p3 = scmp.lt.s32.totalorder %s5520_s20, %s6763_s14 }
 0x7aa   : > { %p5522_p0 = scmp.ne.s32.totalorder %s5520_s20, %s5521_s21  ;;  %p5527_p4 = scmp.lt.s32.totalorder %s5525_s29, %s5521_s21 }
 0x7ac   : > { %p5523_p1 = pnand %p5522_p0, %p5704_p5  ;;  %p5528_p7 = por %p5527_p4, %p5526_p3 }
 0x7ae   : > { %p5524_p2 = pneg %p5523_p1 }
 0x7b0   : > { %p5529_p8 = pnand %p5528_p7, %p5524_p2 }
 0x7ea   : > { %v3847_v51 = vpop.xlane.xlu2 %3846 }
 0x7eb   : > { %5435 = vrcp.f32 %v3847_v51 }
 0x7f1   : > { %v5436_v15 = vpop.eup %5435 }
 0x7f2   : > { %v3861_v30 = vmul.f32 %v5436_v15, %v5428_v61  ;;  %v3850_v19 = vpop.xlane.xlu1 %3849  ;;  %v3913_v61 = vperm.slane %v5444_v53, 0 }
 0x7f3   : > { %5437 = vrcp.f32 %v3850_v19 }
 0x7f4   : > { %v3885_v25 = vmul.f32 %v3874_v34, %v3861_v30  ;;  %v3902_v34 = vrot.slane %v5444_v53, 5 }
 0x7f6   : > { %v3941_v27 = vrot.slane %v3885_v25, 2  ;;  %v3942_v28 = vrot.slane %v3885_v25, 4  ;;  %v3943_v55 = vrot.slane %v3885_v25, 6  ;;  %v3965_v32 = vadd.f32 %v3905_v16, %v3885_v25 }
 0x7f7   : > { %v3918_v16 = vperm.slane %v3902_v34, 0 }
 0x7f8   : > { %v3966_v31 = vadd.f32 %v3941_v27, %v3906_v10  ;;  %v3967_v35 = vadd.f32 %v3942_v28, %v3907_v21  ;;  %v3968_v41 = vadd.f32 %v3943_v55, %v3908_v24  ;;  %3997 = vst [vmem:[#allocation1] ss:$4 sm:$0xff] %v3965_v32  ;;  %v3920_v10 = vperm.slane %v3904_v13, 0 }
 0x7f9   : > { %v5438_v38 = vpop.eup %5437 }
 0x7fa   : > { %3999 = vst [vmem:[#allocation1 + $0x1] ss:$4 sm:$0xff] %v3966_v31  ;;  %v3862_v4 = vmul.f32 %v5438_v38, %v5430_v6  ;;  %v3853_v39 = vpop.xlane.xlu0 %3852  ;;  %v3915_v6 = vperm.slane %v3899_v22, 0 }
 0x7fb   : > { %4001 = vst [vmem:[#allocation1 + $0x2] ss:$4 sm:$0xff] %v3967_v35  ;;  %5439 = vrcp.f32 %v3853_v39 }
 0x7fc   : > { %4003 = vst [vmem:[#allocation1 + $0x3] ss:$4 sm:$0xff] %v3968_v41  ;;  %v3886_v54 = vmul.f32 %v3876_v8, %v3862_v4  ;;  %v3903_v8 = vrot.slane %v5444_v53, 6 }
 0x7fe   : > { %v3944_v50 = vrot.slane %v3886_v54, 2  ;;  %v3945_v14 = vrot.slane %v3886_v54, 4  ;;  %v3946_v20 = vrot.slane %v3886_v54, 6  ;;  %v3969_v52 = vadd.f32 %v3909_v2, %v3886_v54 }
 0x7ff   : > { %v3919_v19 = vperm.slane %v3903_v8, 0 }
 0x800   : > { %v3970_v57 = vadd.f32 %v3944_v50, %v3910_v3  ;;  %v3971_v18 = vadd.f32 %v3945_v14, %v3911_v47  ;;  %v3972_v58 = vadd.f32 %v3946_v20, %v3912_v48  ;;  %4005 = vst [vmem:[#allocation1 + $0x20] ss:$4 sm:$0xff] %v3969_v52 }
 0x801   : > { %v5440_v60 = vpop.eup %5439 }
 0x802   : > { %4007 = vst [vmem:[#allocation1 + $0x21] ss:$4 sm:$0xff] %v3970_v57  ;;  %v3863_v29 = vmul.f32 %v5440_v60, %v6675_v44  ;;  %v3856_v49 = vpop.xlane.xlu2 %3855 }
 0x803   : > { %4009 = vst [vmem:[#allocation1 + $0x22] ss:$4 sm:$0xff] %v3971_v18  ;;  %5441 = vrcp.f32 %v3856_v49  ;;  %v4012_v63 = vld.sshfl [vmem:[#allocation1] sm:$0xff pattern:$0x73625140] }
 0x804   : > { %4011 = vst [vmem:[#allocation1 + $0x23] ss:$4 sm:$0xff] %v3972_v58  ;;  %v3887_v9 = vmul.f32 %v6689_v0, %v3863_v29  ;;  %v4044_v43 = vsel %vm525_vm10, %v4012_v63, %v6691_v45 }
 0x805   : > { %4048 = vst [vmem:[%s6704_s19] sm:$0xff] %v4044_v43 }
 0x806   : > { %v3947_v33 = vrot.slane %v3887_v9, 2  ;;  %v3948_v44 = vrot.slane %v3887_v9, 4  ;;  %v3949_v40 = vrot.slane %v3887_v9, 6  ;;  %v3973_v7 = vadd.f32 %v3913_v61, %v3887_v9 }
 0x808   : > { %v3974_v51 = vadd.f32 %v3947_v33, %v3914_v62  ;;  %v3975_v11 = vadd.f32 %v3948_v44, %v3915_v6  ;;  %v3976_v12 = vadd.f32 %v3949_v40, %v3916_v1  ;;  %4014 = vst [vmem:[#allocation1] ss:$4 sm:$0xff] %v3973_v7 }
 0x809   : > { %v5442_v0 = vpop.eup %5441 }
 0x80a   : > { %v3864_v45 = vmul.f32 %v5442_v0, %v6679_v42  ;;  %v4035_v15 = vpop.permute.xlu2 %4034  ;;  %4015 = vst [vmem:[#allocation1 + $0x1] ss:$4 sm:$0xff] %v3974_v51  ;;  %v4039_v35 = vpop.permute.xlu1 %4038 }
 0x80b   : > { %v4013_v30 = vld.sshfl [vmem:[#allocation1 + $0x20] sm:$0xff pattern:$0x73625140]  ;;  %4016 = vst [vmem:[#allocation1 + $0x2] ss:$4 sm:$0xff] %v3975_v11 }
 0x80c   : > { %v3888_v21 = vmul.f32 %v6694_v36, %v3864_v45  ;;  %v4045_v24 = vsel %vm525_vm10, %v4013_v30, %v4035_v15  ;;  %4017 = vst [vmem:[#allocation1 + $0x3] ss:$4 sm:$0xff] %v3976_v12 }
 0x80d   : > { %4049 = vst [vmem:[%s6704_s19 + $0x8] sm:$0xff] %v4045_v24  ;;  %v4037_v36 = vpop.permute.xlu0 %4036 }
 0x80e   : > { %v3950_v25 = vrot.slane %v3888_v21, 2  ;;  %v3951_v26 = vrot.slane %v3888_v21, 4  ;;  %v3952_v27 = vrot.slane %v3888_v21, 6  ;;  %v3977_v42 = vadd.f32 %v3917_v23, %v3888_v21 }
 0x810   : > { %v3978_v28 = vadd.f32 %v3950_v25, %v3918_v16  ;;  %v3979_v55 = vadd.f32 %v3951_v26, %v3919_v19  ;;  %v3980_v32 = vadd.f32 %v3952_v27, %v3920_v10  ;;  %4018 = vst [vmem:[#allocation1 + $0x20] ss:$4 sm:$0xff] %v3977_v42 }
 0x812   : > { %4019 = vst [vmem:[#allocation1 + $0x21] ss:$4 sm:$0xff] %v3978_v28 }
 0x813   : > { %4020 = vst [vmem:[#allocation1 + $0x22] ss:$4 sm:$0xff] %v3979_v55  ;;  %v4022_v56 = vld.sshfl [vmem:[#allocation1] sm:$0xff pattern:$0x73625140] }
 0x814   : > { %4021 = vst [vmem:[#allocation1 + $0x23] ss:$4 sm:$0xff] %v3980_v32  ;;  %v4046_v46 = vsel %vm525_vm10, %v4022_v56, %v4037_v36 }
 0x815   : > { %4050 = vst [vmem:[%s6704_s19 + $0x10] sm:$0xff] %v4046_v46 }
 0x81b   : > { %v4023_v31 = vld.sshfl [vmem:[#allocation1 + $0x20] sm:$0xff pattern:$0x73625140] }
 0x81c   : > { %v4047_v41 = vsel %vm525_vm10, %v4023_v31, %v4039_v35 }
 0x81d   : > { %4051 = vst [vmem:[%s6704_s19 + $0x18] sm:$0xff] %v4047_v41 }
 0x81e   : > { %5532 = shalt.err (!%p5529_p8)
}
 0x81f   : > { %s5589_s18 = smov 128   ;;  %s5590_s19 = smov 8  }
 0x820   : > { %5331 = dma.vmem_to_hbm [thread:$0]  (%p5704_p5), %s4066_s27, 512, %s4068_s28, %s4053_s17, %s5589_s18, %s5589_s18, %s5590_s19  }
 0x821 PF: > { %s6784_s15 = sld [smem:[#allocation11_spill]]  ;;  %p5348_p9 = scmp.ge.s32.totalorder %s5575_s16, 2 }
 0x823   : > { %p5341_p10 = pnand %p5348_p9, %p5708_p6 }
 0x825   : > { %p5342_p11 = pneg %p5341_p10 }
 0x827   : > { %s4082_s26 = sand.u32 1, %s6784_s15  }
 0x828   : > { %s4083_s0 = scalar_lea.sflag [#allocation4], %s4082_s26 }
 0x829   : > { %5558 = dma.done.wait (%p5342_p11), %s4083_s0, 512  }
 0x82a   : > { %5560 = vsyncadd (%p5342_p11), %s4083_s0, 4294966784  ;;  %s6786_s16 = sld [smem:[#allocation13_spill]]  ;;  %s6789_s29 = smov %s5567_s30 }
 0x82b   : > { %s6787_s20 = sld [smem:[#allocation12_spill]] }
 0x82c   : > { %s6788_s15 = sld [smem:[#allocation14_spill]] }
 0x830   : > { %p26_p12 = scmp.ge.s32.totalorder %s6786_s16, 4  }
 0x831   : > { %s6790_s30 = smov %s6787_s20 }
 0x832   :  { %28 = sbr.rel (!%p26_p12) target bundleno = 7 (0x7), region = 144 }
 0x837   :  { %4089 = vsyncpa [#allocation3], 1 }
 0x838   :  { %4091 = vsyncpa [#allocation3 + $0x1], 1 }
 0x839   :  { %4092 = vsyncpa [#allocation6], 1 }
 0x83a   :  { %4093 = vsyncpa [#allocation4], 1 }
 0x83b   :  { %4095 = vsyncpa [#allocation4 + $0x1], 1 }

</bundles_post_ra>
